<compile_context>
chip_gen: v7x
topology: tpu7x:2x2x1
jax: 0.10.0
libtpu: 0.0.40
codegen_flags: <defaults>
</compile_context>

<pallas_src>
import jax
import jax.numpy as jnp
from jax import lax
from jax.experimental import pallas as pl
from jax.experimental.pallas import tpu as pltpu
import numpy as np


def text_classifier_kernel(text_ref, start_ref, end_ref, emb_wi0_ref,
                           wh0_ref, b0_ref,
                           wi1_ref, wh1_ref, b1_ref,
                           fcw_ref, fcb_ref,
                           out_ref):
    B = out_ref.shape[0]
    H = wh0_ref.shape[0]
    T_pad = text_ref.shape[0]
    V_pad = emb_wi0_ref.shape[0]

    # ---------- EmbeddingBag(mean) fused with layer-0 input projection ----------
    # bag mask (0/1) and one-hot (0/1) are exact in bf16 -> MXU bf16 path; the exact
    # mean scaling (1/cnt) is applied afterwards in f32.
    t_iota = lax.broadcasted_iota(jnp.int32, (B, T_pad), 1)
    starts = start_ref[...]                                       # (B, 1) int32
    ends = end_ref[...]                                           # (B, 1) int32
    inside = (t_iota >= starts) & (t_iota < ends)
    mask_bag = inside.astype(jnp.bfloat16)                        # (B, T_pad) 0/1
    inv_cnt = 1.0 / jnp.maximum(ends - starts, 1).astype(jnp.float32)   # (B, 1) f32

    v_iota = lax.broadcasted_iota(jnp.int32, (T_pad, V_pad), 1)
    onehot = (v_iota == text_ref[...]).astype(jnp.bfloat16)       # (T_pad, V_pad) 0/1

    # Per-bag token-id counts (exact small integers).
    bag_cnt = jnp.dot(mask_bag, onehot,
                      preferred_element_type=jnp.float32)         # (B, V_pad)
    # Folded table emb_wi0 = emb @ W_ih_l0^T  ->  hoisted layer-0 gate pre-activation.
    xg0 = (jnp.dot(bag_cnt.astype(jnp.bfloat16), emb_wi0_ref[...],
                   preferred_element_type=jnp.float32) * inv_cnt
           + b0_ref[...])                                         # (B, 4H) f32

    wh0 = wh0_ref[...]                                            # (H, 4H) bf16
    wi1 = wi1_ref[...]                                            # (H, 4H) bf16
    wh1 = wh1_ref[...]                                            # (H, 4H) bf16
    b1 = b1_ref[...]                                              # (1, 4H) f32

    # ---------- one LSTM cell (PyTorch gate order [i, f, g, o] along 4H) ----------
    def cell(xg, h_prev, c_prev, wh):
        gates = xg + jnp.dot(h_prev.astype(jnp.bfloat16), wh,
                             preferred_element_type=jnp.float32)  # (1, 4H) f32
        if_g = jax.nn.sigmoid(gates[:, 0:2 * H])                  # i and f in one EUP push
        g_g = jnp.tanh(gates[:, 2 * H:3 * H])
        o_g = jax.nn.sigmoid(gates[:, 3 * H:4 * H])
        c_new = if_g[:, H:2 * H] * c_prev + if_g[:, 0:H] * g_g
        h_new = o_g * jnp.tanh(c_new)
        return h_new, c_new

    # ---------- wavefront-interleaved 2-layer recurrence over B "timesteps" ----------
    zero = jnp.zeros((1, H), jnp.float32)
    h1, c1 = zero, zero
    h2, c2 = zero, zero
    h2_seq = jnp.zeros((B, H), jnp.float32)                       # stays in vregs
    row_ids = lax.broadcasted_iota(jnp.int32, (B, 1), 0)

    for w in range(B + 1):                                        # fully unrolled (static)
        h1_in = h1  # layer-1 output of step w-1 (pre-update this wave)
        if w >= 1:
            # Layer-2 step (w-1): per-step input projection + cell; independent of the
            # layer-1 update below within this wave.
            xg1 = (jnp.dot(h1_in.astype(jnp.bfloat16), wi1,
                           preferred_element_type=jnp.float32) + b1)
            h2, c2 = cell(xg1, h2, c2, wh1)
            h2_seq = jnp.where(row_ids == (w - 1), h2, h2_seq)
        if w < B:
            # Layer-1 step w (input projection already hoisted into xg0).
            h1, c1 = cell(xg0[w:w + 1, :], h1, c1, wh0)

    # ---------- Linear head (lane-dense, 128-padded output) ----------
    out_ref[...] = (jnp.dot(h2_seq.astype(jnp.bfloat16), fcw_ref[...],
                            preferred_element_type=jnp.float32)
                    + fcb_ref[...])


def text_classifier_forward(text, offsets, params):
    (emb, wi0, wh0, bi0, bh0, wi1, wh1, bi1, bh1, fcw, fcb) = params
    T = text.shape[0]
    B = offsets.shape[0]
    V, E = emb.shape
    H = wh0.shape[1]
    C = fcw.shape[0]

    rup = lambda x, m: ((x + m - 1) // m) * m
    T_pad = rup(T, 128)
    V_pad = rup(V, 128)
    C_pad = rup(C, 128)

    text_pad = jnp.zeros((T_pad, 1), jnp.int32).at[:T, 0].set(text.astype(jnp.int32))
    starts = offsets.astype(jnp.int32).reshape(B, 1)
    ends = jnp.concatenate([offsets[1:].astype(jnp.int32),
                            jnp.array([T], jnp.int32)]).reshape(B, 1)

    # Fold the embedding table with the layer-0 input projection (weights-only, offline).
    emb_wi0 = emb @ wi0.T                                          # (V, 4H) f32
    emb_wi0_pad = (jnp.zeros((V_pad, 4 * H), jnp.float32)
                   .at[:V, :].set(emb_wi0)).astype(jnp.bfloat16)

    # LSTM / FC weights -> bf16 (MXU-native); accumulation stays f32 in-kernel.
    wh0_t = wh0.T.astype(jnp.bfloat16)                             # (H, 4H)
    b0 = (bi0 + bh0).reshape(1, 4 * H).astype(jnp.float32)
    wi1_t = wi1.T.astype(jnp.bfloat16)                             # (H, 4H)
    wh1_t = wh1.T.astype(jnp.bfloat16)                             # (H, 4H)
    b1 = (bi1 + bh1).reshape(1, 4 * H).astype(jnp.float32)
    fcw_pad = (jnp.zeros((H, C_pad), jnp.float32)
               .at[:, :C].set(fcw.T)).astype(jnp.bfloat16)         # (H, C_pad)
    fcb_pad = jnp.zeros((1, C_pad), jnp.float32).at[0, :C].set(fcb)

    vmem = lambda: pl.BlockSpec(memory_space=pltpu.MemorySpace.VMEM)

    out = pl.pallas_call(
        text_classifier_kernel,
        out_shape=jax.ShapeDtypeStruct((B, C_pad), jnp.float32),
        in_specs=[vmem() for _ in range(11)],
        out_specs=vmem(),
    )(text_pad, starts, ends, emb_wi0_pad,
      wh0_t, b0, wi1_t, wh1_t, b1, fcw_pad, fcb_pad)

    return out[:, :C]


# ---------- plain-JAX (f32) reference for correctness check ----------
def reference_forward(text_np, offsets_np, params):
    emb, wi0, wh0, bi0, bh0, wi1, wh1, bi1, bh1, fcw, fcb = params
    T = text_np.shape[0]
    ends = list(offsets_np[1:]) + [T]
    bags = [jnp.mean(emb[jnp.asarray(text_np[int(s):int(e)])], axis=0)
            for s, e in zip(offsets_np, ends)]
    x = jnp.stack(bags)                                            # (B, E)

    def run_layer(x_seq, wi, wh, bi, bh):
        H = wh.shape[1]
        bias = bi + bh

        def step(carry, x_t):
            h, c = carry
            g = x_t @ wi.T + h @ wh.T + bias
            i = jax.nn.sigmoid(g[0:H])
            f = jax.nn.sigmoid(g[H:2 * H])
            gg = jnp.tanh(g[2 * H:3 * H])
            o = jax.nn.sigmoid(g[3 * H:4 * H])
            c = f * c + i * gg
            h = o * jnp.tanh(c)
            return (h, c), h

        _, hs = lax.scan(step, (jnp.zeros(H), jnp.zeros(H)), x_seq)
        return hs

    h1 = run_layer(x, wi0, wh0, bi0, bh0)
    h2 = run_layer(h1, wi1, wh1, bi1, bh1)
    return h2 @ fcw.T + fcb


if __name__ == "__main__":
    vocab_size, embed_dim, hidden_size, num_class = 50, 256, 128, 6
    num_bags, bag_size = 8, 5
    T = num_bags * bag_size

    key = jax.random.PRNGKey(0)
    ks = jax.random.split(key, 12)

    def u(k, shape, scale=0.1):
        return jax.random.uniform(k, shape, jnp.float32, -scale, scale)

    H4 = 4 * hidden_size
    params = (
        u(ks[0], (vocab_size, embed_dim), 0.5),          # embedding.weight
        u(ks[1], (H4, embed_dim)),                       # lstm.weight_ih_l0
        u(ks[2], (H4, hidden_size)),                     # lstm.weight_hh_l0
        u(ks[3], (H4,)),                                 # lstm.bias_ih_l0
        u(ks[4], (H4,)),                                 # lstm.bias_hh_l0
        u(ks[5], (H4, hidden_size)),                     # lstm.weight_ih_l1
        u(ks[6], (H4, hidden_size)),                     # lstm.weight_hh_l1
        u(ks[7], (H4,)),                                 # lstm.bias_ih_l1
        u(ks[8], (H4,)),                                 # lstm.bias_hh_l1
        u(ks[9], (num_class, hidden_size), 0.5),         # fc.weight
        jnp.zeros((num_class,), jnp.float32),            # fc.bias
    )

    text_np = np.array(
        jax.random.randint(ks[10], (T,), 0, vocab_size, jnp.int32))
    offsets_np = np.arange(0, T, bag_size, dtype=np.int32)   # (num_bags,)

    text = jnp.asarray(text_np, jnp.int32)
    offsets = jnp.asarray(offsets_np, jnp.int32)

    out = jax.block_until_ready(text_classifier_forward(text, offsets, params))
    ref = jax.block_until_ready(reference_forward(text_np, offsets_np, params))

    assert out.shape == (num_bags, num_class), out.shape
    # bf16 storage of the folded embedding/LSTM/FC weights (f32 accumulation) ->
    # relaxed tolerance vs. the pure-f32 reference; error grows with sequence length B.
    assert jnp.allclose(out, ref, atol=3e-2, rtol=3e-2), (
        float(jnp.max(jnp.abs(out - ref))))

    print("KERNEL_OK")
</pallas_src>

<mosaic_0001>
module attributes {stable_mosaic.version = 11 : i64} {
  func.func @text_classifier_kernel(%arg0: memref<128x1xi32, #tpu.memory_space<vmem>>, %arg1: memref<8x1xi32, #tpu.memory_space<vmem>>, %arg2: memref<8x1xi32, #tpu.memory_space<vmem>>, %arg3: memref<128x512xbf16, #tpu.memory_space<vmem>>, %arg4: memref<128x512xbf16, #tpu.memory_space<vmem>>, %arg5: memref<1x512xf32, #tpu.memory_space<vmem>>, %arg6: memref<128x512xbf16, #tpu.memory_space<vmem>>, %arg7: memref<128x512xbf16, #tpu.memory_space<vmem>>, %arg8: memref<1x512xf32, #tpu.memory_space<vmem>>, %arg9: memref<128x128xbf16, #tpu.memory_space<vmem>>, %arg10: memref<1x128xf32, #tpu.memory_space<vmem>>, %arg11: memref<8x128xf32, #tpu.memory_space<vmem>>) attributes {dimension_semantics = [], scalar_prefetch = 0 : i64, scratch_operands = 0 : i64, tpu.core_type = #tpu.core_type<tc>} {
    %0 = tpu.iota {dimensions = array<i32: 1>} : vector<8x128xi32>
    %c0 = arith.constant 0 : index
    %c0_0 = arith.constant 0 : index
    %1 = vector.load %arg1[%c0, %c0_0] : memref<8x1xi32, #tpu.memory_space<vmem>>, vector<8x1xi32>
    %c0_1 = arith.constant 0 : index
    %c0_2 = arith.constant 0 : index
    %2 = vector.load %arg2[%c0_1, %c0_2] : memref<8x1xi32, #tpu.memory_space<vmem>>, vector<8x1xi32>
    %3 = vector.broadcast %1 : vector<8x1xi32> to vector<8x128xi32>
    %4 = arith.cmpi sge, %0, %3 : vector<8x128xi32>
    %5 = vector.broadcast %2 : vector<8x1xi32> to vector<8x128xi32>
    %6 = arith.cmpi slt, %0, %5 : vector<8x128xi32>
    %7 = arith.andi %4, %6 : vector<8x128xi1>
    %8 = arith.extui %7 : vector<8x128xi1> to vector<8x128xi32>
    %9 = arith.sitofp %8 : vector<8x128xi32> to vector<8x128xf32>
    %10 = arith.truncf %9 : vector<8x128xf32> to vector<8x128xbf16>
    %11 = arith.subi %2, %1 : vector<8x1xi32>
    %c1_i32 = arith.constant 1 : i32
    %12 = vector.broadcast %c1_i32 : i32 to vector<8x1xi32>
    %13 = arith.maxsi %11, %12 : vector<8x1xi32>
    %14 = arith.sitofp %13 : vector<8x1xi32> to vector<8x1xf32>
    %cst = arith.constant 1.000000e+00 : f32
    %15 = vector.broadcast %cst : f32 to vector<8x1xf32>
    %16 = arith.divf %15, %14 : vector<8x1xf32>
    %17 = tpu.iota {dimensions = array<i32: 1>} : vector<128x128xi32>
    %c0_3 = arith.constant 0 : index
    %c0_4 = arith.constant 0 : index
    %18 = vector.load %arg0[%c0_3, %c0_4] : memref<128x1xi32, #tpu.memory_space<vmem>>, vector<128x1xi32>
    %19 = vector.broadcast %18 : vector<128x1xi32> to vector<128x128xi32>
    %20 = arith.cmpi eq, %17, %19 : vector<128x128xi32>
    %21 = arith.extui %20 : vector<128x128xi1> to vector<128x128xi32>
    %22 = arith.sitofp %21 : vector<128x128xi32> to vector<128x128xf32>
    %23 = arith.truncf %22 : vector<128x128xf32> to vector<128x128xbf16>
    %cst_5 = arith.constant dense<0.000000e+00> : vector<8x128xf32>
    %24 = tpu.matmul %10, %23, %cst_5 {dimension_numbers = #tpu.dot_dimension_numbers<[1], [0], [0], [1], [0, 0, 1, 1], [], []>} : vector<8x128xbf16>, vector<128x128xbf16>, vector<8x128xf32> -> vector<8x128xf32>
    %25 = arith.truncf %24 : vector<8x128xf32> to vector<8x128xbf16>
    %c0_6 = arith.constant 0 : index
    %c0_7 = arith.constant 0 : index
    %26 = vector.load %arg3[%c0_6, %c0_7] : memref<128x512xbf16, #tpu.memory_space<vmem>>, vector<128x512xbf16>
    %cst_8 = arith.constant dense<0.000000e+00> : vector<8x512xf32>
    %27 = tpu.matmul %25, %26, %cst_8 {dimension_numbers = #tpu.dot_dimension_numbers<[1], [0], [0], [1], [0, 0, 1, 1], [], []>} : vector<8x128xbf16>, vector<128x512xbf16>, vector<8x512xf32> -> vector<8x512xf32>
    %28 = vector.broadcast %16 : vector<8x1xf32> to vector<8x512xf32>
    %29 = arith.mulf %27, %28 : vector<8x512xf32>
    %c0_9 = arith.constant 0 : index
    %c0_10 = arith.constant 0 : index
    %30 = vector.load %arg5[%c0_9, %c0_10] : memref<1x512xf32, #tpu.memory_space<vmem>>, vector<1x512xf32>
    %31 = vector.broadcast %30 : vector<1x512xf32> to vector<8x512xf32>
    %32 = arith.addf %29, %31 : vector<8x512xf32>
    %c0_11 = arith.constant 0 : index
    %c0_12 = arith.constant 0 : index
    %33 = vector.load %arg4[%c0_11, %c0_12] : memref<128x512xbf16, #tpu.memory_space<vmem>>, vector<128x512xbf16>
    %c0_13 = arith.constant 0 : index
    %c0_14 = arith.constant 0 : index
    %34 = vector.load %arg6[%c0_13, %c0_14] : memref<128x512xbf16, #tpu.memory_space<vmem>>, vector<128x512xbf16>
    %c0_15 = arith.constant 0 : index
    %c0_16 = arith.constant 0 : index
    %35 = vector.load %arg7[%c0_15, %c0_16] : memref<128x512xbf16, #tpu.memory_space<vmem>>, vector<128x512xbf16>
    %c0_17 = arith.constant 0 : index
    %c0_18 = arith.constant 0 : index
    %36 = vector.load %arg8[%c0_17, %c0_18] : memref<1x512xf32, #tpu.memory_space<vmem>>, vector<1x512xf32>
    %cst_19 = arith.constant 0.000000e+00 : f32
    %37 = vector.broadcast %cst_19 : f32 to vector<1x128xf32>
    %cst_20 = arith.constant 0.000000e+00 : f32
    %38 = vector.broadcast %cst_20 : f32 to vector<8x128xf32>
    %39 = tpu.iota {dimensions = array<i32: 0>} : vector<8x1xi32>
    %40 = vector.extract_strided_slice %32 {offsets = [0, 0], sizes = [1, 512], strides = [1, 1]} : vector<8x512xf32> to vector<1x512xf32>
    %41 = arith.truncf %37 : vector<1x128xf32> to vector<1x128xbf16>
    %cst_21 = arith.constant dense<0.000000e+00> : vector<1x512xf32>
    %42 = tpu.matmul %41, %33, %cst_21 {dimension_numbers = #tpu.dot_dimension_numbers<[1], [0], [0], [1], [0, 0, 1, 1], [], []>} : vector<1x128xbf16>, vector<128x512xbf16>, vector<1x512xf32> -> vector<1x512xf32>
    %43 = arith.addf %40, %42 : vector<1x512xf32>
    %44 = vector.extract_strided_slice %43 {offsets = [0, 0], sizes = [1, 256], strides = [1, 1]} : vector<1x512xf32> to vector<1x256xf32>
    %45 = arith.negf %44 : vector<1x256xf32>
    %46 = math.exp %45 : vector<1x256xf32>
    %cst_22 = arith.constant 1.000000e+00 : f32
    %47 = vector.broadcast %cst_22 : f32 to vector<1x256xf32>
    %48 = arith.addf %47, %46 : vector<1x256xf32>
    %49 = arith.divf %47, %48 : vector<1x256xf32>
    %50 = vector.extract_strided_slice %43 {offsets = [0, 256], sizes = [1, 128], strides = [1, 1]} : vector<1x512xf32> to vector<1x128xf32>
    %51 = math.tanh %50 : vector<1x128xf32>
    %52 = vector.extract_strided_slice %43 {offsets = [0, 384], sizes = [1, 128], strides = [1, 1]} : vector<1x512xf32> to vector<1x128xf32>
    %53 = arith.negf %52 : vector<1x128xf32>
    %54 = math.exp %53 : vector<1x128xf32>
    %cst_23 = arith.constant 1.000000e+00 : f32
    %55 = vector.broadcast %cst_23 : f32 to vector<1x128xf32>
    %56 = arith.addf %55, %54 : vector<1x128xf32>
    %57 = arith.divf %55, %56 : vector<1x128xf32>
    %58 = vector.extract_strided_slice %49 {offsets = [0, 128], sizes = [1, 128], strides = [1, 1]} : vector<1x256xf32> to vector<1x128xf32>
    %59 = arith.mulf %58, %37 : vector<1x128xf32>
    %60 = vector.extract_strided_slice %49 {offsets = [0, 0], sizes = [1, 128], strides = [1, 1]} : vector<1x256xf32> to vector<1x128xf32>
    %61 = arith.mulf %60, %51 : vector<1x128xf32>
    %62 = arith.addf %59, %61 : vector<1x128xf32>
    %63 = math.tanh %62 : vector<1x128xf32>
    %64 = arith.mulf %57, %63 : vector<1x128xf32>
    %65 = arith.truncf %64 : vector<1x128xf32> to vector<1x128xbf16>
    %cst_24 = arith.constant dense<0.000000e+00> : vector<1x512xf32>
    %66 = tpu.matmul %65, %34, %cst_24 {dimension_numbers = #tpu.dot_dimension_numbers<[1], [0], [0], [1], [0, 0, 1, 1], [], []>} : vector<1x128xbf16>, vector<128x512xbf16>, vector<1x512xf32> -> vector<1x512xf32>
    %67 = arith.addf %66, %36 : vector<1x512xf32>
    %68 = arith.truncf %37 : vector<1x128xf32> to vector<1x128xbf16>
    %cst_25 = arith.constant dense<0.000000e+00> : vector<1x512xf32>
    %69 = tpu.matmul %68, %35, %cst_25 {dimension_numbers = #tpu.dot_dimension_numbers<[1], [0], [0], [1], [0, 0, 1, 1], [], []>} : vector<1x128xbf16>, vector<128x512xbf16>, vector<1x512xf32> -> vector<1x512xf32>
    %70 = arith.addf %67, %69 : vector<1x512xf32>
    %71 = vector.extract_strided_slice %70 {offsets = [0, 0], sizes = [1, 256], strides = [1, 1]} : vector<1x512xf32> to vector<1x256xf32>
    %72 = arith.negf %71 : vector<1x256xf32>
    %73 = math.exp %72 : vector<1x256xf32>
    %cst_26 = arith.constant 1.000000e+00 : f32
    %74 = vector.broadcast %cst_26 : f32 to vector<1x256xf32>
    %75 = arith.addf %74, %73 : vector<1x256xf32>
    %76 = arith.divf %74, %75 : vector<1x256xf32>
    %77 = vector.extract_strided_slice %70 {offsets = [0, 256], sizes = [1, 128], strides = [1, 1]} : vector<1x512xf32> to vector<1x128xf32>
    %78 = math.tanh %77 : vector<1x128xf32>
    %79 = vector.extract_strided_slice %70 {offsets = [0, 384], sizes = [1, 128], strides = [1, 1]} : vector<1x512xf32> to vector<1x128xf32>
    %80 = arith.negf %79 : vector<1x128xf32>
    %81 = math.exp %80 : vector<1x128xf32>
    %cst_27 = arith.constant 1.000000e+00 : f32
    %82 = vector.broadcast %cst_27 : f32 to vector<1x128xf32>
    %83 = arith.addf %82, %81 : vector<1x128xf32>
    %84 = arith.divf %82, %83 : vector<1x128xf32>
    %85 = vector.extract_strided_slice %76 {offsets = [0, 128], sizes = [1, 128], strides = [1, 1]} : vector<1x256xf32> to vector<1x128xf32>
    %86 = arith.mulf %85, %37 : vector<1x128xf32>
    %87 = vector.extract_strided_slice %76 {offsets = [0, 0], sizes = [1, 128], strides = [1, 1]} : vector<1x256xf32> to vector<1x128xf32>
    %88 = arith.mulf %87, %78 : vector<1x128xf32>
    %89 = arith.addf %86, %88 : vector<1x128xf32>
    %90 = math.tanh %89 : vector<1x128xf32>
    %91 = arith.mulf %84, %90 : vector<1x128xf32>
    %c0_i32 = arith.constant 0 : i32
    %92 = vector.broadcast %c0_i32 : i32 to vector<8x1xi32>
    %93 = arith.cmpi eq, %39, %92 : vector<8x1xi32>
    %94 = vector.shape_cast %93 : vector<8x1xi1> to vector<8x1xi1>
    %95 = vector.broadcast %94 : vector<8x1xi1> to vector<8x128xi1>
    %96 = vector.shape_cast %91 : vector<1x128xf32> to vector<1x128xf32>
    %97 = vector.broadcast %96 : vector<1x128xf32> to vector<8x128xf32>
    %98 = arith.select %95, %97, %38 : vector<8x128xi1>, vector<8x128xf32>
    %99 = vector.extract_strided_slice %32 {offsets = [1, 0], sizes = [1, 512], strides = [1, 1]} : vector<8x512xf32> to vector<1x512xf32>
    %100 = arith.truncf %64 : vector<1x128xf32> to vector<1x128xbf16>
    %cst_28 = arith.constant dense<0.000000e+00> : vector<1x512xf32>
    %101 = tpu.matmul %100, %33, %cst_28 {dimension_numbers = #tpu.dot_dimension_numbers<[1], [0], [0], [1], [0, 0, 1, 1], [], []>} : vector<1x128xbf16>, vector<128x512xbf16>, vector<1x512xf32> -> vector<1x512xf32>
    %102 = arith.addf %99, %101 : vector<1x512xf32>
    %103 = vector.extract_strided_slice %102 {offsets = [0, 0], sizes = [1, 256], strides = [1, 1]} : vector<1x512xf32> to vector<1x256xf32>
    %104 = arith.negf %103 : vector<1x256xf32>
    %105 = math.exp %104 : vector<1x256xf32>
    %cst_29 = arith.constant 1.000000e+00 : f32
    %106 = vector.broadcast %cst_29 : f32 to vector<1x256xf32>
    %107 = arith.addf %106, %105 : vector<1x256xf32>
    %108 = arith.divf %106, %107 : vector<1x256xf32>
    %109 = vector.extract_strided_slice %102 {offsets = [0, 256], sizes = [1, 128], strides = [1, 1]} : vector<1x512xf32> to vector<1x128xf32>
    %110 = math.tanh %109 : vector<1x128xf32>
    %111 = vector.extract_strided_slice %102 {offsets = [0, 384], sizes = [1, 128], strides = [1, 1]} : vector<1x512xf32> to vector<1x128xf32>
    %112 = arith.negf %111 : vector<1x128xf32>
    %113 = math.exp %112 : vector<1x128xf32>
    %cst_30 = arith.constant 1.000000e+00 : f32
    %114 = vector.broadcast %cst_30 : f32 to vector<1x128xf32>
    %115 = arith.addf %114, %113 : vector<1x128xf32>
    %116 = arith.divf %114, %115 : vector<1x128xf32>
    %117 = vector.extract_strided_slice %108 {offsets = [0, 128], sizes = [1, 128], strides = [1, 1]} : vector<1x256xf32> to vector<1x128xf32>
    %118 = arith.mulf %117, %62 : vector<1x128xf32>
    %119 = vector.extract_strided_slice %108 {offsets = [0, 0], sizes = [1, 128], strides = [1, 1]} : vector<1x256xf32> to vector<1x128xf32>
    %120 = arith.mulf %119, %110 : vector<1x128xf32>
    %121 = arith.addf %118, %120 : vector<1x128xf32>
    %122 = math.tanh %121 : vector<1x128xf32>
    %123 = arith.mulf %116, %122 : vector<1x128xf32>
    %124 = arith.truncf %123 : vector<1x128xf32> to vector<1x128xbf16>
    %cst_31 = arith.constant dense<0.000000e+00> : vector<1x512xf32>
    %125 = tpu.matmul %124, %34, %cst_31 {dimension_numbers = #tpu.dot_dimension_numbers<[1], [0], [0], [1], [0, 0, 1, 1], [], []>} : vector<1x128xbf16>, vector<128x512xbf16>, vector<1x512xf32> -> vector<1x512xf32>
    %126 = arith.addf %125, %36 : vector<1x512xf32>
    %127 = arith.truncf %91 : vector<1x128xf32> to vector<1x128xbf16>
    %cst_32 = arith.constant dense<0.000000e+00> : vector<1x512xf32>
    %128 = tpu.matmul %127, %35, %cst_32 {dimension_numbers = #tpu.dot_dimension_numbers<[1], [0], [0], [1], [0, 0, 1, 1], [], []>} : vector<1x128xbf16>, vector<128x512xbf16>, vector<1x512xf32> -> vector<1x512xf32>
    %129 = arith.addf %126, %128 : vector<1x512xf32>
    %130 = vector.extract_strided_slice %129 {offsets = [0, 0], sizes = [1, 256], strides = [1, 1]} : vector<1x512xf32> to vector<1x256xf32>
    %131 = arith.negf %130 : vector<1x256xf32>
    %132 = math.exp %131 : vector<1x256xf32>
    %cst_33 = arith.constant 1.000000e+00 : f32
    %133 = vector.broadcast %cst_33 : f32 to vector<1x256xf32>
    %134 = arith.addf %133, %132 : vector<1x256xf32>
    %135 = arith.divf %133, %134 : vector<1x256xf32>
    %136 = vector.extract_strided_slice %129 {offsets = [0, 256], sizes = [1, 128], strides = [1, 1]} : vector<1x512xf32> to vector<1x128xf32>
    %137 = math.tanh %136 : vector<1x128xf32>
    %138 = vector.extract_strided_slice %129 {offsets = [0, 384], sizes = [1, 128], strides = [1, 1]} : vector<1x512xf32> to vector<1x128xf32>
    %139 = arith.negf %138 : vector<1x128xf32>
    %140 = math.exp %139 : vector<1x128xf32>
    %cst_34 = arith.constant 1.000000e+00 : f32
    %141 = vector.broadcast %cst_34 : f32 to vector<1x128xf32>
    %142 = arith.addf %141, %140 : vector<1x128xf32>
    %143 = arith.divf %141, %142 : vector<1x128xf32>
    %144 = vector.extract_strided_slice %135 {offsets = [0, 128], sizes = [1, 128], strides = [1, 1]} : vector<1x256xf32> to vector<1x128xf32>
    %145 = arith.mulf %144, %89 : vector<1x128xf32>
    %146 = vector.extract_strided_slice %135 {offsets = [0, 0], sizes = [1, 128], strides = [1, 1]} : vector<1x256xf32> to vector<1x128xf32>
    %147 = arith.mulf %146, %137 : vector<1x128xf32>
    %148 = arith.addf %145, %147 : vector<1x128xf32>
    %149 = math.tanh %148 : vector<1x128xf32>
    %150 = arith.mulf %143, %149 : vector<1x128xf32>
    %c1_i32_35 = arith.constant 1 : i32
    %151 = vector.broadcast %c1_i32_35 : i32 to vector<8x1xi32>
    %152 = arith.cmpi eq, %39, %151 : vector<8x1xi32>
    %153 = vector.shape_cast %152 : vector<8x1xi1> to vector<8x1xi1>
    %154 = vector.broadcast %153 : vector<8x1xi1> to vector<8x128xi1>
    %155 = vector.shape_cast %150 : vector<1x128xf32> to vector<1x128xf32>
    %156 = vector.broadcast %155 : vector<1x128xf32> to vector<8x128xf32>
    %157 = arith.select %154, %156, %98 : vector<8x128xi1>, vector<8x128xf32>
    %158 = vector.extract_strided_slice %32 {offsets = [2, 0], sizes = [1, 512], strides = [1, 1]} : vector<8x512xf32> to vector<1x512xf32>
    %159 = arith.truncf %123 : vector<1x128xf32> to vector<1x128xbf16>
    %cst_36 = arith.constant dense<0.000000e+00> : vector<1x512xf32>
    %160 = tpu.matmul %159, %33, %cst_36 {dimension_numbers = #tpu.dot_dimension_numbers<[1], [0], [0], [1], [0, 0, 1, 1], [], []>} : vector<1x128xbf16>, vector<128x512xbf16>, vector<1x512xf32> -> vector<1x512xf32>
    %161 = arith.addf %158, %160 : vector<1x512xf32>
    %162 = vector.extract_strided_slice %161 {offsets = [0, 0], sizes = [1, 256], strides = [1, 1]} : vector<1x512xf32> to vector<1x256xf32>
    %163 = arith.negf %162 : vector<1x256xf32>
    %164 = math.exp %163 : vector<1x256xf32>
    %cst_37 = arith.constant 1.000000e+00 : f32
    %165 = vector.broadcast %cst_37 : f32 to vector<1x256xf32>
    %166 = arith.addf %165, %164 : vector<1x256xf32>
    %167 = arith.divf %165, %166 : vector<1x256xf32>
    %168 = vector.extract_strided_slice %161 {offsets = [0, 256], sizes = [1, 128], strides = [1, 1]} : vector<1x512xf32> to vector<1x128xf32>
    %169 = math.tanh %168 : vector<1x128xf32>
    %170 = vector.extract_strided_slice %161 {offsets = [0, 384], sizes = [1, 128], strides = [1, 1]} : vector<1x512xf32> to vector<1x128xf32>
    %171 = arith.negf %170 : vector<1x128xf32>
    %172 = math.exp %171 : vector<1x128xf32>
    %cst_38 = arith.constant 1.000000e+00 : f32
    %173 = vector.broadcast %cst_38 : f32 to vector<1x128xf32>
    %174 = arith.addf %173, %172 : vector<1x128xf32>
    %175 = arith.divf %173, %174 : vector<1x128xf32>
    %176 = vector.extract_strided_slice %167 {offsets = [0, 128], sizes = [1, 128], strides = [1, 1]} : vector<1x256xf32> to vector<1x128xf32>
    %177 = arith.mulf %176, %121 : vector<1x128xf32>
    %178 = vector.extract_strided_slice %167 {offsets = [0, 0], sizes = [1, 128], strides = [1, 1]} : vector<1x256xf32> to vector<1x128xf32>
    %179 = arith.mulf %178, %169 : vector<1x128xf32>
    %180 = arith.addf %177, %179 : vector<1x128xf32>
    %181 = math.tanh %180 : vector<1x128xf32>
    %182 = arith.mulf %175, %181 : vector<1x128xf32>
    %183 = arith.truncf %182 : vector<1x128xf32> to vector<1x128xbf16>
    %cst_39 = arith.constant dense<0.000000e+00> : vector<1x512xf32>
    %184 = tpu.matmul %183, %34, %cst_39 {dimension_numbers = #tpu.dot_dimension_numbers<[1], [0], [0], [1], [0, 0, 1, 1], [], []>} : vector<1x128xbf16>, vector<128x512xbf16>, vector<1x512xf32> -> vector<1x512xf32>
    %185 = arith.addf %184, %36 : vector<1x512xf32>
    %186 = arith.truncf %150 : vector<1x128xf32> to vector<1x128xbf16>
    %cst_40 = arith.constant dense<0.000000e+00> : vector<1x512xf32>
    %187 = tpu.matmul %186, %35, %cst_40 {dimension_numbers = #tpu.dot_dimension_numbers<[1], [0], [0], [1], [0, 0, 1, 1], [], []>} : vector<1x128xbf16>, vector<128x512xbf16>, vector<1x512xf32> -> vector<1x512xf32>
    %188 = arith.addf %185, %187 : vector<1x512xf32>
    %189 = vector.extract_strided_slice %188 {offsets = [0, 0], sizes = [1, 256], strides = [1, 1]} : vector<1x512xf32> to vector<1x256xf32>
    %190 = arith.negf %189 : vector<1x256xf32>
    %191 = math.exp %190 : vector<1x256xf32>
    %cst_41 = arith.constant 1.000000e+00 : f32
    %192 = vector.broadcast %cst_41 : f32 to vector<1x256xf32>
    %193 = arith.addf %192, %191 : vector<1x256xf32>
    %194 = arith.divf %192, %193 : vector<1x256xf32>
    %195 = vector.extract_strided_slice %188 {offsets = [0, 256], sizes = [1, 128], strides = [1, 1]} : vector<1x512xf32> to vector<1x128xf32>
    %196 = math.tanh %195 : vector<1x128xf32>
    %197 = vector.extract_strided_slice %188 {offsets = [0, 384], sizes = [1, 128], strides = [1, 1]} : vector<1x512xf32> to vector<1x128xf32>
    %198 = arith.negf %197 : vector<1x128xf32>
    %199 = math.exp %198 : vector<1x128xf32>
    %cst_42 = arith.constant 1.000000e+00 : f32
    %200 = vector.broadcast %cst_42 : f32 to vector<1x128xf32>
    %201 = arith.addf %200, %199 : vector<1x128xf32>
    %202 = arith.divf %200, %201 : vector<1x128xf32>
    %203 = vector.extract_strided_slice %194 {offsets = [0, 128], sizes = [1, 128], strides = [1, 1]} : vector<1x256xf32> to vector<1x128xf32>
    %204 = arith.mulf %203, %148 : vector<1x128xf32>
    %205 = vector.extract_strided_slice %194 {offsets = [0, 0], sizes = [1, 128], strides = [1, 1]} : vector<1x256xf32> to vector<1x128xf32>
    %206 = arith.mulf %205, %196 : vector<1x128xf32>
    %207 = arith.addf %204, %206 : vector<1x128xf32>
    %208 = math.tanh %207 : vector<1x128xf32>
    %209 = arith.mulf %202, %208 : vector<1x128xf32>
    %c2_i32 = arith.constant 2 : i32
    %210 = vector.broadcast %c2_i32 : i32 to vector<8x1xi32>
    %211 = arith.cmpi eq, %39, %210 : vector<8x1xi32>
    %212 = vector.shape_cast %211 : vector<8x1xi1> to vector<8x1xi1>
    %213 = vector.broadcast %212 : vector<8x1xi1> to vector<8x128xi1>
    %214 = vector.shape_cast %209 : vector<1x128xf32> to vector<1x128xf32>
    %215 = vector.broadcast %214 : vector<1x128xf32> to vector<8x128xf32>
    %216 = arith.select %213, %215, %157 : vector<8x128xi1>, vector<8x128xf32>
    %217 = vector.extract_strided_slice %32 {offsets = [3, 0], sizes = [1, 512], strides = [1, 1]} : vector<8x512xf32> to vector<1x512xf32>
    %218 = arith.truncf %182 : vector<1x128xf32> to vector<1x128xbf16>
    %cst_43 = arith.constant dense<0.000000e+00> : vector<1x512xf32>
    %219 = tpu.matmul %218, %33, %cst_43 {dimension_numbers = #tpu.dot_dimension_numbers<[1], [0], [0], [1], [0, 0, 1, 1], [], []>} : vector<1x128xbf16>, vector<128x512xbf16>, vector<1x512xf32> -> vector<1x512xf32>
    %220 = arith.addf %217, %219 : vector<1x512xf32>
    %221 = vector.extract_strided_slice %220 {offsets = [0, 0], sizes = [1, 256], strides = [1, 1]} : vector<1x512xf32> to vector<1x256xf32>
    %222 = arith.negf %221 : vector<1x256xf32>
    %223 = math.exp %222 : vector<1x256xf32>
    %cst_44 = arith.constant 1.000000e+00 : f32
    %224 = vector.broadcast %cst_44 : f32 to vector<1x256xf32>
    %225 = arith.addf %224, %223 : vector<1x256xf32>
    %226 = arith.divf %224, %225 : vector<1x256xf32>
    %227 = vector.extract_strided_slice %220 {offsets = [0, 256], sizes = [1, 128], strides = [1, 1]} : vector<1x512xf32> to vector<1x128xf32>
    %228 = math.tanh %227 : vector<1x128xf32>
    %229 = vector.extract_strided_slice %220 {offsets = [0, 384], sizes = [1, 128], strides = [1, 1]} : vector<1x512xf32> to vector<1x128xf32>
    %230 = arith.negf %229 : vector<1x128xf32>
    %231 = math.exp %230 : vector<1x128xf32>
    %cst_45 = arith.constant 1.000000e+00 : f32
    %232 = vector.broadcast %cst_45 : f32 to vector<1x128xf32>
    %233 = arith.addf %232, %231 : vector<1x128xf32>
    %234 = arith.divf %232, %233 : vector<1x128xf32>
    %235 = vector.extract_strided_slice %226 {offsets = [0, 128], sizes = [1, 128], strides = [1, 1]} : vector<1x256xf32> to vector<1x128xf32>
    %236 = arith.mulf %235, %180 : vector<1x128xf32>
    %237 = vector.extract_strided_slice %226 {offsets = [0, 0], sizes = [1, 128], strides = [1, 1]} : vector<1x256xf32> to vector<1x128xf32>
    %238 = arith.mulf %237, %228 : vector<1x128xf32>
    %239 = arith.addf %236, %238 : vector<1x128xf32>
    %240 = math.tanh %239 : vector<1x128xf32>
    %241 = arith.mulf %234, %240 : vector<1x128xf32>
    %242 = arith.truncf %241 : vector<1x128xf32> to vector<1x128xbf16>
    %cst_46 = arith.constant dense<0.000000e+00> : vector<1x512xf32>
    %243 = tpu.matmul %242, %34, %cst_46 {dimension_numbers = #tpu.dot_dimension_numbers<[1], [0], [0], [1], [0, 0, 1, 1], [], []>} : vector<1x128xbf16>, vector<128x512xbf16>, vector<1x512xf32> -> vector<1x512xf32>
    %244 = arith.addf %243, %36 : vector<1x512xf32>
    %245 = arith.truncf %209 : vector<1x128xf32> to vector<1x128xbf16>
    %cst_47 = arith.constant dense<0.000000e+00> : vector<1x512xf32>
    %246 = tpu.matmul %245, %35, %cst_47 {dimension_numbers = #tpu.dot_dimension_numbers<[1], [0], [0], [1], [0, 0, 1, 1], [], []>} : vector<1x128xbf16>, vector<128x512xbf16>, vector<1x512xf32> -> vector<1x512xf32>
    %247 = arith.addf %244, %246 : vector<1x512xf32>
    %248 = vector.extract_strided_slice %247 {offsets = [0, 0], sizes = [1, 256], strides = [1, 1]} : vector<1x512xf32> to vector<1x256xf32>
    %249 = arith.negf %248 : vector<1x256xf32>
    %250 = math.exp %249 : vector<1x256xf32>
    %cst_48 = arith.constant 1.000000e+00 : f32
    %251 = vector.broadcast %cst_48 : f32 to vector<1x256xf32>
    %252 = arith.addf %251, %250 : vector<1x256xf32>
    %253 = arith.divf %251, %252 : vector<1x256xf32>
    %254 = vector.extract_strided_slice %247 {offsets = [0, 256], sizes = [1, 128], strides = [1, 1]} : vector<1x512xf32> to vector<1x128xf32>
    %255 = math.tanh %254 : vector<1x128xf32>
    %256 = vector.extract_strided_slice %247 {offsets = [0, 384], sizes = [1, 128], strides = [1, 1]} : vector<1x512xf32> to vector<1x128xf32>
    %257 = arith.negf %256 : vector<1x128xf32>
    %258 = math.exp %257 : vector<1x128xf32>
    %cst_49 = arith.constant 1.000000e+00 : f32
    %259 = vector.broadcast %cst_49 : f32 to vector<1x128xf32>
    %260 = arith.addf %259, %258 : vector<1x128xf32>
    %261 = arith.divf %259, %260 : vector<1x128xf32>
    %262 = vector.extract_strided_slice %253 {offsets = [0, 128], sizes = [1, 128], strides = [1, 1]} : vector<1x256xf32> to vector<1x128xf32>
    %263 = arith.mulf %262, %207 : vector<1x128xf32>
    %264 = vector.extract_strided_slice %253 {offsets = [0, 0], sizes = [1, 128], strides = [1, 1]} : vector<1x256xf32> to vector<1x128xf32>
    %265 = arith.mulf %264, %255 : vector<1x128xf32>
    %266 = arith.addf %263, %265 : vector<1x128xf32>
    %267 = math.tanh %266 : vector<1x128xf32>
    %268 = arith.mulf %261, %267 : vector<1x128xf32>
    %c3_i32 = arith.constant 3 : i32
    %269 = vector.broadcast %c3_i32 : i32 to vector<8x1xi32>
    %270 = arith.cmpi eq, %39, %269 : vector<8x1xi32>
    %271 = vector.shape_cast %270 : vector<8x1xi1> to vector<8x1xi1>
    %272 = vector.broadcast %271 : vector<8x1xi1> to vector<8x128xi1>
    %273 = vector.shape_cast %268 : vector<1x128xf32> to vector<1x128xf32>
    %274 = vector.broadcast %273 : vector<1x128xf32> to vector<8x128xf32>
    %275 = arith.select %272, %274, %216 : vector<8x128xi1>, vector<8x128xf32>
    %276 = vector.extract_strided_slice %32 {offsets = [4, 0], sizes = [1, 512], strides = [1, 1]} : vector<8x512xf32> to vector<1x512xf32>
    %277 = arith.truncf %241 : vector<1x128xf32> to vector<1x128xbf16>
    %cst_50 = arith.constant dense<0.000000e+00> : vector<1x512xf32>
    %278 = tpu.matmul %277, %33, %cst_50 {dimension_numbers = #tpu.dot_dimension_numbers<[1], [0], [0], [1], [0, 0, 1, 1], [], []>} : vector<1x128xbf16>, vector<128x512xbf16>, vector<1x512xf32> -> vector<1x512xf32>
    %279 = arith.addf %276, %278 : vector<1x512xf32>
    %280 = vector.extract_strided_slice %279 {offsets = [0, 0], sizes = [1, 256], strides = [1, 1]} : vector<1x512xf32> to vector<1x256xf32>
    %281 = arith.negf %280 : vector<1x256xf32>
    %282 = math.exp %281 : vector<1x256xf32>
    %cst_51 = arith.constant 1.000000e+00 : f32
    %283 = vector.broadcast %cst_51 : f32 to vector<1x256xf32>
    %284 = arith.addf %283, %282 : vector<1x256xf32>
    %285 = arith.divf %283, %284 : vector<1x256xf32>
    %286 = vector.extract_strided_slice %279 {offsets = [0, 256], sizes = [1, 128], strides = [1, 1]} : vector<1x512xf32> to vector<1x128xf32>
    %287 = math.tanh %286 : vector<1x128xf32>
    %288 = vector.extract_strided_slice %279 {offsets = [0, 384], sizes = [1, 128], strides = [1, 1]} : vector<1x512xf32> to vector<1x128xf32>
    %289 = arith.negf %288 : vector<1x128xf32>
    %290 = math.exp %289 : vector<1x128xf32>
    %cst_52 = arith.constant 1.000000e+00 : f32
    %291 = vector.broadcast %cst_52 : f32 to vector<1x128xf32>
    %292 = arith.addf %291, %290 : vector<1x128xf32>
    %293 = arith.divf %291, %292 : vector<1x128xf32>
    %294 = vector.extract_strided_slice %285 {offsets = [0, 128], sizes = [1, 128], strides = [1, 1]} : vector<1x256xf32> to vector<1x128xf32>
    %295 = arith.mulf %294, %239 : vector<1x128xf32>
    %296 = vector.extract_strided_slice %285 {offsets = [0, 0], sizes = [1, 128], strides = [1, 1]} : vector<1x256xf32> to vector<1x128xf32>
    %297 = arith.mulf %296, %287 : vector<1x128xf32>
    %298 = arith.addf %295, %297 : vector<1x128xf32>
    %299 = math.tanh %298 : vector<1x128xf32>
    %300 = arith.mulf %293, %299 : vector<1x128xf32>
    %301 = arith.truncf %300 : vector<1x128xf32> to vector<1x128xbf16>
    %cst_53 = arith.constant dense<0.000000e+00> : vector<1x512xf32>
    %302 = tpu.matmul %301, %34, %cst_53 {dimension_numbers = #tpu.dot_dimension_numbers<[1], [0], [0], [1], [0, 0, 1, 1], [], []>} : vector<1x128xbf16>, vector<128x512xbf16>, vector<1x512xf32> -> vector<1x512xf32>
    %303 = arith.addf %302, %36 : vector<1x512xf32>
    %304 = arith.truncf %268 : vector<1x128xf32> to vector<1x128xbf16>
    %cst_54 = arith.constant dense<0.000000e+00> : vector<1x512xf32>
    %305 = tpu.matmul %304, %35, %cst_54 {dimension_numbers = #tpu.dot_dimension_numbers<[1], [0], [0], [1], [0, 0, 1, 1], [], []>} : vector<1x128xbf16>, vector<128x512xbf16>, vector<1x512xf32> -> vector<1x512xf32>
    %306 = arith.addf %303, %305 : vector<1x512xf32>
    %307 = vector.extract_strided_slice %306 {offsets = [0, 0], sizes = [1, 256], strides = [1, 1]} : vector<1x512xf32> to vector<1x256xf32>
    %308 = arith.negf %307 : vector<1x256xf32>
    %309 = math.exp %308 : vector<1x256xf32>
    %cst_55 = arith.constant 1.000000e+00 : f32
    %310 = vector.broadcast %cst_55 : f32 to vector<1x256xf32>
    %311 = arith.addf %310, %309 : vector<1x256xf32>
    %312 = arith.divf %310, %311 : vector<1x256xf32>
    %313 = vector.extract_strided_slice %306 {offsets = [0, 256], sizes = [1, 128], strides = [1, 1]} : vector<1x512xf32> to vector<1x128xf32>
    %314 = math.tanh %313 : vector<1x128xf32>
    %315 = vector.extract_strided_slice %306 {offsets = [0, 384], sizes = [1, 128], strides = [1, 1]} : vector<1x512xf32> to vector<1x128xf32>
    %316 = arith.negf %315 : vector<1x128xf32>
    %317 = math.exp %316 : vector<1x128xf32>
    %cst_56 = arith.constant 1.000000e+00 : f32
    %318 = vector.broadcast %cst_56 : f32 to vector<1x128xf32>
    %319 = arith.addf %318, %317 : vector<1x128xf32>
    %320 = arith.divf %318, %319 : vector<1x128xf32>
    %321 = vector.extract_strided_slice %312 {offsets = [0, 128], sizes = [1, 128], strides = [1, 1]} : vector<1x256xf32> to vector<1x128xf32>
    %322 = arith.mulf %321, %266 : vector<1x128xf32>
    %323 = vector.extract_strided_slice %312 {offsets = [0, 0], sizes = [1, 128], strides = [1, 1]} : vector<1x256xf32> to vector<1x128xf32>
    %324 = arith.mulf %323, %314 : vector<1x128xf32>
    %325 = arith.addf %322, %324 : vector<1x128xf32>
    %326 = math.tanh %325 : vector<1x128xf32>
    %327 = arith.mulf %320, %326 : vector<1x128xf32>
    %c4_i32 = arith.constant 4 : i32
    %328 = vector.broadcast %c4_i32 : i32 to vector<8x1xi32>
    %329 = arith.cmpi eq, %39, %328 : vector<8x1xi32>
    %330 = vector.shape_cast %329 : vector<8x1xi1> to vector<8x1xi1>
    %331 = vector.broadcast %330 : vector<8x1xi1> to vector<8x128xi1>
    %332 = vector.shape_cast %327 : vector<1x128xf32> to vector<1x128xf32>
    %333 = vector.broadcast %332 : vector<1x128xf32> to vector<8x128xf32>
    %334 = arith.select %331, %333, %275 : vector<8x128xi1>, vector<8x128xf32>
    %335 = vector.extract_strided_slice %32 {offsets = [5, 0], sizes = [1, 512], strides = [1, 1]} : vector<8x512xf32> to vector<1x512xf32>
    %336 = arith.truncf %300 : vector<1x128xf32> to vector<1x128xbf16>
    %cst_57 = arith.constant dense<0.000000e+00> : vector<1x512xf32>
    %337 = tpu.matmul %336, %33, %cst_57 {dimension_numbers = #tpu.dot_dimension_numbers<[1], [0], [0], [1], [0, 0, 1, 1], [], []>} : vector<1x128xbf16>, vector<128x512xbf16>, vector<1x512xf32> -> vector<1x512xf32>
    %338 = arith.addf %335, %337 : vector<1x512xf32>
    %339 = vector.extract_strided_slice %338 {offsets = [0, 0], sizes = [1, 256], strides = [1, 1]} : vector<1x512xf32> to vector<1x256xf32>
    %340 = arith.negf %339 : vector<1x256xf32>
    %341 = math.exp %340 : vector<1x256xf32>
    %cst_58 = arith.constant 1.000000e+00 : f32
    %342 = vector.broadcast %cst_58 : f32 to vector<1x256xf32>
    %343 = arith.addf %342, %341 : vector<1x256xf32>
    %344 = arith.divf %342, %343 : vector<1x256xf32>
    %345 = vector.extract_strided_slice %338 {offsets = [0, 256], sizes = [1, 128], strides = [1, 1]} : vector<1x512xf32> to vector<1x128xf32>
    %346 = math.tanh %345 : vector<1x128xf32>
    %347 = vector.extract_strided_slice %338 {offsets = [0, 384], sizes = [1, 128], strides = [1, 1]} : vector<1x512xf32> to vector<1x128xf32>
    %348 = arith.negf %347 : vector<1x128xf32>
    %349 = math.exp %348 : vector<1x128xf32>
    %cst_59 = arith.constant 1.000000e+00 : f32
    %350 = vector.broadcast %cst_59 : f32 to vector<1x128xf32>
    %351 = arith.addf %350, %349 : vector<1x128xf32>
    %352 = arith.divf %350, %351 : vector<1x128xf32>
    %353 = vector.extract_strided_slice %344 {offsets = [0, 128], sizes = [1, 128], strides = [1, 1]} : vector<1x256xf32> to vector<1x128xf32>
    %354 = arith.mulf %353, %298 : vector<1x128xf32>
    %355 = vector.extract_strided_slice %344 {offsets = [0, 0], sizes = [1, 128], strides = [1, 1]} : vector<1x256xf32> to vector<1x128xf32>
    %356 = arith.mulf %355, %346 : vector<1x128xf32>
    %357 = arith.addf %354, %356 : vector<1x128xf32>
    %358 = math.tanh %357 : vector<1x128xf32>
    %359 = arith.mulf %352, %358 : vector<1x128xf32>
    %360 = arith.truncf %359 : vector<1x128xf32> to vector<1x128xbf16>
    %cst_60 = arith.constant dense<0.000000e+00> : vector<1x512xf32>
    %361 = tpu.matmul %360, %34, %cst_60 {dimension_numbers = #tpu.dot_dimension_numbers<[1], [0], [0], [1], [0, 0, 1, 1], [], []>} : vector<1x128xbf16>, vector<128x512xbf16>, vector<1x512xf32> -> vector<1x512xf32>
    %362 = arith.addf %361, %36 : vector<1x512xf32>
    %363 = arith.truncf %327 : vector<1x128xf32> to vector<1x128xbf16>
    %cst_61 = arith.constant dense<0.000000e+00> : vector<1x512xf32>
    %364 = tpu.matmul %363, %35, %cst_61 {dimension_numbers = #tpu.dot_dimension_numbers<[1], [0], [0], [1], [0, 0, 1, 1], [], []>} : vector<1x128xbf16>, vector<128x512xbf16>, vector<1x512xf32> -> vector<1x512xf32>
    %365 = arith.addf %362, %364 : vector<1x512xf32>
    %366 = vector.extract_strided_slice %365 {offsets = [0, 0], sizes = [1, 256], strides = [1, 1]} : vector<1x512xf32> to vector<1x256xf32>
    %367 = arith.negf %366 : vector<1x256xf32>
    %368 = math.exp %367 : vector<1x256xf32>
    %cst_62 = arith.constant 1.000000e+00 : f32
    %369 = vector.broadcast %cst_62 : f32 to vector<1x256xf32>
    %370 = arith.addf %369, %368 : vector<1x256xf32>
    %371 = arith.divf %369, %370 : vector<1x256xf32>
    %372 = vector.extract_strided_slice %365 {offsets = [0, 256], sizes = [1, 128], strides = [1, 1]} : vector<1x512xf32> to vector<1x128xf32>
    %373 = math.tanh %372 : vector<1x128xf32>
    %374 = vector.extract_strided_slice %365 {offsets = [0, 384], sizes = [1, 128], strides = [1, 1]} : vector<1x512xf32> to vector<1x128xf32>
    %375 = arith.negf %374 : vector<1x128xf32>
    %376 = math.exp %375 : vector<1x128xf32>
    %cst_63 = arith.constant 1.000000e+00 : f32
    %377 = vector.broadcast %cst_63 : f32 to vector<1x128xf32>
    %378 = arith.addf %377, %376 : vector<1x128xf32>
    %379 = arith.divf %377, %378 : vector<1x128xf32>
    %380 = vector.extract_strided_slice %371 {offsets = [0, 128], sizes = [1, 128], strides = [1, 1]} : vector<1x256xf32> to vector<1x128xf32>
    %381 = arith.mulf %380, %325 : vector<1x128xf32>
    %382 = vector.extract_strided_slice %371 {offsets = [0, 0], sizes = [1, 128], strides = [1, 1]} : vector<1x256xf32> to vector<1x128xf32>
    %383 = arith.mulf %382, %373 : vector<1x128xf32>
    %384 = arith.addf %381, %383 : vector<1x128xf32>
    %385 = math.tanh %384 : vector<1x128xf32>
    %386 = arith.mulf %379, %385 : vector<1x128xf32>
    %c5_i32 = arith.constant 5 : i32
    %387 = vector.broadcast %c5_i32 : i32 to vector<8x1xi32>
    %388 = arith.cmpi eq, %39, %387 : vector<8x1xi32>
    %389 = vector.shape_cast %388 : vector<8x1xi1> to vector<8x1xi1>
    %390 = vector.broadcast %389 : vector<8x1xi1> to vector<8x128xi1>
    %391 = vector.shape_cast %386 : vector<1x128xf32> to vector<1x128xf32>
    %392 = vector.broadcast %391 : vector<1x128xf32> to vector<8x128xf32>
    %393 = arith.select %390, %392, %334 : vector<8x128xi1>, vector<8x128xf32>
    %394 = vector.extract_strided_slice %32 {offsets = [6, 0], sizes = [1, 512], strides = [1, 1]} : vector<8x512xf32> to vector<1x512xf32>
    %395 = arith.truncf %359 : vector<1x128xf32> to vector<1x128xbf16>
    %cst_64 = arith.constant dense<0.000000e+00> : vector<1x512xf32>
    %396 = tpu.matmul %395, %33, %cst_64 {dimension_numbers = #tpu.dot_dimension_numbers<[1], [0], [0], [1], [0, 0, 1, 1], [], []>} : vector<1x128xbf16>, vector<128x512xbf16>, vector<1x512xf32> -> vector<1x512xf32>
    %397 = arith.addf %394, %396 : vector<1x512xf32>
    %398 = vector.extract_strided_slice %397 {offsets = [0, 0], sizes = [1, 256], strides = [1, 1]} : vector<1x512xf32> to vector<1x256xf32>
    %399 = arith.negf %398 : vector<1x256xf32>
    %400 = math.exp %399 : vector<1x256xf32>
    %cst_65 = arith.constant 1.000000e+00 : f32
    %401 = vector.broadcast %cst_65 : f32 to vector<1x256xf32>
    %402 = arith.addf %401, %400 : vector<1x256xf32>
    %403 = arith.divf %401, %402 : vector<1x256xf32>
    %404 = vector.extract_strided_slice %397 {offsets = [0, 256], sizes = [1, 128], strides = [1, 1]} : vector<1x512xf32> to vector<1x128xf32>
    %405 = math.tanh %404 : vector<1x128xf32>
    %406 = vector.extract_strided_slice %397 {offsets = [0, 384], sizes = [1, 128], strides = [1, 1]} : vector<1x512xf32> to vector<1x128xf32>
    %407 = arith.negf %406 : vector<1x128xf32>
    %408 = math.exp %407 : vector<1x128xf32>
    %cst_66 = arith.constant 1.000000e+00 : f32
    %409 = vector.broadcast %cst_66 : f32 to vector<1x128xf32>
    %410 = arith.addf %409, %408 : vector<1x128xf32>
    %411 = arith.divf %409, %410 : vector<1x128xf32>
    %412 = vector.extract_strided_slice %403 {offsets = [0, 128], sizes = [1, 128], strides = [1, 1]} : vector<1x256xf32> to vector<1x128xf32>
    %413 = arith.mulf %412, %357 : vector<1x128xf32>
    %414 = vector.extract_strided_slice %403 {offsets = [0, 0], sizes = [1, 128], strides = [1, 1]} : vector<1x256xf32> to vector<1x128xf32>
    %415 = arith.mulf %414, %405 : vector<1x128xf32>
    %416 = arith.addf %413, %415 : vector<1x128xf32>
    %417 = math.tanh %416 : vector<1x128xf32>
    %418 = arith.mulf %411, %417 : vector<1x128xf32>
    %419 = arith.truncf %418 : vector<1x128xf32> to vector<1x128xbf16>
    %cst_67 = arith.constant dense<0.000000e+00> : vector<1x512xf32>
    %420 = tpu.matmul %419, %34, %cst_67 {dimension_numbers = #tpu.dot_dimension_numbers<[1], [0], [0], [1], [0, 0, 1, 1], [], []>} : vector<1x128xbf16>, vector<128x512xbf16>, vector<1x512xf32> -> vector<1x512xf32>
    %421 = arith.addf %420, %36 : vector<1x512xf32>
    %422 = arith.truncf %386 : vector<1x128xf32> to vector<1x128xbf16>
    %cst_68 = arith.constant dense<0.000000e+00> : vector<1x512xf32>
    %423 = tpu.matmul %422, %35, %cst_68 {dimension_numbers = #tpu.dot_dimension_numbers<[1], [0], [0], [1], [0, 0, 1, 1], [], []>} : vector<1x128xbf16>, vector<128x512xbf16>, vector<1x512xf32> -> vector<1x512xf32>
    %424 = arith.addf %421, %423 : vector<1x512xf32>
    %425 = vector.extract_strided_slice %424 {offsets = [0, 0], sizes = [1, 256], strides = [1, 1]} : vector<1x512xf32> to vector<1x256xf32>
    %426 = arith.negf %425 : vector<1x256xf32>
    %427 = math.exp %426 : vector<1x256xf32>
    %cst_69 = arith.constant 1.000000e+00 : f32
    %428 = vector.broadcast %cst_69 : f32 to vector<1x256xf32>
    %429 = arith.addf %428, %427 : vector<1x256xf32>
    %430 = arith.divf %428, %429 : vector<1x256xf32>
    %431 = vector.extract_strided_slice %424 {offsets = [0, 256], sizes = [1, 128], strides = [1, 1]} : vector<1x512xf32> to vector<1x128xf32>
    %432 = math.tanh %431 : vector<1x128xf32>
    %433 = vector.extract_strided_slice %424 {offsets = [0, 384], sizes = [1, 128], strides = [1, 1]} : vector<1x512xf32> to vector<1x128xf32>
    %434 = arith.negf %433 : vector<1x128xf32>
    %435 = math.exp %434 : vector<1x128xf32>
    %cst_70 = arith.constant 1.000000e+00 : f32
    %436 = vector.broadcast %cst_70 : f32 to vector<1x128xf32>
    %437 = arith.addf %436, %435 : vector<1x128xf32>
    %438 = arith.divf %436, %437 : vector<1x128xf32>
    %439 = vector.extract_strided_slice %430 {offsets = [0, 128], sizes = [1, 128], strides = [1, 1]} : vector<1x256xf32> to vector<1x128xf32>
    %440 = arith.mulf %439, %384 : vector<1x128xf32>
    %441 = vector.extract_strided_slice %430 {offsets = [0, 0], sizes = [1, 128], strides = [1, 1]} : vector<1x256xf32> to vector<1x128xf32>
    %442 = arith.mulf %441, %432 : vector<1x128xf32>
    %443 = arith.addf %440, %442 : vector<1x128xf32>
    %444 = math.tanh %443 : vector<1x128xf32>
    %445 = arith.mulf %438, %444 : vector<1x128xf32>
    %c6_i32 = arith.constant 6 : i32
    %446 = vector.broadcast %c6_i32 : i32 to vector<8x1xi32>
    %447 = arith.cmpi eq, %39, %446 : vector<8x1xi32>
    %448 = vector.shape_cast %447 : vector<8x1xi1> to vector<8x1xi1>
    %449 = vector.broadcast %448 : vector<8x1xi1> to vector<8x128xi1>
    %450 = vector.shape_cast %445 : vector<1x128xf32> to vector<1x128xf32>
    %451 = vector.broadcast %450 : vector<1x128xf32> to vector<8x128xf32>
    %452 = arith.select %449, %451, %393 : vector<8x128xi1>, vector<8x128xf32>
    %453 = vector.extract_strided_slice %32 {offsets = [7, 0], sizes = [1, 512], strides = [1, 1]} : vector<8x512xf32> to vector<1x512xf32>
    %454 = arith.truncf %418 : vector<1x128xf32> to vector<1x128xbf16>
    %cst_71 = arith.constant dense<0.000000e+00> : vector<1x512xf32>
    %455 = tpu.matmul %454, %33, %cst_71 {dimension_numbers = #tpu.dot_dimension_numbers<[1], [0], [0], [1], [0, 0, 1, 1], [], []>} : vector<1x128xbf16>, vector<128x512xbf16>, vector<1x512xf32> -> vector<1x512xf32>
    %456 = arith.addf %453, %455 : vector<1x512xf32>
    %457 = vector.extract_strided_slice %456 {offsets = [0, 0], sizes = [1, 256], strides = [1, 1]} : vector<1x512xf32> to vector<1x256xf32>
    %458 = arith.negf %457 : vector<1x256xf32>
    %459 = math.exp %458 : vector<1x256xf32>
    %cst_72 = arith.constant 1.000000e+00 : f32
    %460 = vector.broadcast %cst_72 : f32 to vector<1x256xf32>
    %461 = arith.addf %460, %459 : vector<1x256xf32>
    %462 = arith.divf %460, %461 : vector<1x256xf32>
    %463 = vector.extract_strided_slice %456 {offsets = [0, 256], sizes = [1, 128], strides = [1, 1]} : vector<1x512xf32> to vector<1x128xf32>
    %464 = math.tanh %463 : vector<1x128xf32>
    %465 = vector.extract_strided_slice %456 {offsets = [0, 384], sizes = [1, 128], strides = [1, 1]} : vector<1x512xf32> to vector<1x128xf32>
    %466 = arith.negf %465 : vector<1x128xf32>
    %467 = math.exp %466 : vector<1x128xf32>
    %cst_73 = arith.constant 1.000000e+00 : f32
    %468 = vector.broadcast %cst_73 : f32 to vector<1x128xf32>
    %469 = arith.addf %468, %467 : vector<1x128xf32>
    %470 = arith.divf %468, %469 : vector<1x128xf32>
    %471 = vector.extract_strided_slice %462 {offsets = [0, 128], sizes = [1, 128], strides = [1, 1]} : vector<1x256xf32> to vector<1x128xf32>
    %472 = arith.mulf %471, %416 : vector<1x128xf32>
    %473 = vector.extract_strided_slice %462 {offsets = [0, 0], sizes = [1, 128], strides = [1, 1]} : vector<1x256xf32> to vector<1x128xf32>
    %474 = arith.mulf %473, %464 : vector<1x128xf32>
    %475 = arith.addf %472, %474 : vector<1x128xf32>
    %476 = math.tanh %475 : vector<1x128xf32>
    %477 = arith.mulf %470, %476 : vector<1x128xf32>
    %478 = arith.truncf %477 : vector<1x128xf32> to vector<1x128xbf16>
    %cst_74 = arith.constant dense<0.000000e+00> : vector<1x512xf32>
    %479 = tpu.matmul %478, %34, %cst_74 {dimension_numbers = #tpu.dot_dimension_numbers<[1], [0], [0], [1], [0, 0, 1, 1], [], []>} : vector<1x128xbf16>, vector<128x512xbf16>, vector<1x512xf32> -> vector<1x512xf32>
    %480 = arith.addf %479, %36 : vector<1x512xf32>
    %481 = arith.truncf %445 : vector<1x128xf32> to vector<1x128xbf16>
    %cst_75 = arith.constant dense<0.000000e+00> : vector<1x512xf32>
    %482 = tpu.matmul %481, %35, %cst_75 {dimension_numbers = #tpu.dot_dimension_numbers<[1], [0], [0], [1], [0, 0, 1, 1], [], []>} : vector<1x128xbf16>, vector<128x512xbf16>, vector<1x512xf32> -> vector<1x512xf32>
    %483 = arith.addf %480, %482 : vector<1x512xf32>
    %484 = vector.extract_strided_slice %483 {offsets = [0, 0], sizes = [1, 256], strides = [1, 1]} : vector<1x512xf32> to vector<1x256xf32>
    %485 = arith.negf %484 : vector<1x256xf32>
    %486 = math.exp %485 : vector<1x256xf32>
    %cst_76 = arith.constant 1.000000e+00 : f32
    %487 = vector.broadcast %cst_76 : f32 to vector<1x256xf32>
    %488 = arith.addf %487, %486 : vector<1x256xf32>
    %489 = arith.divf %487, %488 : vector<1x256xf32>
    %490 = vector.extract_strided_slice %483 {offsets = [0, 256], sizes = [1, 128], strides = [1, 1]} : vector<1x512xf32> to vector<1x128xf32>
    %491 = math.tanh %490 : vector<1x128xf32>
    %492 = vector.extract_strided_slice %483 {offsets = [0, 384], sizes = [1, 128], strides = [1, 1]} : vector<1x512xf32> to vector<1x128xf32>
    %493 = arith.negf %492 : vector<1x128xf32>
    %494 = math.exp %493 : vector<1x128xf32>
    %cst_77 = arith.constant 1.000000e+00 : f32
    %495 = vector.broadcast %cst_77 : f32 to vector<1x128xf32>
    %496 = arith.addf %495, %494 : vector<1x128xf32>
    %497 = arith.divf %495, %496 : vector<1x128xf32>
    %498 = vector.extract_strided_slice %489 {offsets = [0, 128], sizes = [1, 128], strides = [1, 1]} : vector<1x256xf32> to vector<1x128xf32>
    %499 = arith.mulf %498, %443 : vector<1x128xf32>
    %500 = vector.extract_strided_slice %489 {offsets = [0, 0], sizes = [1, 128], strides = [1, 1]} : vector<1x256xf32> to vector<1x128xf32>
    %501 = arith.mulf %500, %491 : vector<1x128xf32>
    %502 = arith.addf %499, %501 : vector<1x128xf32>
    %503 = math.tanh %502 : vector<1x128xf32>
    %504 = arith.mulf %497, %503 : vector<1x128xf32>
    %c7_i32 = arith.constant 7 : i32
    %505 = vector.broadcast %c7_i32 : i32 to vector<8x1xi32>
    %506 = arith.cmpi eq, %39, %505 : vector<8x1xi32>
    %507 = vector.shape_cast %506 : vector<8x1xi1> to vector<8x1xi1>
    %508 = vector.broadcast %507 : vector<8x1xi1> to vector<8x128xi1>
    %509 = vector.shape_cast %504 : vector<1x128xf32> to vector<1x128xf32>
    %510 = vector.broadcast %509 : vector<1x128xf32> to vector<8x128xf32>
    %511 = arith.select %508, %510, %452 : vector<8x128xi1>, vector<8x128xf32>
    %512 = arith.truncf %511 : vector<8x128xf32> to vector<8x128xbf16>
    %c0_78 = arith.constant 0 : index
    %c0_79 = arith.constant 0 : index
    %513 = vector.load %arg9[%c0_78, %c0_79] : memref<128x128xbf16, #tpu.memory_space<vmem>>, vector<128x128xbf16>
    %cst_80 = arith.constant dense<0.000000e+00> : vector<8x128xf32>
    %514 = tpu.matmul %512, %513, %cst_80 {dimension_numbers = #tpu.dot_dimension_numbers<[1], [0], [0], [1], [0, 0, 1, 1], [], []>} : vector<8x128xbf16>, vector<128x128xbf16>, vector<8x128xf32> -> vector<8x128xf32>
    %c0_81 = arith.constant 0 : index
    %c0_82 = arith.constant 0 : index
    %515 = vector.load %arg10[%c0_81, %c0_82] : memref<1x128xf32, #tpu.memory_space<vmem>>, vector<1x128xf32>
    %516 = vector.broadcast %515 : vector<1x128xf32> to vector<8x128xf32>
    %517 = arith.addf %514, %516 : vector<8x128xf32>
    %c0_83 = arith.constant 0 : index
    %c0_84 = arith.constant 0 : index
    %518 = vector.load %arg11[%c0_83, %c0_84] : memref<8x128xf32, #tpu.memory_space<vmem>>, vector<8x128xf32>
    tpu.vector_store %arg11[%c0_83, %c0_84], %517 {strides = array<i32>} : memref<8x128xf32, #tpu.memory_space<vmem>>, vector<8x128xf32>,
    return
  }
}

</mosaic_0001>

<bundles_post_ra>
// kernel: tpu_custom_call.1
= control target key start
LH: loop header
LB: loop body
LE: loop exit
PB: predicated region body
PF: predicated region fallthrough
CT: control target
= control target key end

     0   :  { %16 = vsyncpa [#allocation3], 0  ;;  %s7044_s0 = inlined_call_operand.vmem [shape: s32[128,1], index: 0, kind: input, shape index: {}]   ;;  %s7045_s1 = inlined_call_operand.vmem [shape: s32[8,1], index: 1, kind: input, shape index: {}]   ;;  %s7046_s2 = inlined_call_operand.vmem [shape: s32[8,1], index: 2, kind: input, shape index: {}]   ;;  %s7047_s3 = inlined_call_operand.hbm [shape: bf16[128,512], index: 3, kind: input, shape index: {}]   ;;  %s7048_s4 = inlined_call_operand.hbm [shape: bf16[128,512], index: 4, kind: input, shape index: {}]   ;;  %s7049_s5 = inlined_call_operand.vmem [shape: f32[1,512], index: 5, kind: input, shape index: {}]   ;;  %s7050_s6 = inlined_call_operand.hbm [shape: bf16[128,512], index: 6, kind: input, shape index: {}]   ;;  %s7051_s7 = inlined_call_operand.hbm [shape: bf16[128,512], index: 7, kind: input, shape index: {}]   ;;  %s7052_s8 = inlined_call_operand.vmem [shape: f32[1,512], index: 8, kind: input, shape index: {}]   ;;  %s7053_s9 = inlined_call_operand.vmem [shape: bf16[128,128], index: 9, kind: input, shape index: {}]   ;;  %s7054_s10 = inlined_call_operand.vmem [shape: f32[1,128], index: 10, kind: input, shape index: {}]   ;;  %s7055_s11 = inlined_call_operand.hbm [shape: f32[8,128], index: 11, kind: output, shape index: {}]  }
   0x1   :  { %17 = vsyncpa [#allocation6], 0 }
   0x2   :  { %18 = vsyncpa [#allocation9], 0 }
   0x3   :  { %19 = vsyncpa [#allocation4], 0  ;;  %s5100_s17 = smov [#allocation5]   ;;  %s5101_s19 = smov [#allocation2]  }
   0x4   :  { %s43_s18 = sshll.u32 %s5100_s17, 4  ;;  %s31_s20 = sshll.u32 %s5101_s19, 4  ;;  %s44_s18 = int_to_ptr.vmem [resolvable:$true] %s43_s18  ;;  %s5171_s20 = int_to_ptr.vmem [resolvable:$true] %s31_s20 }
   0x5   :  { %s4982_s23 = scalar_lea.hbm %s7048_s4, 4096 }
   0x6   :  { %p4983_p0 = scmp.ne.s32.totalorder %s7048_s4, %s4982_s23  ;;  %p4986_p1 = scmp.lt.u32.totalorder %s4982_s23, %s7048_s4 }
   0x8   :  { %p4988_p2 = pnand %p4986_p1, %p4983_p0 }
   0xa   :  { %4991 = shalt.err (!%p4988_p2)
}
   0xb   :  { %s4992_s28 = scalar_lea.vmem %s44_s18, 4096  ;;  %p4997_p4 = scmp.lt.s32.totalorder %s44_s18, %s44_s18 }
   0xc   :  { %p4993_p3 = scmp.ne.s32.totalorder %s44_s18, %s4992_s28  ;;  %p4998_p5 = scmp.lt.s32.totalorder %s4992_s28, %s4992_s28 }
   0xe   :  { %p4999_p6 = por %p4998_p5, %p4997_p4 }
  0x10   :  { %p5000_p7 = pnand %p4999_p6, %p4993_p3 }
  0x12   :  { %5003 = shalt.err (!%p5000_p7)
}
  0x13   :  { %s5102_s29 = smov 256   ;;  %s5103_s30 = smov 16  }
  0x14   :  { %49 = dma.hbm_to_vmem [thread:$0]  %s7048_s4, 4096, %s44_s18, [#allocation6], %s5102_s29, %s5102_s29, %s5103_s30  }
  0x15   :  { %s5004_s16 = scalar_lea.hbm %s7047_s3, 4096 }
  0x16   :  { %p5005_p8 = scmp.ne.s32.totalorder %s7047_s3, %s5004_s16  ;;  %p5008_p9 = scmp.lt.u32.totalorder %s5004_s16, %s7047_s3 }
  0x18   :  { %p5010_p10 = pnand %p5008_p9, %p5005_p8 }
  0x1a   :  { %5013 = shalt.err (!%p5010_p10)
}
  0x1b   :  { %s5014_s23 = scalar_lea.vmem %s5171_s20, 4096  ;;  %p5019_p12 = scmp.lt.s32.totalorder %s5171_s20, %s5171_s20 }
  0x1c   :  { %p5015_p11 = scmp.ne.s32.totalorder %s5171_s20, %s5014_s23  ;;  %p5020_p13 = scmp.lt.s32.totalorder %s5014_s23, %s5014_s23 }
  0x1e   :  { %p5021_p0 = por %p5020_p13, %p5019_p12 }
  0x20   :  { %p5022_p1 = pnand %p5021_p0, %p5015_p11 }
  0x22   :  { %5025 = shalt.err (!%p5022_p1)
}
  0x23   :  { %37 = dma.hbm_to_vmem [thread:$0]  %s7047_s3, 4096, %s5171_s20, [#allocation3], %s5102_s29, %s5102_s29, %s5103_s30  }
  0x24   :  { %s5104_s24 = smov [#allocation7]   ;;  %s5105_s26 = smov [#allocation8]  }
  0x25   :  { %s57_s25 = sshll.u32 %s5104_s24, 4  ;;  %s69_s27 = sshll.u32 %s5105_s26, 4  ;;  %s58_s25 = int_to_ptr.vmem [resolvable:$true] %s57_s25  ;;  %s5208_s27 = int_to_ptr.vmem [resolvable:$true] %s69_s27 }
  0x26   :  { %s5026_s13 = scalar_lea.hbm %s7050_s6, 4096 }
  0x27   :  { %p5027_p2 = scmp.ne.s32.totalorder %s7050_s6, %s5026_s13  ;;  %p5030_p3 = scmp.lt.u32.totalorder %s5026_s13, %s7050_s6 }
  0x29   :  { %p5032_p4 = pnand %p5030_p3, %p5027_p2 }
  0x2b   :  { %5035 = shalt.err (!%p5032_p4)
}
  0x2c   :  { %s5036_s3 = scalar_lea.vmem %s58_s25, 4096  ;;  %p5041_p6 = scmp.lt.s32.totalorder %s58_s25, %s58_s25 }
  0x2d   :  { %p5037_p5 = scmp.ne.s32.totalorder %s58_s25, %s5036_s3  ;;  %p5042_p7 = scmp.lt.s32.totalorder %s5036_s3, %s5036_s3 }
  0x2f   :  { %p5043_p8 = por %p5042_p7, %p5041_p6 }
  0x31   :  { %p5044_p9 = pnand %p5043_p8, %p5037_p5 }
  0x33   :  { %5047 = shalt.err (!%p5044_p9)
}
  0x34   :  { %63 = dma.hbm_to_vmem [thread:$0]  %s7050_s6, 4096, %s58_s25, [#allocation6], %s5102_s29, %s5102_s29, %s5103_s30  }
  0x35   :  { %s5048_s23 = scalar_lea.hbm %s7051_s7, 4096 }
  0x36   :  { %p5049_p10 = scmp.ne.s32.totalorder %s7051_s7, %s5048_s23  ;;  %p5052_p11 = scmp.lt.u32.totalorder %s5048_s23, %s7051_s7 }
  0x38   :  { %p5054_p12 = pnand %p5052_p11, %p5049_p10 }
  0x3a   :  { %5057 = shalt.err (!%p5054_p12)
}
  0x3b   :  { %s5058_s28 = scalar_lea.vmem %s5208_s27, 4096  ;;  %p5063_p0 = scmp.lt.s32.totalorder %s5208_s27, %s5208_s27 }
  0x3c   :  { %p5059_p13 = scmp.ne.s32.totalorder %s5208_s27, %s5058_s28  ;;  %p5064_p1 = scmp.lt.s32.totalorder %s5058_s28, %s5058_s28 }
  0x3e   :  { %p5065_p2 = por %p5064_p1, %p5063_p0 }
  0x40   :  { %p5066_p3 = pnand %p5065_p2, %p5059_p13 }
  0x42   :  { %5069 = shalt.err (!%p5066_p3)
}
  0x43   :  { %75 = dma.hbm_to_vmem [thread:$0]  %s7051_s7, 4096, %s5208_s27, [#allocation9], %s5102_s29, %s5102_s29, %s5103_s30  }
  0x44   :  { %5092 = dma.done.wait [#allocation3], 4096  }
  0x45   :  { %5093 = vsyncadd [#allocation3], 4294963200 }
  0x46   :  { %5094 = dma.done.wait [#allocation6], 8192  }
  0x47   :  { %5095 = vsyncadd [#allocation6], 4294959104 }
  0x48   :  { %5096 = dma.done.wait [#allocation9], 4096  }
  0x49   :  { %5097 = vsyncadd [#allocation9], 4294963200  ;;  %v7058_v0 = vmov 0   ;;  %v119_v1 = vld [vmem:[%s7044_s0 + $0x10] sm:$0xff]  ;;  %v117_v2 = vld [vmem:[%s7044_s0] sm:$0xff]  ;;  %v7056_v9 = vmov 0.0   ;;  %v7060_v40 = vlaneseq }
  0x4a   :  { %4331 = vset.pattern.permute.xlu1 %v7058_v0  ;;  %4330 = vset.pattern.permute.xlu0 %v7058_v0  ;;  %v120_v3 = vld [vmem:[%s7044_s0 + $0x18] sm:$0xff]  ;;  %v118_v4 = vld [vmem:[%s7044_s0 + $0x8] sm:$0xff]  ;;  %v121_v6 = vld [vmem:[%s7044_s0 + $0x20] sm:$0xff]  ;;  %vm5108_vm1 = vmmov 0   ;;  %v5109_v46 = vmov 1.0|1.0  }
  0x4b   :  { %502 = vmatprep.mubr.bf16.mxu1 %v7058_v0  ;;  %140 = vperm.xlu1 %4331, %v119_v1   ;;  %v122_v5 = vld [vmem:[%s7044_s0 + $0x28] sm:$0xff]  ;;  %v98_v7 = vld [vmem:[%s7046_s2] sm:$0xff]  ;;  %v124_v10 = vld [vmem:[%s7044_s0 + $0x38] sm:$0xff]  ;;  %v96_v43 = vand.u32 127, %v7060_v40  ;;  %s5110_s7 = smov [#allocation10]  }
  0x4c   :  { %134 = vperm.xlu0 %4330, %v117_v2   ;;  %v97_v8 = vld [vmem:[%s7045_s1] sm:$0xff]  ;;  %4183 = vmatprep.subr.bf16.mxu0 %v7056_v9  ;;  %v123_v11 = vld [vmem:[%s7044_s0 + $0x30] sm:$0xff]  ;;  %v126_v13 = vld [vmem:[%s7044_s0 + $0x48] sm:$0xff]  ;;  %s3934_s29 = sshll.u32 %s5110_s7, 4  ;;  %s3935_s29 = int_to_ptr.vmem [resolvable:$true] %s3934_s29 }
  0x4d   :  { %v111_v12 = vsub.s32 %v98_v7, %v97_v8  ;;  %v125_v14 = vld [vmem:[%s7044_s0 + $0x40] sm:$0xff]  ;;  %v128_v15 = vld [vmem:[%s7044_s0 + $0x58] sm:$0xff]  ;;  %v127_v16 = vld [vmem:[%s7044_s0 + $0x50] sm:$0xff]  ;;  %4199 = vmatprep.mubr.msk.bf16.mxu0 %vm5108_vm1, %v7056_v9  ;;  %s5070_s30 = scalar_lea.vmem %s3935_s29, 128  ;;  %p5075_p5 = scmp.lt.s32.totalorder %s3935_s29, %s3935_s29 }
  0x4e   :  { %v130_v18 = vld [vmem:[%s7044_s0 + $0x68] sm:$0xff]  ;;  %v129_v19 = vld [vmem:[%s7044_s0 + $0x60] sm:$0xff]  ;;  %v132_v21 = vld [vmem:[%s7044_s0 + $0x78] sm:$0xff]  ;;  %p5071_p4 = scmp.ne.s32.totalorder %s3935_s29, %s5070_s30  ;;  %p5076_p6 = scmp.lt.s32.totalorder %s5070_s30, %s5070_s30 }
  0x4f   :  { %143 = vperm.xlu1 %4331, %v120_v3   ;;  %vm112_vm0 = vcmp.gt.s32.totalorder %v111_v12, 1  ;;  %v131_v22 = vld [vmem:[%s7044_s0 + $0x70] sm:$0xff]  ;;  %v4336_v61 = vld [vmem:[#allocation2 + $0xc] ss:$16 sps:$4 sm:$0xff]   ;;  %v4334_v62 = vld [vmem:[#allocation2 + $0x8] ss:$16 sps:$4 sm:$0xff]  }
  0x50   :  { %137 = vperm.xlu0 %4330, %v118_v4   ;;  %v113_v17 = vsel %vm112_vm0, %v111_v12, 1  ;;  %v4332_v24 = vld [vmem:[#allocation2 + $0x4] ss:$16 sps:$4 sm:$0xff]   ;;  %v4337_v25 = vld [vmem:[#allocation2] ss:$16 sps:$4 sm:$0xff]   ;;  %p5077_p7 = por %p5076_p6, %p5075_p5 }
  0x51   :  { %v114_v20 = vcvt.s32.f32 %v113_v17  ;;  %v4338_v26 = vld [vmem:[#allocation2 + $0x24] ss:$16 sps:$4 sm:$0xff]   ;;  %470 = vmatprep.subr.bf16.mxu1 %v4332_v24  ;;  %v4343_v27 = vld [vmem:[#allocation2 + $0x20] ss:$16 sps:$4 sm:$0xff]   ;;  %v4342_v63 = vld [vmem:[#allocation2 + $0x2c] ss:$16 sps:$4 sm:$0xff]  }
  0x52   :  { %471 = vmatpush1.bf16.msra.mxu1 %v4337_v25  ;;  %v4344_v28 = vld [vmem:[#allocation2 + $0x44] ss:$16 sps:$4 sm:$0xff]   ;;  %v4349_v29 = vld [vmem:[#allocation2 + $0x40] ss:$16 sps:$4 sm:$0xff]   ;;  %v4340_v1 = vld [vmem:[#allocation2 + $0x28] ss:$16 sps:$4 sm:$0xff]   ;;  %p5078_p8 = pnand %p5077_p7, %p5071_p4 }
  0x53   :  { %149 = vperm.xlu1 %4331, %v122_v5   ;;  %4532 = vrcp.f32 %v114_v20  ;;  %472 = vmatprep.subr.bf16.mxu1 %v4338_v26  ;;  %v4350_v30 = vld [vmem:[#allocation2 + $0x64] ss:$16 sps:$4 sm:$0xff]   ;;  %v4355_v31 = vld [vmem:[#allocation2 + $0x60] ss:$16 sps:$4 sm:$0xff]   ;;  %v4348_v2 = vld [vmem:[#allocation2 + $0x4c] ss:$16 sps:$4 sm:$0xff]  }
  0x54   :  { %146 = vperm.xlu0 %4330, %v121_v6   ;;  %v4356_v32 = vld [vmem:[#allocation2 + $0x84] ss:$16 sps:$4 sm:$0xff]   ;;  %v4361_v33 = vld [vmem:[#allocation2 + $0x80] ss:$16 sps:$4 sm:$0xff]   ;;  %v4346_v3 = vld [vmem:[#allocation2 + $0x48] ss:$16 sps:$4 sm:$0xff]  }
  0x55   :  { %v4362_v34 = vld [vmem:[#allocation2 + $0xa4] ss:$16 sps:$4 sm:$0xff]   ;;  %v4367_v35 = vld [vmem:[#allocation2 + $0xa0] ss:$16 sps:$4 sm:$0xff]   ;;  %v4354_v4 = vld [vmem:[#allocation2 + $0x6c] ss:$16 sps:$4 sm:$0xff]  }
  0x56   :  { %473 = vmatpush1.bf16.msra.mxu1 %v4343_v27  ;;  %v4368_v36 = vld [vmem:[#allocation2 + $0xc4] ss:$16 sps:$4 sm:$0xff]   ;;  %v4373_v37 = vld [vmem:[#allocation2 + $0xc0] ss:$16 sps:$4 sm:$0xff]   ;;  %v4352_v5 = vld [vmem:[#allocation2 + $0x68] ss:$16 sps:$4 sm:$0xff]  }
  0x57   :  { %155 = vperm.xlu1 %4331, %v124_v10   ;;  %474 = vmatprep.subr.bf16.mxu1 %v4344_v28  ;;  %v4374_v38 = vld [vmem:[#allocation2 + $0xe4] ss:$16 sps:$4 sm:$0xff]   ;;  %v4379_v39 = vld [vmem:[#allocation2 + $0xe0] ss:$16 sps:$4 sm:$0xff]   ;;  %v4360_v6 = vld [vmem:[#allocation2 + $0x8c] ss:$16 sps:$4 sm:$0xff]  }
  0x58   :  { %152 = vperm.xlu0 %4330, %v123_v11   ;;  %v4364_v10 = vld [vmem:[#allocation2 + $0xa8] ss:$16 sps:$4 sm:$0xff]   ;;  %v4372_v11 = vld [vmem:[#allocation2 + $0xcc] ss:$16 sps:$4 sm:$0xff]   ;;  %v5330_v26 = vld [vmem:[#allocation5 + $0x20] ss:$16 sps:$4 sm:$0xff]  }
  0x59   :  { %v4370_v12 = vld [vmem:[#allocation2 + $0xc8] ss:$16 sps:$4 sm:$0xff]   ;;  %v5336_v28 = vld [vmem:[#allocation5 + $0x44] ss:$16 sps:$4 sm:$0xff]  }
  0x5a   :  { %475 = vmatpush1.bf16.msra.mxu1 %v4349_v29  ;;  %v5332_v27 = vld [vmem:[#allocation5 + $0x28] ss:$16 sps:$4 sm:$0xff]   ;;  %v5338_v29 = vld [vmem:[#allocation5 + $0x4c] ss:$16 sps:$4 sm:$0xff]  }
  0x5b   :  { %161 = vperm.xlu1 %4331, %v126_v13   ;;  %476 = vmatprep.subr.bf16.mxu1 %v4350_v30  ;;  %v4378_v13 = vld [vmem:[#allocation2 + $0xec] ss:$16 sps:$4 sm:$0xff]   ;;  %v5344_v30 = vld [vmem:[#allocation5 + $0x40] ss:$16 sps:$4 sm:$0xff]   ;;  %v5506_v40 = vld [vmem:[#allocation7 + $0xe8] ss:$16 sps:$4 sm:$0xff]  }
  0x5c   :  { %158 = vperm.xlu0 %4330, %v125_v14   ;;  %v4376_v14 = vld [vmem:[#allocation2 + $0xe8] ss:$16 sps:$4 sm:$0xff]   ;;  %7381 = vst [vmem:[#allocation60_spill] sm:$0xff] %v5506_v40 }
  0x5d   :  { %v4533_v23 = vpop.eup %4532 }
  0x5e   :  { %477 = vmatpush1.bf16.msra.mxu1 %v4355_v31  ;;  %v5346_v31 = vld [vmem:[#allocation5 + $0x48] ss:$16 sps:$4 sm:$0xff]  }
  0x5f   :  { %167 = vperm.xlu1 %4331, %v128_v15   ;;  %478 = vmatprep.subr.bf16.mxu1 %v4356_v32  ;;  %v5314_v15 = vld [vmem:[#allocation5 + $0x4] ss:$16 sps:$4 sm:$0xff]  }
  0x60   :  { %164 = vperm.xlu0 %4330, %v127_v16   ;;  %v5316_v16 = vld [vmem:[#allocation5 + $0xc] ss:$16 sps:$4 sm:$0xff]   ;;  %v5350_v32 = vld [vmem:[#allocation5 + $0x64] ss:$16 sps:$4 sm:$0xff]  }
  0x62   :  { %479 = vmatpush1.bf16.msra.mxu1 %v4361_v33  ;;  %v5352_v33 = vld [vmem:[#allocation5 + $0x6c] ss:$16 sps:$4 sm:$0xff]  }
  0x63   :  { %173 = vperm.xlu1 %4331, %v130_v18   ;;  %480 = vmatprep.subr.bf16.mxu1 %v4362_v34  ;;  %v5320_v18 = vld [vmem:[#allocation5] ss:$16 sps:$4 sm:$0xff]  }
  0x64   :  { %170 = vperm.xlu0 %4330, %v129_v19   ;;  %v5322_v19 = vld [vmem:[#allocation5 + $0x8] ss:$16 sps:$4 sm:$0xff]   ;;  %v5356_v34 = vld [vmem:[#allocation5 + $0x60] ss:$16 sps:$4 sm:$0xff]  }
  0x66   :  { %481 = vmatpush1.bf16.msra.mxu1 %v4367_v35  ;;  %v5358_v35 = vld [vmem:[#allocation5 + $0x68] ss:$16 sps:$4 sm:$0xff]  }
  0x67   :  { %179 = vperm.xlu1 %4331, %v132_v21   ;;  %482 = vmatprep.subr.bf16.mxu1 %v4368_v36  ;;  %v5362_v36 = vld [vmem:[#allocation5 + $0x84] ss:$16 sps:$4 sm:$0xff]  }
  0x68   :  { %176 = vperm.xlu0 %4330, %v131_v22   ;;  %v5324_v22 = vld [vmem:[#allocation5 + $0x24] ss:$16 sps:$4 sm:$0xff]  }
  0x6a   :  { %483 = vmatpush1.bf16.msra.mxu1 %v4373_v37  ;;  %v5364_v37 = vld [vmem:[#allocation5 + $0x8c] ss:$16 sps:$4 sm:$0xff]  }
  0x6b   :  { %104 = vperm.xlu1 %4331, %v98_v7   ;;  %484 = vmatprep.subr.bf16.mxu1 %v4374_v38  ;;  %v4358_v7 = vld [vmem:[#allocation2 + $0x88] ss:$16 sps:$4 sm:$0xff]   ;;  %v5368_v38 = vld [vmem:[#allocation5 + $0x80] ss:$16 sps:$4 sm:$0xff]  }
  0x6c   :  { %100 = vperm.xlu0 %4330, %v97_v8   ;;  %v4366_v8 = vld [vmem:[#allocation2 + $0xac] ss:$16 sps:$4 sm:$0xff]   ;;  %7336 = vst [vmem:[#allocation15_spill] sm:$0xff] %v5368_v38 }
  0x6e   :  { %485 = vmatpush1.bf16.msra.mxu1 %v4379_v39  ;;  %v5370_v39 = vld [vmem:[#allocation5 + $0x88] ss:$16 sps:$4 sm:$0xff]  }
  0x6f   :  { %846 = vmatprep.subr.bf16.mxu1 %v5314_v15  ;;  %7337 = vst [vmem:[#allocation16_spill] sm:$0xff] %v5370_v39 }
  0x70   :  { %554 = vperm.xlu0 %4330, %v4533_v23   ;;  %v5326_v23 = vld [vmem:[#allocation5 + $0x2c] ss:$16 sps:$4 sm:$0xff]  }
  0xca   :  { %v141_v41 = vpop.permute.xlu1 %140 }
  0xcb   :  { %v135_v42 = vpop.permute.xlu0 %134  ;;  %vm183_vm6 = vcmp.eq.s32.totalorder %v96_v43, %v141_v41  ;;  %v5374_v41 = vld [vmem:[#allocation5 + $0xa4] ss:$16 sps:$4 sm:$0xff]  }
  0xcc   :  { %vm181_vm3 = vcmp.eq.s32.totalorder %v96_v43, %v135_v42  ;;  %7338 = vst [vmem:[#allocation17_spill] sm:$0xff] %v5374_v41  ;;  %v5376_v42 = vld [vmem:[#allocation5 + $0xac] ss:$16 sps:$4 sm:$0xff]  }
  0xcd   :  { %7339 = vst [vmem:[#allocation18_spill] sm:$0xff] %v5376_v42 }
  0xce   :  { %v144_v44 = vpop.permute.xlu1 %143 }
  0xcf   :  { %v138_v45 = vpop.permute.xlu0 %137  ;;  %vm184_vm5 = vcmp.eq.s32.totalorder %v96_v43, %v144_v44  ;;  %v5382_v44 = vld [vmem:[#allocation5 + $0xa8] ss:$16 sps:$4 sm:$0xff]  }
  0xd0   :  { %vm182_vm2 = vcmp.eq.s32.totalorder %v96_v43, %v138_v45  ;;  %vm3964_vm7 = vmpackc.low %vm184_vm5, %vm183_vm6  ;;  %7341 = vst [vmem:[#allocation20_spill] sm:$0xff] %v5382_v44  ;;  %v5386_v45 = vld [vmem:[#allocation5 + $0xc4] ss:$16 sps:$4 sm:$0xff]  }
  0xd1   :  { %vm3962_vm4 = vmpackc.low %vm182_vm2, %vm181_vm3  ;;  %7342 = vst [vmem:[#allocation21_spill] sm:$0xff] %v5386_v45 }
  0xd2   :  { %4184 = vmatpush3.bf16.msk.msra.mxu0 %vm3962_vm4, %v5109_v46  ;;  %v150_v47 = vpop.permute.xlu1 %149 }
  0xd3   :  { %v147_v48 = vpop.permute.xlu0 %146  ;;  %4185 = vmatprep.subr.bf16.mxu0 %v7056_v9  ;;  %vm186_vm8 = vcmp.eq.s32.totalorder %v96_v43, %v150_v47  ;;  %v5392_v47 = vld [vmem:[#allocation5 + $0xc0] ss:$16 sps:$4 sm:$0xff]  }
  0xd4   :  { %vm185_vm9 = vcmp.eq.s32.totalorder %v96_v43, %v147_v48  ;;  %7344 = vst [vmem:[#allocation23_spill] sm:$0xff] %v5392_v47  ;;  %v5394_v48 = vld [vmem:[#allocation5 + $0xc8] ss:$16 sps:$4 sm:$0xff]  }
  0xd5   :  { %vm3966_vm10 = vmpackc.low %vm186_vm8, %vm185_vm9  ;;  %7345 = vst [vmem:[#allocation24_spill] sm:$0xff] %v5394_v48 }
  0xd6   :  { %4186 = vmatpush3.bf16.msk.msra.mxu0 %vm3964_vm7, %v5109_v46  ;;  %v156_v49 = vpop.permute.xlu1 %155 }
  0xd7   :  { %v153_v50 = vpop.permute.xlu0 %152  ;;  %4187 = vmatprep.subr.bf16.mxu0 %v7056_v9  ;;  %vm188_vm11 = vcmp.eq.s32.totalorder %v96_v43, %v156_v49  ;;  %v5398_v49 = vld [vmem:[#allocation5 + $0xe4] ss:$16 sps:$4 sm:$0xff]  }
  0xd8   :  { %vm187_vm12 = vcmp.eq.s32.totalorder %v96_v43, %v153_v50  ;;  %7346 = vst [vmem:[#allocation25_spill] sm:$0xff] %v5398_v49  ;;  %v5400_v50 = vld [vmem:[#allocation5 + $0xec] ss:$16 sps:$4 sm:$0xff]  }
  0xd9   :  { %vm3968_vm13 = vmpackc.low %vm188_vm11, %vm187_vm12  ;;  %7347 = vst [vmem:[#allocation26_spill] sm:$0xff] %v5400_v50 }
  0xda   :  { %4188 = vmatpush3.bf16.msk.msra.mxu0 %vm3966_vm10, %v5109_v46  ;;  %v162_v51 = vpop.permute.xlu1 %161 }
  0xdb   :  { %v159_v52 = vpop.permute.xlu0 %158  ;;  %4189 = vmatprep.subr.bf16.mxu0 %v7056_v9  ;;  %vm190_vm14 = vcmp.eq.s32.totalorder %v96_v43, %v162_v51  ;;  %v5404_v51 = vld [vmem:[#allocation5 + $0xe0] ss:$16 sps:$4 sm:$0xff]  }
  0xdc   :  { %vm189_vm15 = vcmp.eq.s32.totalorder %v96_v43, %v159_v52  ;;  %7348 = vst [vmem:[#allocation27_spill] sm:$0xff] %v5404_v51  ;;  %v5406_v52 = vld [vmem:[#allocation5 + $0xe8] ss:$16 sps:$4 sm:$0xff]  }
  0xdd   :  { %vm3970_vm0 = vmpackc.low %vm190_vm14, %vm189_vm15  ;;  %7349 = vst [vmem:[#allocation28_spill] sm:$0xff] %v5406_v52 }
  0xde   :  { %4190 = vmatpush3.bf16.msk.msra.mxu0 %vm3968_vm13, %v5109_v46  ;;  %v168_v53 = vpop.permute.xlu1 %167 }
  0xdf   :  { %v165_v54 = vpop.permute.xlu0 %164  ;;  %4191 = vmatprep.subr.bf16.mxu0 %v7056_v9  ;;  %vm192_vm2 = vcmp.eq.s32.totalorder %v96_v43, %v168_v53  ;;  %v5416_v53 = vld [vmem:[#allocation7 + $0x4] ss:$16 sps:$4 sm:$0xff]  }
  0xe0   :  { %vm191_vm3 = vcmp.eq.s32.totalorder %v96_v43, %v165_v54  ;;  %7350 = vst [vmem:[#allocation29_spill] sm:$0xff] %v5416_v53  ;;  %v5418_v54 = vld [vmem:[#allocation7 + $0xc] ss:$16 sps:$4 sm:$0xff]  }
  0xe1   :  { %vm3972_vm4 = vmpackc.low %vm192_vm2, %vm191_vm3  ;;  %7351 = vst [vmem:[#allocation30_spill] sm:$0xff] %v5418_v54 }
  0xe2   :  { %4192 = vmatpush3.bf16.msk.msra.mxu0 %vm3970_vm0, %v5109_v46  ;;  %v174_v55 = vpop.permute.xlu1 %173 }
  0xe3   :  { %v171_v56 = vpop.permute.xlu0 %170  ;;  %4193 = vmatprep.subr.bf16.mxu0 %v7056_v9  ;;  %vm194_vm5 = vcmp.eq.s32.totalorder %v96_v43, %v174_v55  ;;  %v5420_v55 = vld [vmem:[#allocation7] ss:$16 sps:$4 sm:$0xff]  }
  0xe4   :  { %vm193_vm6 = vcmp.eq.s32.totalorder %v96_v43, %v171_v56  ;;  %7352 = vst [vmem:[#allocation31_spill] sm:$0xff] %v5420_v55  ;;  %v5422_v56 = vld [vmem:[#allocation7 + $0x8] ss:$16 sps:$4 sm:$0xff]  }
  0xe5   :  { %vm3974_vm7 = vmpackc.low %vm194_vm5, %vm193_vm6  ;;  %7353 = vst [vmem:[#allocation32_spill] sm:$0xff] %v5422_v56 }
  0xe6   :  { %4194 = vmatpush3.bf16.msk.msra.mxu0 %vm3972_vm4, %v5109_v46  ;;  %v180_v57 = vpop.permute.xlu1 %179 }
  0xe7   :  { %v177_v58 = vpop.permute.xlu0 %176  ;;  %4195 = vmatprep.subr.bf16.mxu0 %v7056_v9  ;;  %vm196_vm8 = vcmp.eq.s32.totalorder %v96_v43, %v180_v57  ;;  %v5428_v57 = vld [vmem:[#allocation7 + $0x24] ss:$16 sps:$4 sm:$0xff]  }
  0xe8   :  { %vm195_vm9 = vcmp.eq.s32.totalorder %v96_v43, %v177_v58  ;;  %7354 = vst [vmem:[#allocation33_spill] sm:$0xff] %v5428_v57  ;;  %v5430_v58 = vld [vmem:[#allocation7 + $0x2c] ss:$16 sps:$4 sm:$0xff]  }
  0xe9   :  { %vm3976_vm12 = vmpackc.low %vm196_vm8, %vm195_vm9  ;;  %7355 = vst [vmem:[#allocation34_spill] sm:$0xff] %v5430_v58 }
  0xea   :  { %4196 = vmatpush3.bf16.msk.msra.mxu0 %vm3974_vm7, %v5109_v46  ;;  %v105_v59 = vpop.permute.xlu1 %104 }
  0xeb   :  { %v101_v60 = vpop.permute.xlu0 %100  ;;  %vm106_vm10 = vcmp.lt.s32.totalorder %v96_v43, %v105_v59  ;;  %4197 = vmatprep.subr.bf16.mxu0 %v7056_v9  ;;  %v5432_v59 = vld [vmem:[#allocation7 + $0x20] ss:$16 sps:$4 sm:$0xff]   ;;  %v5500_v9 = vld [vmem:[#allocation7 + $0xec] ss:$16 sps:$4 sm:$0xff]  }
  0xec   :  { %vm102_vm11 = vcmp.ge.s32.totalorder %v96_v43, %v101_v60  ;;  %v5380_v43 = vld [vmem:[#allocation5 + $0xa0] ss:$16 sps:$4 sm:$0xff]   ;;  %7356 = vst [vmem:[#allocation35_spill] sm:$0xff] %v5432_v59  ;;  %v5434_v60 = vld [vmem:[#allocation7 + $0x28] ss:$16 sps:$4 sm:$0xff]   ;;  %7379 = vst [vmem:[#allocation58_spill] sm:$0xff] %v5500_v9 }
  0xed   :  { %vm107_vm13 = vmand %vm102_vm11, %vm106_vm10  ;;  %7340 = vst [vmem:[#allocation19_spill] sm:$0xff] %v5380_v43 }
  0xee   :  { %4198 = vmatpush3.bf16.msk.msra.mxu0 %vm3976_vm12, %v5109_v46  ;;  %vm3978_vm14 = vmpackc.low %vm107_vm13, %vm107_vm13  ;;  %7357 = vst [vmem:[#allocation36_spill] sm:$0xff] %v5434_v60 }
  0xef   :  { %511 = vmatprep.subr.bf16.mxu0 %v4336_v61  ;;  %v5440_v61 = vld [vmem:[#allocation7 + $0x44] ss:$16 sps:$4 sm:$0xff]  }
  0xf0   :  { %7358 = vst [vmem:[#allocation37_spill] sm:$0xff] %v5440_v61 }
  0xf1   :  { %4200 = vmatmul.mubr.msk.bf16.vlgmr.msra.gmra.mrb[0].mxu0 %vm3978_vm14, %v5109_v46  ;;  %v5388_v46 = vld [vmem:[#allocation5 + $0xcc] ss:$16 sps:$4 sm:$0xff]  }
  0xf2   :  { %512 = vmatpush1.bf16.msra.mxu0 %v4334_v62  ;;  %543 = vmatprep.mubr.bf16.mxu0 %v7058_v0  ;;  %7343 = vst [vmem:[#allocation22_spill] sm:$0xff] %v5388_v46  ;;  %v5442_v62 = vld [vmem:[#allocation7 + $0x4c] ss:$16 sps:$4 sm:$0xff]  }
  0xf3   :  { %513 = vmatprep.subr.bf16.mxu0 %v4342_v63  ;;  %7359 = vst [vmem:[#allocation38_spill] sm:$0xff] %v5442_v62  ;;  %v5444_v63 = vld [vmem:[#allocation7 + $0x40] ss:$16 sps:$4 sm:$0xff]  }
  0xf4   :  { %7360 = vst [vmem:[#allocation39_spill] sm:$0xff] %v5444_v63 }
  0xf6   :  { %514 = vmatpush1.bf16.msra.mxu0 %v4340_v1  ;;  %v5446_v1 = vld [vmem:[#allocation7 + $0x48] ss:$16 sps:$4 sm:$0xff]  }
  0xf7   :  { %515 = vmatprep.subr.bf16.mxu0 %v4348_v2  ;;  %7361 = vst [vmem:[#allocation40_spill] sm:$0xff] %v5446_v1  ;;  %v5452_v2 = vld [vmem:[#allocation7 + $0x64] ss:$16 sps:$4 sm:$0xff]  }
  0xf8   :  { %7362 = vst [vmem:[#allocation41_spill] sm:$0xff] %v5452_v2 }
  0xfa   :  { %516 = vmatpush1.bf16.msra.mxu0 %v4346_v3  ;;  %v5454_v3 = vld [vmem:[#allocation7 + $0x6c] ss:$16 sps:$4 sm:$0xff]  }
  0xfb   :  { %517 = vmatprep.subr.bf16.mxu0 %v4354_v4  ;;  %7363 = vst [vmem:[#allocation42_spill] sm:$0xff] %v5454_v3  ;;  %v5456_v4 = vld [vmem:[#allocation7 + $0x60] ss:$16 sps:$4 sm:$0xff]  }
  0xfc   :  { %7364 = vst [vmem:[#allocation43_spill] sm:$0xff] %v5456_v4 }
  0xfe   :  { %518 = vmatpush1.bf16.msra.mxu0 %v4352_v5  ;;  %v5458_v5 = vld [vmem:[#allocation7 + $0x68] ss:$16 sps:$4 sm:$0xff]  }
  0xff   :  { %519 = vmatprep.subr.bf16.mxu0 %v4360_v6  ;;  %7365 = vst [vmem:[#allocation44_spill] sm:$0xff] %v5458_v5  ;;  %v5464_v6 = vld [vmem:[#allocation7 + $0x84] ss:$16 sps:$4 sm:$0xff]  }
 0x100   :  { %7366 = vst [vmem:[#allocation45_spill] sm:$0xff] %v5464_v6 }
 0x102   :  { %520 = vmatpush1.bf16.msra.mxu0 %v4358_v7  ;;  %v5466_v7 = vld [vmem:[#allocation7 + $0x8c] ss:$16 sps:$4 sm:$0xff]  }
 0x103   :  { %521 = vmatprep.subr.bf16.mxu0 %v4366_v8  ;;  %7367 = vst [vmem:[#allocation46_spill] sm:$0xff] %v5466_v7  ;;  %v5468_v8 = vld [vmem:[#allocation7 + $0x80] ss:$16 sps:$4 sm:$0xff]  }
 0x104   :  { %7368 = vst [vmem:[#allocation47_spill] sm:$0xff] %v5468_v8 }
 0x106   :  { %522 = vmatpush1.bf16.msra.mxu0 %v4364_v10  ;;  %v5470_v10 = vld [vmem:[#allocation7 + $0x88] ss:$16 sps:$4 sm:$0xff]  }
 0x107   :  { %523 = vmatprep.subr.bf16.mxu0 %v4372_v11  ;;  %7369 = vst [vmem:[#allocation48_spill] sm:$0xff] %v5470_v10  ;;  %v5476_v11 = vld [vmem:[#allocation7 + $0xa4] ss:$16 sps:$4 sm:$0xff]  }
 0x108   :  { %7370 = vst [vmem:[#allocation49_spill] sm:$0xff] %v5476_v11 }
 0x10a   :  { %524 = vmatpush1.bf16.msra.mxu0 %v4370_v12  ;;  %v5478_v12 = vld [vmem:[#allocation7 + $0xac] ss:$16 sps:$4 sm:$0xff]  }
 0x10b   :  { %525 = vmatprep.subr.bf16.mxu0 %v4378_v13  ;;  %7371 = vst [vmem:[#allocation50_spill] sm:$0xff] %v5478_v12  ;;  %v5480_v13 = vld [vmem:[#allocation7 + $0xa0] ss:$16 sps:$4 sm:$0xff]  }
 0x10c   :  { %7372 = vst [vmem:[#allocation51_spill] sm:$0xff] %v5480_v13 }
 0x10e   :  { %526 = vmatpush1.bf16.msra.mxu0 %v4376_v14  ;;  %v5482_v14 = vld [vmem:[#allocation7 + $0xa8] ss:$16 sps:$4 sm:$0xff]  }
 0x10f   :  { %887 = vmatprep.subr.bf16.mxu0 %v5316_v16  ;;  %7373 = vst [vmem:[#allocation52_spill] sm:$0xff] %v5482_v14 }
 0x1c4   :  { %v271_v17 = vpop.f32.mrb[0].mxu0 }
 0x1c5   :  { %v277_v20 = vpack.c.bf16 %v271_v17, %v271_v17  ;;  %v4201_v21 = vpop.f32.mrb[1].mxu0  ;;  %v5484_v17 = vld [vmem:[#allocation7 + $0xc4] ss:$16 sps:$4 sm:$0xff]  }
 0x1c6   :  { %v274_v24 = vpop.f32.mrb[2].mxu0  ;;  %7374 = vst [vmem:[#allocation53_spill] sm:$0xff] %v5484_v17  ;;  %v5492_v21 = vld [vmem:[#allocation7 + $0xc0] ss:$16 sps:$4 sm:$0xff]  }
 0x1c7   :  { %v4202_v25 = vpop.f32.mrb[3].mxu0  ;;  %503 = vmatmul.mubr.bf16.vlgmr.msra.gmra.mrb[0].mxu1 %v277_v20  ;;  %544 = vmatmul.mubr.bf16.vlgmr.msra.gmra.mrb[4].mxu0 %v277_v20  ;;  %v5486_v20 = vld [vmem:[#allocation7 + $0xcc] ss:$16 sps:$4 sm:$0xff]   ;;  %7376 = vst [vmem:[#allocation55_spill] sm:$0xff] %v5492_v21  ;;  %v5494_v24 = vld [vmem:[#allocation7 + $0xc8] ss:$16 sps:$4 sm:$0xff]  }
 0x1c8   :  { %847 = vmatpush1.bf16.msra.mxu1 %v5320_v18  ;;  %888 = vmatpush1.bf16.msra.mxu0 %v5322_v19  ;;  %7375 = vst [vmem:[#allocation54_spill] sm:$0xff] %v5486_v20  ;;  %7377 = vst [vmem:[#allocation56_spill] sm:$0xff] %v5494_v24  ;;  %v5498_v25 = vld [vmem:[#allocation7 + $0xe4] ss:$16 sps:$4 sm:$0xff]  }
 0x1c9   :  { %848 = vmatprep.subr.bf16.mxu1 %v5324_v22  ;;  %889 = vmatprep.subr.bf16.mxu0 %v5326_v23  ;;  %7378 = vst [vmem:[#allocation57_spill] sm:$0xff] %v5498_v25 }
 0x1ca   :  { %878 = vmatprep.mubr.bf16.mxu1 %v7058_v0  ;;  %919 = vmatprep.mubr.bf16.mxu0 %v7058_v0 }
 0x1cc   :  { %849 = vmatpush1.bf16.msra.mxu1 %v5330_v26  ;;  %890 = vmatpush1.bf16.msra.mxu0 %v5332_v27 }
 0x1cd   :  { %850 = vmatprep.subr.bf16.mxu1 %v5336_v28  ;;  %891 = vmatprep.subr.bf16.mxu0 %v5338_v29 }
 0x1d0   :  { %851 = vmatpush1.bf16.msra.mxu1 %v5344_v30  ;;  %892 = vmatpush1.bf16.msra.mxu0 %v5346_v31 }
 0x1d1   :  { %852 = vmatprep.subr.bf16.mxu1 %v5350_v32  ;;  %893 = vmatprep.subr.bf16.mxu0 %v5352_v33 }
 0x1d4   :  { %853 = vmatpush1.bf16.msra.mxu1 %v5356_v34  ;;  %894 = vmatpush1.bf16.msra.mxu0 %v5358_v35 }
 0x1d5   :  { %854 = vmatprep.subr.bf16.mxu1 %v5362_v36  ;;  %895 = vmatprep.subr.bf16.mxu0 %v5364_v37 }
 0x1d8   :  { %855 = vmatpush1.bf16.msra.mxu1 %v5368_v38  ;;  %896 = vmatpush1.bf16.msra.mxu0 %v5370_v39 }
 0x1d9   :  { %856 = vmatprep.subr.bf16.mxu1 %v5374_v41  ;;  %897 = vmatprep.subr.bf16.mxu0 %v5376_v42 }
 0x1dc   :  { %857 = vmatpush1.bf16.msra.mxu1 %v5380_v43  ;;  %898 = vmatpush1.bf16.msra.mxu0 %v5382_v44 }
 0x1dd   :  { %858 = vmatprep.subr.bf16.mxu1 %v5386_v45  ;;  %899 = vmatprep.subr.bf16.mxu0 %v5388_v46 }
 0x1e0   :  { %859 = vmatpush1.bf16.msra.mxu1 %v5392_v47  ;;  %900 = vmatpush1.bf16.msra.mxu0 %v5394_v48 }
 0x1e1   :  { %860 = vmatprep.subr.bf16.mxu1 %v5398_v49  ;;  %901 = vmatprep.subr.bf16.mxu0 %v5400_v50 }
 0x1e4   :  { %861 = vmatpush1.bf16.msra.mxu1 %v5404_v51  ;;  %902 = vmatpush1.bf16.msra.mxu0 %v5406_v52 }
 0x1e5   :  { %1138 = vmatprep.subr.bf16.mxu1 %v5416_v53  ;;  %1179 = vmatprep.subr.bf16.mxu0 %v5418_v54 }
 0x1e7   :  { %879 = vmatmul.mubr.bf16.vlgmr.msra.gmra.mrb[4].mxu1 %v7058_v0  ;;  %920 = vmatmul.mubr.bf16.vlgmr.msra.gmra.mrb[8].mxu0 %v7058_v0 }
 0x1e8   :  { %1170 = vmatprep.mubr.bf16.mxu1 %v7058_v0  ;;  %1211 = vmatprep.mubr.bf16.mxu0 %v7058_v0  ;;  %v5504_v0 = vld [vmem:[#allocation7 + $0xe0] ss:$16 sps:$4 sm:$0xff]  }
 0x1e9   :  { %1139 = vmatpush1.bf16.msra.mxu1 %v5420_v55  ;;  %1180 = vmatpush1.bf16.msra.mxu0 %v5422_v56  ;;  %7380 = vst [vmem:[#allocation59_spill] sm:$0xff] %v5504_v0 }
 0x1ea   :  { %1140 = vmatprep.subr.bf16.mxu1 %v5428_v57  ;;  %1181 = vmatprep.subr.bf16.mxu0 %v5430_v58 }
 0x1ed   :  { %1141 = vmatpush1.bf16.msra.mxu1 %v5432_v59  ;;  %1182 = vmatpush1.bf16.msra.mxu0 %v5434_v60 }
 0x1ee   :  { %1142 = vmatprep.subr.bf16.mxu1 %v5440_v61  ;;  %1183 = vmatprep.subr.bf16.mxu0 %v5442_v62 }
 0x1f1   :  { %1143 = vmatpush1.bf16.msra.mxu1 %v5444_v63  ;;  %1184 = vmatpush1.bf16.msra.mxu0 %v5446_v1 }
 0x1f2   :  { %1144 = vmatprep.subr.bf16.mxu1 %v5452_v2  ;;  %1185 = vmatprep.subr.bf16.mxu0 %v5454_v3 }
 0x1f5   :  { %1145 = vmatpush1.bf16.msra.mxu1 %v5456_v4  ;;  %1186 = vmatpush1.bf16.msra.mxu0 %v5458_v5 }
 0x1f6   :  { %1146 = vmatprep.subr.bf16.mxu1 %v5464_v6  ;;  %1187 = vmatprep.subr.bf16.mxu0 %v5466_v7 }
 0x1f9   :  { %1147 = vmatpush1.bf16.msra.mxu1 %v5468_v8  ;;  %1188 = vmatpush1.bf16.msra.mxu0 %v5470_v10  ;;  %v7384_v10 = vlaneseq }
 0x1fa   :  { %1148 = vmatprep.subr.bf16.mxu1 %v5476_v11  ;;  %1189 = vmatprep.subr.bf16.mxu0 %v5478_v12 }
 0x1fb   :  { %v5519_v8 = vshrl.u32 %v7384_v10, 7 }
 0x1fd   :  { %1149 = vmatpush1.bf16.msra.mxu1 %v5480_v13  ;;  %1190 = vmatpush1.bf16.msra.mxu0 %v5482_v14  ;;  %v5510_v14 = vld [vmem:[#allocation8 + $0x4] ss:$16 sps:$4 sm:$0xff]   ;;  %v5522_v7 = vsub.s32 0, %v5519_v8  ;;  %v7116_v10 = vsub.s32 3, %v5519_v8  ;;  %v7119_v62 = vsub.s32 2, %v5519_v8  ;;  %vm1490_vm15 = vcmp.eq.s32.totalorder %v5519_v8, 0 }
 0x1fe   :  { %1150 = vmatprep.subr.bf16.mxu1 %v5484_v17  ;;  %1191 = vmatprep.subr.bf16.mxu0 %v5486_v20  ;;  %7382 = vst [vmem:[#allocation61_spill] sm:$0xff] %v5510_v14  ;;  %v5512_v17 = vld [vmem:[#allocation8 + $0xc] ss:$16 sps:$4 sm:$0xff]   ;;  %vm1821_vm0 = vcmp.eq.s32.totalorder %v5519_v8, 1  ;;  %vm2151_vm2 = vcmp.eq.s32.totalorder %v5519_v8, 2  ;;  %vm2483_vm3 = vcmp.eq.s32.totalorder %v5519_v8, 3 }
 0x1ff   :  { %7383 = vst [vmem:[#allocation62_spill] sm:$0xff] %v5512_v17  ;;  %7385 = vst [vmem:[#allocation63_spill] sm:$0xff] %v5522_v7  ;;  %vm2813_vm4 = vcmp.eq.s32.totalorder %v5519_v8, 4  ;;  %vm3145_vm5 = vcmp.eq.s32.totalorder %v5519_v8, 5  ;;  %vm3475_vm6 = vcmp.eq.s32.totalorder %v5519_v8, 6 }
 0x201   :  { %1151 = vmatpush1.bf16.msra.mxu1 %v5492_v21  ;;  %1192 = vmatpush1.bf16.msra.mxu0 %v5494_v24 }
 0x202   :  { %1152 = vmatprep.subr.bf16.mxu1 %v5498_v25  ;;  %1193 = vmatprep.subr.bf16.mxu0 %v5500_v9 }
 0x205   :  { %1153 = vmatpush1.bf16.msra.mxu1 %v5504_v0  ;;  %1194 = vmatpush1.bf16.msra.mxu0 %v5506_v40  ;;  %v555_v40 = vpop.permute.xlu0 %554 }
 0x206   :  { %1380 = vmatprep.subr.bf16.mxu1 %v5510_v14  ;;  %1421 = vmatprep.subr.bf16.mxu0 %v5512_v17  ;;  %v561_v14 = vld [vmem:[%s7049_s5] sm:$0xf]  ;;  %v7111_v17 = vsub.s32 1, %v5519_v8 }
 0x207   :  { %v566_v6 = vrot.slane %v561_v14, %v5522_v7 }
 0x29a   :  { %v504_v24 = vpop.f32.mrb[0].mxu1  ;;  %v545_v21 = vpop.f32.mrb[4].mxu0 }
 0x29b   :  { %v506_v20 = vpop.f32.mrb[1].mxu1  ;;  %v547_v13 = vpop.f32.mrb[5].mxu0  ;;  %v557_v0 = vmul.f32 %v555_v40, %v504_v24  ;;  %v578_v24 = vrot.slane %v561_v14, %v7116_v10 }
 0x29c   :  { %v508_v12 = vpop.f32.mrb[2].mxu1  ;;  %v549_v25 = vpop.f32.mrb[6].mxu0  ;;  %v560_v63 = vmul.f32 %v555_v40, %v547_v13  ;;  %v574_v13 = vrot.slane %v561_v14, %v7119_v62  ;;  %v5604_v62 = vld [vmem:[#allocation8 + $0x80] ss:$16 sps:$4 sm:$0xff]  }
 0x29d   :  { %v509_v11 = vpop.f32.mrb[3].mxu1  ;;  %v550_v9 = vpop.f32.mrb[7].mxu0  ;;  %v558_v12 = vmul.f32 %v555_v40, %v506_v20  ;;  %7396 = vst [vmem:[#allocation73_spill] sm:$0xff] %v5604_v62 }
 0x29e   :  { %v570_v9 = vrot.slane %v561_v14, %v7111_v17  ;;  %v5532_v11 = vadd.f32 %v566_v6, %v557_v0  ;;  %v5541_v61 = vadd.f32 %v578_v24, %v560_v63 }
 0x2a0   :  { %7386 = vst [vmem:[#allocation64_spill] sm:$0xff] %v5532_v11  ;;  %v5534_v25 = vadd.f32 %v570_v9, %v558_v12 }
 0x2ba   :  { %v880_v5 = vpop.f32.mrb[4].mxu1  ;;  %v921_v4 = vpop.f32.mrb[8].mxu0 }
 0x2bb   :  { %v928_v3 = vadd.f32 %v880_v5, %v5532_v11  ;;  %v882_v2 = vpop.f32.mrb[5].mxu1  ;;  %v923_v1 = vpop.f32.mrb[9].mxu0  ;;  %v559_v5 = vmul.f32 %v555_v40, %v545_v21 }
 0x2bc   :  { %v929_v20 = vadd.f32 %v882_v2, %v5534_v25  ;;  %v884_v7 = vpop.f32.mrb[6].mxu1  ;;  %v925_v17 = vpop.f32.mrb[10].mxu0  ;;  %v931_v10 = vadd.f32 %v923_v1, %v5541_v61 }
 0x2bd   :  { %v4044_v0 = vmul.f32 -1.442695, %v928_v3  ;;  %v885_v6 = vpop.f32.mrb[7].mxu1  ;;  %v926_v12 = vpop.f32.mrb[11].mxu0  ;;  %v5546_v11 = vadd.f32 %v574_v13, %v559_v5  ;;  %v5552_v5 = vld [vmem:[#allocation8] ss:$16 sps:$4 sm:$0xff]  }
 0x2be   :  { %v4045_v9 = vmul.f32 -1.442695, %v929_v20  ;;  %v4046_v2 = vmul.f32 -1.442695, %v931_v10  ;;  %v5554_v13 = vld [vmem:[#allocation8 + $0x8] ss:$16 sps:$4 sm:$0xff]  }
 0x2bf   :  { %4534 = vpow2.f32 %v4044_v0  ;;  %v930_v7 = vadd.f32 %v921_v4, %v5546_v11 }
 0x2c0   :  { %4536 = vpow2.f32 %v4045_v9 }
 0x2c1   :  { %4538 = vpow2.f32 %v4046_v2 }
 0x2c2   :  { %4540 = vtanh.f32 %v930_v7  ;;  %v5558_v7 = vld [vmem:[#allocation8 + $0x24] ss:$16 sps:$4 sm:$0xff]  }
 0x2c9   :  { %v4535_v17 = vpop.eup %4534 }
 0x2ca   :  { %v4537_v3 = vpop.eup %4536  ;;  %v938_v6 = vadd.f32 1.0, %v4535_v17  ;;  %v5560_v17 = vld [vmem:[#allocation8 + $0x2c] ss:$16 sps:$4 sm:$0xff]  }
 0x2cb   :  { %v939_v20 = vadd.f32 1.0, %v4537_v3  ;;  %v4539_v63 = vpop.eup %4538  ;;  %v5566_v3 = vld [vmem:[#allocation8 + $0x20] ss:$16 sps:$4 sm:$0xff]  }
 0x2cc   :  { %4542 = vrcp.f32 %v938_v6  ;;  %v4541_v40 = vpop.eup %4540  ;;  %v948_v0 = vadd.f32 1.0, %v4539_v63  ;;  %v5568_v6 = vld [vmem:[#allocation8 + $0x28] ss:$16 sps:$4 sm:$0xff]   ;;  %v5574_v63 = vld [vmem:[#allocation8 + $0x4c] ss:$16 sps:$4 sm:$0xff]  }
 0x2cd   :  { %4544 = vrcp.f32 %v939_v20  ;;  %v5572_v20 = vld [vmem:[#allocation8 + $0x44] ss:$16 sps:$4 sm:$0xff]  }
 0x2ce   :  { %4546 = vrcp.f32 %v948_v0  ;;  %v5588_v0 = vld [vmem:[#allocation8 + $0x6c] ss:$16 sps:$4 sm:$0xff]  }
 0x2cf   :  { %7391 = vst [vmem:[#allocation68_spill] sm:$0xff] %v5588_v0 }
 0x2d6   :  { %v4543_v21 = vpop.eup %4542 }
 0x2d7   :  { %v4545_v24 = vpop.eup %4544  ;;  %v952_v14 = vmul.f32 %v4543_v21, %v4541_v40  ;;  %v7387_v40 = vmov 0   ;;  %v5580_v21 = vld [vmem:[#allocation8 + $0x40] ss:$16 sps:$4 sm:$0xff]  }
 0x2d8   :  { %v951_v1 = vmul.f32 0.0, %v4545_v24  ;;  %v4547_v4 = vpop.eup %4546  ;;  %7388 = vst [vmem:[#allocation65_spill] sm:$0xff] %v5580_v21  ;;  %v5582_v24 = vld [vmem:[#allocation8 + $0x48] ss:$16 sps:$4 sm:$0xff]  }
 0x2d9   :  { %7389 = vst [vmem:[#allocation66_spill] sm:$0xff] %v5582_v24 }
 0x2da   :  { %v5549_v12 = vadd.f32 %v952_v14, %v951_v1  ;;  %v5586_v14 = vld [vmem:[#allocation8 + $0x64] ss:$16 sps:$4 sm:$0xff]   ;;  %v5592_v1 = vld [vmem:[#allocation8 + $0x60] ss:$16 sps:$4 sm:$0xff]  }
 0x2db   :  { %7390 = vst [vmem:[#allocation67_spill] sm:$0xff] %v5586_v14  ;;  %7392 = vst [vmem:[#allocation69_spill] sm:$0xff] %v5592_v1 }
 0x2dc   :  { %4548 = vtanh.f32 %v5549_v12 }
 0x2e6   :  { %v4549_v10 = vpop.eup %4548 }
 0x2e7   :  { %v955_v9 = vmul.f32 %v4549_v10, %v4547_v4  ;;  %v5594_v4 = vld [vmem:[#allocation8 + $0x68] ss:$16 sps:$4 sm:$0xff]   ;;  %v5598_v10 = vld [vmem:[#allocation8 + $0x84] ss:$16 sps:$4 sm:$0xff]  }
 0x2e8   :  { %7393 = vst [vmem:[#allocation70_spill] sm:$0xff] %v5594_v4  ;;  %7394 = vst [vmem:[#allocation71_spill] sm:$0xff] %v5598_v10 }
 0x2e9   :  { %v5556_v2 = vpack.c.bf16 %v955_v9, %v955_v9  ;;  %v5600_v9 = vld [vmem:[#allocation8 + $0x8c] ss:$16 sps:$4 sm:$0xff]  }
 0x2ea   :  { %7395 = vst [vmem:[#allocation72_spill] sm:$0xff] %v5600_v9 }
 0x2eb   :  { %1171 = vmatmul.mubr.bf16.vlgmr.msra.gmra.mrb[8].mxu1 %v5556_v2  ;;  %1212 = vmatmul.mubr.bf16.vlgmr.msra.gmra.mrb[12].mxu0 %v5556_v2 }
 0x2ec   :  { %1381 = vmatpush1.bf16.msra.mxu1 %v5552_v5  ;;  %1422 = vmatpush1.bf16.msra.mxu0 %v5554_v13 }
 0x2ed   :  { %1382 = vmatprep.subr.bf16.mxu1 %v5558_v7  ;;  %1423 = vmatprep.subr.bf16.mxu0 %v5560_v17 }
 0x2ee   :  { %1412 = vmatprep.mubr.bf16.mxu1 %v7387_v40  ;;  %1453 = vmatprep.mubr.bf16.mxu0 %v7387_v40 }
 0x2f0   :  { %1383 = vmatpush1.bf16.msra.mxu1 %v5566_v3  ;;  %1424 = vmatpush1.bf16.msra.mxu0 %v5568_v6 }
 0x2f1   :  { %1384 = vmatprep.subr.bf16.mxu1 %v5572_v20  ;;  %1425 = vmatprep.subr.bf16.mxu0 %v5574_v63 }
 0x2f4   :  { %1385 = vmatpush1.bf16.msra.mxu1 %v5580_v21  ;;  %1426 = vmatpush1.bf16.msra.mxu0 %v5582_v24  ;;  %v5606_v21 = vld [vmem:[#allocation8 + $0x88] ss:$16 sps:$4 sm:$0xff]   ;;  %v5610_v24 = vld [vmem:[#allocation8 + $0xa4] ss:$16 sps:$4 sm:$0xff]  }
 0x2f5   :  { %1386 = vmatprep.subr.bf16.mxu1 %v5586_v14  ;;  %1427 = vmatprep.subr.bf16.mxu0 %v5588_v0  ;;  %7397 = vst [vmem:[#allocation74_spill] sm:$0xff] %v5606_v21  ;;  %7398 = vst [vmem:[#allocation75_spill] sm:$0xff] %v5610_v24  ;;  %v5612_v14 = vld [vmem:[#allocation8 + $0xac] ss:$16 sps:$4 sm:$0xff]   ;;  %v5616_v0 = vld [vmem:[#allocation8 + $0xa0] ss:$16 sps:$4 sm:$0xff]  }
 0x2f6   :  { %7399 = vst [vmem:[#allocation76_spill] sm:$0xff] %v5612_v14  ;;  %7400 = vst [vmem:[#allocation77_spill] sm:$0xff] %v5616_v0 }
 0x2f8   :  { %1387 = vmatpush1.bf16.msra.mxu1 %v5592_v1  ;;  %1428 = vmatpush1.bf16.msra.mxu0 %v5594_v4  ;;  %v5618_v1 = vld [vmem:[#allocation8 + $0xa8] ss:$16 sps:$4 sm:$0xff]   ;;  %v5622_v4 = vld [vmem:[#allocation8 + $0xc4] ss:$16 sps:$4 sm:$0xff]  }
 0x2f9   :  { %1388 = vmatprep.subr.bf16.mxu1 %v5598_v10  ;;  %1429 = vmatprep.subr.bf16.mxu0 %v5600_v9  ;;  %v5624_v10 = vld [vmem:[#allocation8 + $0xcc] ss:$16 sps:$4 sm:$0xff]   ;;  %v5628_v9 = vld [vmem:[#allocation8 + $0xc0] ss:$16 sps:$4 sm:$0xff]  }
 0x2fc   :  { %1389 = vmatpush1.bf16.msra.mxu1 %v5604_v62  ;;  %1430 = vmatpush1.bf16.msra.mxu0 %v5606_v21  ;;  %v5630_v62 = vld [vmem:[#allocation8 + $0xc8] ss:$16 sps:$4 sm:$0xff]   ;;  %v5634_v21 = vld [vmem:[#allocation8 + $0xe4] ss:$16 sps:$4 sm:$0xff]  }
 0x2fd   :  { %1390 = vmatprep.subr.bf16.mxu1 %v5610_v24  ;;  %1431 = vmatprep.subr.bf16.mxu0 %v5612_v14  ;;  %v5636_v24 = vld [vmem:[#allocation8 + $0xec] ss:$16 sps:$4 sm:$0xff]   ;;  %v5640_v14 = vld [vmem:[#allocation8 + $0xe0] ss:$16 sps:$4 sm:$0xff]  }
 0x300   :  { %1391 = vmatpush1.bf16.msra.mxu1 %v5616_v0  ;;  %1432 = vmatpush1.bf16.msra.mxu0 %v5618_v1  ;;  %v5642_v0 = vld [vmem:[#allocation8 + $0xe8] ss:$16 sps:$4 sm:$0xff]  }
 0x301   :  { %1392 = vmatprep.subr.bf16.mxu1 %v5622_v4  ;;  %1433 = vmatprep.subr.bf16.mxu0 %v5624_v10 }
 0x304   :  { %1393 = vmatpush1.bf16.msra.mxu1 %v5628_v9  ;;  %1434 = vmatpush1.bf16.msra.mxu0 %v5630_v62 }
 0x305   :  { %1394 = vmatprep.subr.bf16.mxu1 %v5634_v21  ;;  %1435 = vmatprep.subr.bf16.mxu0 %v5636_v24 }
 0x308   :  { %1395 = vmatpush1.bf16.msra.mxu1 %v5640_v14  ;;  %1436 = vmatpush1.bf16.msra.mxu0 %v5642_v0 }
 0x309   :  { %1498 = vmatprep.subr.bf16.mxu1 %v5314_v15  ;;  %1539 = vmatprep.subr.bf16.mxu0 %v5316_v16 }
 0x30b   :  { %1413 = vmatmul.mubr.bf16.vlgmr.msra.gmra.mrb[8].mxu1 %v7387_v40  ;;  %1454 = vmatmul.mubr.bf16.vlgmr.msra.gmra.mrb[12].mxu0 %v7387_v40 }
 0x30c   :  { %1499 = vmatpush1.bf16.msra.mxu1 %v5320_v18  ;;  %1540 = vmatpush1.bf16.msra.mxu0 %v5322_v19 }
 0x30d   :  { %1500 = vmatprep.subr.bf16.mxu1 %v5324_v22  ;;  %1541 = vmatprep.subr.bf16.mxu0 %v5326_v23 }
 0x30e   :  { %1530 = vmatprep.mubr.bf16.mxu1 %v7387_v40  ;;  %1571 = vmatprep.mubr.bf16.mxu0 %v7387_v40 }
 0x310   :  { %1501 = vmatpush1.bf16.msra.mxu1 %v5330_v26  ;;  %1542 = vmatpush1.bf16.msra.mxu0 %v5332_v27 }
 0x311   :  { %1502 = vmatprep.subr.bf16.mxu1 %v5336_v28  ;;  %1543 = vmatprep.subr.bf16.mxu0 %v5338_v29 }
 0x314   :  { %1503 = vmatpush1.bf16.msra.mxu1 %v5344_v30  ;;  %1544 = vmatpush1.bf16.msra.mxu0 %v5346_v31 }
 0x315   :  { %1504 = vmatprep.subr.bf16.mxu1 %v5350_v32  ;;  %1545 = vmatprep.subr.bf16.mxu0 %v5352_v33 }
 0x318   :  { %1505 = vmatpush1.bf16.msra.mxu1 %v5356_v34  ;;  %1546 = vmatpush1.bf16.msra.mxu0 %v5358_v35 }
 0x319   :  { %1506 = vmatprep.subr.bf16.mxu1 %v5362_v36  ;;  %1547 = vmatprep.subr.bf16.mxu0 %v5364_v37 }
 0x31c   :  { %1507 = vmatpush1.bf16.msra.mxu1 %v5368_v38  ;;  %1548 = vmatpush1.bf16.msra.mxu0 %v5370_v39 }
 0x31d   :  { %1508 = vmatprep.subr.bf16.mxu1 %v5374_v41  ;;  %1549 = vmatprep.subr.bf16.mxu0 %v5376_v42 }
 0x320   :  { %1509 = vmatpush1.bf16.msra.mxu1 %v5380_v43  ;;  %1550 = vmatpush1.bf16.msra.mxu0 %v5382_v44 }
 0x321   :  { %1510 = vmatprep.subr.bf16.mxu1 %v5386_v45  ;;  %1551 = vmatprep.subr.bf16.mxu0 %v5388_v46 }
 0x324   :  { %1511 = vmatpush1.bf16.msra.mxu1 %v5392_v47  ;;  %1552 = vmatpush1.bf16.msra.mxu0 %v5394_v48 }
 0x325   :  { %1512 = vmatprep.subr.bf16.mxu1 %v5398_v49  ;;  %1553 = vmatprep.subr.bf16.mxu0 %v5400_v50 }
 0x328   :  { %1513 = vmatpush1.bf16.msra.mxu1 %v5404_v51  ;;  %1554 = vmatpush1.bf16.msra.mxu0 %v5406_v52  ;;  %v7408_v52 = vld [vmem:[#allocation44_spill] sm:$0xff]  ;;  %v7409_v51 = vld [vmem:[#allocation45_spill] sm:$0xff] }
 0x329   :  { %1628 = vmatprep.subr.bf16.mxu1 %v5416_v53  ;;  %1669 = vmatprep.subr.bf16.mxu0 %v5418_v54  ;;  %v7401_v54 = vld [vmem:[#allocation37_spill] sm:$0xff]  ;;  %v7402_v53 = vld [vmem:[#allocation38_spill] sm:$0xff] }
 0x32b   :  { %1531 = vmatmul.mubr.bf16.vlgmr.msra.gmra.mrb[12].mxu1 %v5556_v2  ;;  %1572 = vmatmul.mubr.bf16.vlgmr.msra.gmra.mrb[16].mxu0 %v5556_v2  ;;  %v7403_v2 = vld [vmem:[#allocation39_spill] sm:$0xff] }
 0x32c   :  { %1629 = vmatpush1.bf16.msra.mxu1 %v5420_v55  ;;  %1670 = vmatpush1.bf16.msra.mxu0 %v5422_v56  ;;  %v7404_v55 = vld [vmem:[#allocation40_spill] sm:$0xff]  ;;  %v7405_v56 = vld [vmem:[#allocation41_spill] sm:$0xff] }
 0x32d   :  { %1630 = vmatprep.subr.bf16.mxu1 %v5428_v57  ;;  %1671 = vmatprep.subr.bf16.mxu0 %v5430_v58  ;;  %v7406_v57 = vld [vmem:[#allocation42_spill] sm:$0xff]  ;;  %v7407_v58 = vld [vmem:[#allocation43_spill] sm:$0xff] }
 0x32e   :  { %1660 = vmatprep.mubr.bf16.mxu1 %v7387_v40  ;;  %1701 = vmatprep.mubr.bf16.mxu0 %v7387_v40 }
 0x330   :  { %1631 = vmatpush1.bf16.msra.mxu1 %v5432_v59  ;;  %1672 = vmatpush1.bf16.msra.mxu0 %v5434_v60  ;;  %v7410_v59 = vld [vmem:[#allocation46_spill] sm:$0xff]  ;;  %v7411_v60 = vld [vmem:[#allocation47_spill] sm:$0xff] }
 0x331   :  { %1632 = vmatprep.subr.bf16.mxu1 %v7401_v54  ;;  %1673 = vmatprep.subr.bf16.mxu0 %v7402_v53  ;;  %v7412_v54 = vld [vmem:[#allocation48_spill] sm:$0xff]  ;;  %v7413_v53 = vld [vmem:[#allocation49_spill] sm:$0xff] }
 0x334   :  { %1633 = vmatpush1.bf16.msra.mxu1 %v7403_v2  ;;  %1674 = vmatpush1.bf16.msra.mxu0 %v7404_v55  ;;  %v7414_v2 = vld [vmem:[#allocation50_spill] sm:$0xff]  ;;  %v7415_v55 = vld [vmem:[#allocation51_spill] sm:$0xff] }
 0x335   :  { %1634 = vmatprep.subr.bf16.mxu1 %v7405_v56  ;;  %1675 = vmatprep.subr.bf16.mxu0 %v7406_v57  ;;  %v7416_v56 = vld [vmem:[#allocation52_spill] sm:$0xff]  ;;  %v7417_v57 = vld [vmem:[#allocation53_spill] sm:$0xff] }
 0x338   :  { %1635 = vmatpush1.bf16.msra.mxu1 %v7407_v58  ;;  %1676 = vmatpush1.bf16.msra.mxu0 %v7408_v52  ;;  %v7418_v58 = vld [vmem:[#allocation54_spill] sm:$0xff]  ;;  %v7419_v52 = vld [vmem:[#allocation55_spill] sm:$0xff] }
 0x339   :  { %1636 = vmatprep.subr.bf16.mxu1 %v7409_v51  ;;  %1677 = vmatprep.subr.bf16.mxu0 %v7410_v59  ;;  %v7420_v51 = vld [vmem:[#allocation56_spill] sm:$0xff]  ;;  %v7421_v59 = vld [vmem:[#allocation57_spill] sm:$0xff] }
 0x33c   :  { %1637 = vmatpush1.bf16.msra.mxu1 %v7411_v60  ;;  %1678 = vmatpush1.bf16.msra.mxu0 %v7412_v54  ;;  %v7422_v60 = vld [vmem:[#allocation58_spill] sm:$0xff]  ;;  %v7423_v54 = vld [vmem:[#allocation59_spill] sm:$0xff] }
 0x33d   :  { %1638 = vmatprep.subr.bf16.mxu1 %v7413_v53  ;;  %1679 = vmatprep.subr.bf16.mxu0 %v7414_v2  ;;  %v7424_v53 = vld [vmem:[#allocation60_spill] sm:$0xff]  ;;  %v7425_v2 = vld [vmem:[#allocation61_spill] sm:$0xff] }
 0x340   :  { %1639 = vmatpush1.bf16.msra.mxu1 %v7415_v55  ;;  %1680 = vmatpush1.bf16.msra.mxu0 %v7416_v56  ;;  %v7426_v55 = vld [vmem:[#allocation62_spill] sm:$0xff] }
 0x341   :  { %1640 = vmatprep.subr.bf16.mxu1 %v7417_v57  ;;  %1681 = vmatprep.subr.bf16.mxu0 %v7418_v58  ;;  %v5725_v58 = vld [vmem:[%s7052_s8] sm:$0xf] }
 0x344   :  { %1641 = vmatpush1.bf16.msra.mxu1 %v7419_v52  ;;  %1682 = vmatpush1.bf16.msra.mxu0 %v7420_v51  ;;  %v7427_v52 = vld [vmem:[#allocation63_spill] sm:$0xff] }
 0x345   :  { %1642 = vmatprep.subr.bf16.mxu1 %v7421_v59  ;;  %1683 = vmatprep.subr.bf16.mxu0 %v7422_v60  ;;  %v5729_v51 = vrot.slane %v5725_v58, %v7427_v52  ;;  %v7429_v59 = vsub.s32 1, %v5519_v8 }
 0x347   :  { %7428 = vst [vmem:[#allocation78_spill] sm:$0xff] %v5729_v51  ;;  %v5734_v60 = vrot.slane %v5725_v58, %v7429_v59  ;;  %v7431_v59 = vsub.s32 2, %v5519_v8 }
 0x348   :  { %1643 = vmatpush1.bf16.msra.mxu1 %v7423_v54  ;;  %1684 = vmatpush1.bf16.msra.mxu0 %v7424_v53 }
 0x349   :  { %1711 = vmatprep.subr.bf16.mxu1 %v7425_v2  ;;  %1752 = vmatprep.subr.bf16.mxu0 %v7426_v55  ;;  %7430 = vst [vmem:[#allocation79_spill] sm:$0xff] %v5734_v60  ;;  %v5743_v45 = vrot.slane %v5725_v58, %v7431_v59 }
 0x34b   :  { %7432 = vst [vmem:[#allocation80_spill] sm:$0xff] %v5743_v45 }
 0x3de   :  { %v1414_v54 = vpop.f32.mrb[8].mxu1  ;;  %v1455_v53 = vpop.f32.mrb[12].mxu0 }
 0x3df   :  { %v4223_v2 = vadd.f32 %v1414_v54, %v5729_v51  ;;  %v1416_v57 = vpop.f32.mrb[9].mxu1  ;;  %v5737_v55 = vpop.f32.mrb[13].mxu0  ;;  %v4225_v54 = vadd.f32 %v1455_v53, %v5743_v45 }
 0x3e0   :  { %v4224_v56 = vadd.f32 %v1416_v57, %v5734_v60  ;;  %v1418_v50 = vpop.f32.mrb[10].mxu1  ;;  %v1459_v49 = vpop.f32.mrb[14].mxu0 }
 0x3e1   :  { %v4111_v48 = vmul.f32 -1.442695, %v4223_v2  ;;  %v1419_v47 = vpop.f32.mrb[11].mxu1  ;;  %v1460_v52 = vpop.f32.mrb[15].mxu0 }
 0x3e2   :  { %v4112_v46 = vmul.f32 -1.442695, %v4224_v56 }
 0x3e3   :  { %4550 = vpow2.f32 %v4111_v48 }
 0x3e4   :  { %4552 = vpow2.f32 %v4112_v46 }
 0x3e5   :  { %4554 = vtanh.f32 %v4225_v54 }
 0x3ed   :  { %v4551_v51 = vpop.eup %4550 }
 0x3ee   :  { %v4553_v44 = vpop.eup %4552  ;;  %v1472_v43 = vadd.f32 1.0, %v4551_v51  ;;  %v7433_v51 = vld [vmem:[#allocation64_spill] sm:$0xff] }
 0x3ef   :  { %v1473_v57 = vadd.f32 1.0, %v4553_v44  ;;  %v4555_v49 = vpop.eup %4554 }
 0x3f0   :  { %4556 = vrcp.f32 %v1472_v43 }
 0x3f1   :  { %4558 = vrcp.f32 %v1473_v57 }
 0x3fa   :  { %v4557_v47 = vpop.eup %4556 }
 0x3fb   :  { %v4559_v50 = vpop.eup %4558  ;;  %v1486_v52 = vmul.f32 %v4557_v47, %v4555_v49 }
 0x3fc   :  { %v1485_v48 = vmul.f32 0.0, %v4559_v50 }
 0x3fe   :  { %v5746_v46 = vadd.f32 %v1486_v52, %v1485_v48  ;;  %v1532_v56 = vpop.f32.mrb[12].mxu1  ;;  %v1573_v2 = vpop.f32.mrb[16].mxu0 }
 0x3ff   :  { %v1584_v59 = vrot.slane %v1532_v56, 7  ;;  %v1534_v60 = vpop.f32.mrb[13].mxu1  ;;  %v1575_v42 = vpop.f32.mrb[17].mxu0  ;;  %v1586_v50 = vrot.slane %v1573_v2, 7 }
 0x400   :  { %v1585_v53 = vrot.slane %v1534_v60, 7  ;;  %v1536_v45 = vpop.f32.mrb[14].mxu1  ;;  %v1577_v41 = vpop.f32.mrb[18].mxu0  ;;  %v1587_v49 = vrot.slane %v1575_v42, 7 }
 0x401   :  { %v1592_v54 = vadd.f32 %v1584_v59, %v7433_v51  ;;  %v1537_v44 = vpop.f32.mrb[15].mxu1  ;;  %v1578_v43 = vpop.f32.mrb[19].mxu0  ;;  %v1594_v48 = vadd.f32 %v1586_v50, %v5546_v11 }
 0x402   :  { %v1593_v57 = vadd.f32 %v1585_v53, %v5534_v25  ;;  %v1595_v47 = vadd.f32 %v1587_v49, %v5541_v61 }
 0x403   :  { %v4114_v39 = vmul.f32 -1.442695, %v1592_v54 }
 0x404   :  { %v4115_v38 = vmul.f32 -1.442695, %v1593_v57  ;;  %v4116_v52 = vmul.f32 -1.442695, %v1595_v47  ;;  %v7434_v57 = vsub.s32 3, %v5519_v8 }
 0x405   :  { %4560 = vpow2.f32 %v4114_v39  ;;  %v1616_v39 = vrot.slane %v5549_v12, 7 }
 0x406   :  { %4562 = vpow2.f32 %v4115_v38  ;;  %v5759_v49 = vrot.slane %v5725_v58, %v7434_v57  ;;  %v7435_v58 = vld [vmem:[#allocation65_spill] sm:$0xff]  ;;  %v7445_v57 = vld [vmem:[#allocation75_spill] sm:$0xff] }
 0x407   :  { %4564 = vpow2.f32 %v4116_v52 }
 0x408   :  { %4566 = vtanh.f32 %v1594_v48  ;;  %v4226_v47 = vadd.f32 %v5737_v55, %v5759_v49 }
 0x40a   :  { %v4113_v12 = vmul.f32 -1.442695, %v4226_v47  ;;  %v7446_v47 = vld [vmem:[#allocation76_spill] sm:$0xff] }
 0x40f   :  { %v4561_v60 = vpop.eup %4560 }
 0x410   :  { %v4563_v45 = vpop.eup %4562  ;;  %v1602_v41 = vadd.f32 1.0, %v4561_v60 }
 0x411   :  { %v1603_v56 = vadd.f32 1.0, %v4563_v45  ;;  %v4565_v59 = vpop.eup %4564 }
 0x412   :  { %4568 = vrcp.f32 %v1602_v41  ;;  %v4567_v53 = vpop.eup %4566  ;;  %v1612_v44 = vadd.f32 1.0, %v4565_v59  ;;  %v7436_v41 = vld [vmem:[#allocation66_spill] sm:$0xff]  ;;  %v7438_v59 = vld [vmem:[#allocation68_spill] sm:$0xff] }
 0x413   :  { %4570 = vrcp.f32 %v1603_v56  ;;  %v7437_v56 = vld [vmem:[#allocation67_spill] sm:$0xff] }
 0x414   :  { %4572 = vrcp.f32 %v1612_v44  ;;  %v7443_v44 = vld [vmem:[#allocation73_spill] sm:$0xff] }
 0x41c   :  { %v4569_v54 = vpop.eup %4568 }
 0x41d   :  { %v4571_v38 = vpop.eup %4570  ;;  %v1619_v42 = vmul.f32 %v4569_v54, %v4567_v53  ;;  %v7439_v54 = vld [vmem:[#allocation69_spill] sm:$0xff] }
 0x41e   :  { %v1618_v2 = vmul.f32 %v4571_v38, %v1616_v39  ;;  %v4573_v50 = vpop.eup %4572  ;;  %v7440_v39 = vld [vmem:[#allocation70_spill] sm:$0xff]  ;;  %v7441_v38 = vld [vmem:[#allocation71_spill] sm:$0xff] }
 0x420   :  { %v5753_v43 = vadd.f32 %v1619_v42, %v1618_v2  ;;  %v7442_v42 = vld [vmem:[#allocation72_spill] sm:$0xff]  ;;  %v7444_v2 = vld [vmem:[#allocation74_spill] sm:$0xff] }
 0x422   :  { %4574 = vtanh.f32 %v5753_v43 }
 0x423   :  { %4576 = vpow2.f32 %v4113_v12 }
 0x424   :  { %4578 = vtanh.f32 %v5746_v46 }
 0x42c   :  { %v4575_v52 = vpop.eup %4574 }
 0x42d   :  { %v1622_v48 = vmul.f32 %v4575_v52, %v4573_v50  ;;  %v4577_v55 = vpop.eup %4576  ;;  %v7447_v50 = vld [vmem:[#allocation77_spill] sm:$0xff] }
 0x42e   :  { %v1482_v53 = vadd.f32 1.0, %v4577_v55  ;;  %v4579_v52 = vpop.eup %4578  ;;  %v7466_v55 = vld [vmem:[#allocation33_spill] sm:$0xff] }
 0x42f   :  { %v1623_v60 = vpack.c.bf16 %v1622_v48, %v1622_v48 }
 0x430   :  { %4580 = vrcp.f32 %v1482_v53  ;;  %v7467_v53 = vld [vmem:[#allocation34_spill] sm:$0xff] }
 0x431   :  { %v5763_v45 = vshrl.u32 %v1623_v60, 16 }
 0x433   :  { %1661 = vmatmul.mubr.bf16.vlgmr.msra.gmra.mrb[16].mxu1 %v5763_v45  ;;  %1702 = vmatmul.mubr.bf16.vlgmr.msra.gmra.mrb[20].mxu0 %v5763_v45 }
 0x434   :  { %1712 = vmatpush1.bf16.msra.mxu1 %v5552_v5  ;;  %1753 = vmatpush1.bf16.msra.mxu0 %v5554_v13 }
 0x435   :  { %1713 = vmatprep.subr.bf16.mxu1 %v5558_v7  ;;  %1754 = vmatprep.subr.bf16.mxu0 %v5560_v17 }
 0x436   :  { %1743 = vmatprep.mubr.bf16.mxu1 %v7387_v40  ;;  %1784 = vmatprep.mubr.bf16.mxu0 %v7387_v40 }
 0x438   :  { %1714 = vmatpush1.bf16.msra.mxu1 %v5566_v3  ;;  %1755 = vmatpush1.bf16.msra.mxu0 %v5568_v6 }
 0x439   :  { %1715 = vmatprep.subr.bf16.mxu1 %v5572_v20  ;;  %1756 = vmatprep.subr.bf16.mxu0 %v5574_v63 }
 0x43a   :  { %v4581_v12 = vpop.eup %4580 }
 0x43b   :  { %v5798_v48 = vmul.f32 %v4581_v12, %v4579_v52  ;;  %v7468_v52 = vld [vmem:[#allocation35_spill] sm:$0xff]  ;;  %v7469_v12 = vld [vmem:[#allocation36_spill] sm:$0xff] }
 0x43c   :  { %1716 = vmatpush1.bf16.msra.mxu1 %v7435_v58  ;;  %1757 = vmatpush1.bf16.msra.mxu0 %v7436_v41 }
 0x43d   :  { %1717 = vmatprep.subr.bf16.mxu1 %v7437_v56  ;;  %1758 = vmatprep.subr.bf16.mxu0 %v7438_v59  ;;  %v1710_v60 = vpack.c.bf16 %v5798_v48, %v5798_v48 }
 0x440   :  { %1718 = vmatpush1.bf16.msra.mxu1 %v7439_v54  ;;  %1759 = vmatpush1.bf16.msra.mxu0 %v7440_v39 }
 0x441   :  { %1719 = vmatprep.subr.bf16.mxu1 %v7441_v38  ;;  %1760 = vmatprep.subr.bf16.mxu0 %v7442_v42 }
 0x444   :  { %1720 = vmatpush1.bf16.msra.mxu1 %v7443_v44  ;;  %1761 = vmatpush1.bf16.msra.mxu0 %v7444_v2 }
 0x445   :  { %1721 = vmatprep.subr.bf16.mxu1 %v7445_v57  ;;  %1762 = vmatprep.subr.bf16.mxu0 %v7446_v47 }
 0x448   :  { %1722 = vmatpush1.bf16.msra.mxu1 %v7447_v50  ;;  %1763 = vmatpush1.bf16.msra.mxu0 %v5618_v1 }
 0x449   :  { %1723 = vmatprep.subr.bf16.mxu1 %v5622_v4  ;;  %1764 = vmatprep.subr.bf16.mxu0 %v5624_v10 }
 0x44c   :  { %1724 = vmatpush1.bf16.msra.mxu1 %v5628_v9  ;;  %1765 = vmatpush1.bf16.msra.mxu0 %v5630_v62 }
 0x44d   :  { %1725 = vmatprep.subr.bf16.mxu1 %v5634_v21  ;;  %1766 = vmatprep.subr.bf16.mxu0 %v5636_v24 }
 0x450   :  { %1726 = vmatpush1.bf16.msra.mxu1 %v5640_v14  ;;  %1767 = vmatpush1.bf16.msra.mxu0 %v5642_v0 }
 0x451   :  { %1829 = vmatprep.subr.bf16.mxu1 %v5314_v15  ;;  %1870 = vmatprep.subr.bf16.mxu0 %v5316_v16  ;;  %v7448_v15 = vld [vmem:[#allocation15_spill] sm:$0xff]  ;;  %v7449_v16 = vld [vmem:[#allocation16_spill] sm:$0xff] }
 0x453   :  { %1744 = vmatmul.mubr.bf16.vlgmr.msra.gmra.mrb[16].mxu1 %v1710_v60  ;;  %1785 = vmatmul.mubr.bf16.vlgmr.msra.gmra.mrb[20].mxu0 %v1710_v60  ;;  %v7470_v60 = vld [vmem:[#allocation37_spill] sm:$0xff] }
 0x454   :  { %1830 = vmatpush1.bf16.msra.mxu1 %v5320_v18  ;;  %1871 = vmatpush1.bf16.msra.mxu0 %v5322_v19  ;;  %v7450_v18 = vld [vmem:[#allocation17_spill] sm:$0xff]  ;;  %v7451_v19 = vld [vmem:[#allocation18_spill] sm:$0xff] }
 0x455   :  { %1831 = vmatprep.subr.bf16.mxu1 %v5324_v22  ;;  %1872 = vmatprep.subr.bf16.mxu0 %v5326_v23  ;;  %v7452_v22 = vld [vmem:[#allocation19_spill] sm:$0xff]  ;;  %v7453_v23 = vld [vmem:[#allocation20_spill] sm:$0xff] }
 0x456   :  { %1861 = vmatprep.mubr.bf16.mxu1 %v7387_v40  ;;  %1902 = vmatprep.mubr.bf16.mxu0 %v7387_v40 }
 0x458   :  { %1832 = vmatpush1.bf16.msra.mxu1 %v5330_v26  ;;  %1873 = vmatpush1.bf16.msra.mxu0 %v5332_v27  ;;  %v7454_v26 = vld [vmem:[#allocation21_spill] sm:$0xff]  ;;  %v7455_v27 = vld [vmem:[#allocation22_spill] sm:$0xff] }
 0x459   :  { %1833 = vmatprep.subr.bf16.mxu1 %v5336_v28  ;;  %1874 = vmatprep.subr.bf16.mxu0 %v5338_v29  ;;  %v7456_v28 = vld [vmem:[#allocation23_spill] sm:$0xff]  ;;  %v7457_v29 = vld [vmem:[#allocation24_spill] sm:$0xff] }
 0x45c   :  { %1834 = vmatpush1.bf16.msra.mxu1 %v5344_v30  ;;  %1875 = vmatpush1.bf16.msra.mxu0 %v5346_v31  ;;  %v7458_v30 = vld [vmem:[#allocation25_spill] sm:$0xff]  ;;  %v7459_v31 = vld [vmem:[#allocation26_spill] sm:$0xff] }
 0x45d   :  { %1835 = vmatprep.subr.bf16.mxu1 %v5350_v32  ;;  %1876 = vmatprep.subr.bf16.mxu0 %v5352_v33  ;;  %v7460_v32 = vld [vmem:[#allocation27_spill] sm:$0xff]  ;;  %v7461_v33 = vld [vmem:[#allocation28_spill] sm:$0xff] }
 0x460   :  { %1836 = vmatpush1.bf16.msra.mxu1 %v5356_v34  ;;  %1877 = vmatpush1.bf16.msra.mxu0 %v5358_v35  ;;  %v7462_v34 = vld [vmem:[#allocation29_spill] sm:$0xff]  ;;  %v7463_v35 = vld [vmem:[#allocation30_spill] sm:$0xff] }
 0x461   :  { %1837 = vmatprep.subr.bf16.mxu1 %v5362_v36  ;;  %1878 = vmatprep.subr.bf16.mxu0 %v5364_v37  ;;  %v7464_v36 = vld [vmem:[#allocation31_spill] sm:$0xff]  ;;  %v7465_v37 = vld [vmem:[#allocation32_spill] sm:$0xff] }
 0x464   :  { %1838 = vmatpush1.bf16.msra.mxu1 %v7448_v15  ;;  %1879 = vmatpush1.bf16.msra.mxu0 %v7449_v16  ;;  %v7471_v15 = vld [vmem:[#allocation38_spill] sm:$0xff]  ;;  %v7473_v16 = vld [vmem:[#allocation40_spill] sm:$0xff] }
 0x465   :  { %1839 = vmatprep.subr.bf16.mxu1 %v7450_v18  ;;  %1880 = vmatprep.subr.bf16.mxu0 %v7451_v19  ;;  %v7474_v18 = vld [vmem:[#allocation41_spill] sm:$0xff]  ;;  %v7475_v19 = vld [vmem:[#allocation42_spill] sm:$0xff] }
 0x468   :  { %1840 = vmatpush1.bf16.msra.mxu1 %v7452_v22  ;;  %1881 = vmatpush1.bf16.msra.mxu0 %v7453_v23  ;;  %v7476_v22 = vld [vmem:[#allocation43_spill] sm:$0xff]  ;;  %v7477_v23 = vld [vmem:[#allocation44_spill] sm:$0xff] }
 0x469   :  { %1841 = vmatprep.subr.bf16.mxu1 %v7454_v26  ;;  %1882 = vmatprep.subr.bf16.mxu0 %v7455_v27  ;;  %v7478_v26 = vld [vmem:[#allocation45_spill] sm:$0xff]  ;;  %v7479_v27 = vld [vmem:[#allocation46_spill] sm:$0xff] }
 0x46c   :  { %1842 = vmatpush1.bf16.msra.mxu1 %v7456_v28  ;;  %1883 = vmatpush1.bf16.msra.mxu0 %v7457_v29  ;;  %v7480_v28 = vld [vmem:[#allocation47_spill] sm:$0xff]  ;;  %v7481_v29 = vld [vmem:[#allocation48_spill] sm:$0xff] }
 0x46d   :  { %1843 = vmatprep.subr.bf16.mxu1 %v7458_v30  ;;  %1884 = vmatprep.subr.bf16.mxu0 %v7459_v31  ;;  %v7482_v30 = vld [vmem:[#allocation49_spill] sm:$0xff]  ;;  %v7483_v31 = vld [vmem:[#allocation50_spill] sm:$0xff] }
 0x470   :  { %1844 = vmatpush1.bf16.msra.mxu1 %v7460_v32  ;;  %1885 = vmatpush1.bf16.msra.mxu0 %v7461_v33  ;;  %v7484_v32 = vld [vmem:[#allocation51_spill] sm:$0xff]  ;;  %v7485_v33 = vld [vmem:[#allocation52_spill] sm:$0xff] }
 0x471   :  { %1958 = vmatprep.subr.bf16.mxu1 %v7462_v34  ;;  %1999 = vmatprep.subr.bf16.mxu0 %v7463_v35  ;;  %v7486_v34 = vld [vmem:[#allocation53_spill] sm:$0xff]  ;;  %v7487_v35 = vld [vmem:[#allocation54_spill] sm:$0xff] }
 0x473   :  { %1862 = vmatmul.mubr.bf16.vlgmr.msra.gmra.mrb[20].mxu1 %v5763_v45  ;;  %1903 = vmatmul.mubr.bf16.vlgmr.msra.gmra.mrb[24].mxu0 %v5763_v45  ;;  %v7472_v45 = vld [vmem:[#allocation39_spill] sm:$0xff] }
 0x474   :  { %1959 = vmatpush1.bf16.msra.mxu1 %v7464_v36  ;;  %2000 = vmatpush1.bf16.msra.mxu0 %v7465_v37  ;;  %v7488_v36 = vld [vmem:[#allocation55_spill] sm:$0xff]  ;;  %v7489_v37 = vld [vmem:[#allocation56_spill] sm:$0xff] }
 0x475   :  { %1960 = vmatprep.subr.bf16.mxu1 %v7466_v55  ;;  %2001 = vmatprep.subr.bf16.mxu0 %v7467_v53  ;;  %v7490_v55 = vld [vmem:[#allocation57_spill] sm:$0xff]  ;;  %v7491_v53 = vld [vmem:[#allocation58_spill] sm:$0xff] }
 0x476   :  { %1990 = vmatprep.mubr.bf16.mxu1 %v7387_v40  ;;  %2031 = vmatprep.mubr.bf16.mxu0 %v7387_v40 }
 0x478   :  { %1961 = vmatpush1.bf16.msra.mxu1 %v7468_v52  ;;  %2002 = vmatpush1.bf16.msra.mxu0 %v7469_v12  ;;  %v7492_v52 = vld [vmem:[#allocation59_spill] sm:$0xff]  ;;  %v7493_v12 = vld [vmem:[#allocation60_spill] sm:$0xff] }
 0x479   :  { %1962 = vmatprep.subr.bf16.mxu1 %v7470_v60  ;;  %2003 = vmatprep.subr.bf16.mxu0 %v7471_v15  ;;  %v7494_v60 = vld [vmem:[#allocation61_spill] sm:$0xff]  ;;  %v7495_v15 = vld [vmem:[#allocation62_spill] sm:$0xff] }
 0x47c   :  { %1963 = vmatpush1.bf16.msra.mxu1 %v7472_v45  ;;  %2004 = vmatpush1.bf16.msra.mxu0 %v7473_v16 }
 0x47d   :  { %1964 = vmatprep.subr.bf16.mxu1 %v7474_v18  ;;  %2005 = vmatprep.subr.bf16.mxu0 %v7475_v19  ;;  %v7496_v18 = vld [vmem:[#allocation78_spill] sm:$0xff] }
 0x480   :  { %1965 = vmatpush1.bf16.msra.mxu1 %v7476_v22  ;;  %2006 = vmatpush1.bf16.msra.mxu0 %v7477_v23 }
 0x481   :  { %1966 = vmatprep.subr.bf16.mxu1 %v7478_v26  ;;  %2007 = vmatprep.subr.bf16.mxu0 %v7479_v27  ;;  %v7497_v26 = vld [vmem:[#allocation79_spill] sm:$0xff] }
 0x484   :  { %1967 = vmatpush1.bf16.msra.mxu1 %v7480_v28  ;;  %2008 = vmatpush1.bf16.msra.mxu0 %v7481_v29 }
 0x485   :  { %1968 = vmatprep.subr.bf16.mxu1 %v7482_v30  ;;  %2009 = vmatprep.subr.bf16.mxu0 %v7483_v31 }
 0x488   :  { %1969 = vmatpush1.bf16.msra.mxu1 %v7484_v32  ;;  %2010 = vmatpush1.bf16.msra.mxu0 %v7485_v33 }
 0x489   :  { %1970 = vmatprep.subr.bf16.mxu1 %v7486_v34  ;;  %2011 = vmatprep.subr.bf16.mxu0 %v7487_v35 }
 0x48c   :  { %1971 = vmatpush1.bf16.msra.mxu1 %v7488_v36  ;;  %2012 = vmatpush1.bf16.msra.mxu0 %v7489_v37  ;;  %v7498_v36 = vld [vmem:[#allocation80_spill] sm:$0xff] }
 0x48d   :  { %1972 = vmatprep.subr.bf16.mxu1 %v7490_v55  ;;  %2013 = vmatprep.subr.bf16.mxu0 %v7491_v53 }
 0x490   :  { %1973 = vmatpush1.bf16.msra.mxu1 %v7492_v52  ;;  %2014 = vmatpush1.bf16.msra.mxu0 %v7493_v12 }
 0x491   :  { %2041 = vmatprep.subr.bf16.mxu1 %v7494_v60  ;;  %2082 = vmatprep.subr.bf16.mxu0 %v7495_v15 }
 0x526   :  { %v1745_v45 = vpop.f32.mrb[16].mxu1  ;;  %v1786_v16 = vpop.f32.mrb[20].mxu0 }
 0x527   :  { %v4227_v19 = vadd.f32 %v1745_v45, %v7496_v18  ;;  %v1747_v22 = vpop.f32.mrb[17].mxu1  ;;  %v1788_v23 = vpop.f32.mrb[21].mxu0  ;;  %v4229_v37 = vadd.f32 %v1786_v16, %v7498_v36 }
 0x528   :  { %v4228_v27 = vadd.f32 %v1747_v22, %v7497_v26  ;;  %v1749_v28 = vpop.f32.mrb[18].mxu1  ;;  %v1790_v29 = vpop.f32.mrb[22].mxu0  ;;  %v4230_v34 = vadd.f32 %v1788_v23, %v5759_v49 }
 0x529   :  { %v4117_v30 = vmul.f32 -1.442695, %v4227_v19  ;;  %v1750_v31 = vpop.f32.mrb[19].mxu1  ;;  %v1791_v32 = vpop.f32.mrb[23].mxu0 }
 0x52a   :  { %v4118_v33 = vmul.f32 -1.442695, %v4228_v27  ;;  %v4119_v35 = vmul.f32 -1.442695, %v4230_v34 }
 0x52b   :  { %4582 = vpow2.f32 %v4117_v30 }
 0x52c   :  { %4584 = vpow2.f32 %v4118_v33 }
 0x52d   :  { %4586 = vpow2.f32 %v4119_v35 }
 0x52e   :  { %4588 = vtanh.f32 %v4229_v37 }
 0x535   :  { %v4583_v55 = vpop.eup %4582 }
 0x536   :  { %v4585_v53 = vpop.eup %4584  ;;  %v1803_v52 = vadd.f32 1.0, %v4583_v55 }
 0x537   :  { %v1804_v12 = vadd.f32 1.0, %v4585_v53  ;;  %v4587_v60 = vpop.eup %4586 }
 0x538   :  { %4590 = vrcp.f32 %v1803_v52  ;;  %v4589_v15 = vpop.eup %4588  ;;  %v1813_v27 = vadd.f32 1.0, %v4587_v60 }
 0x539   :  { %4592 = vrcp.f32 %v1804_v12 }
 0x53a   :  { %4594 = vrcp.f32 %v1813_v27  ;;  %v7499_v27 = vld [vmem:[#allocation63_spill] sm:$0xff] }
 0x542   :  { %v4591_v45 = vpop.eup %4590 }
 0x543   :  { %v4593_v19 = vpop.eup %4592  ;;  %v1817_v22 = vmul.f32 %v4591_v45, %v4589_v15 }
 0x544   :  { %v1816_v28 = vmul.f32 %v4593_v19, %v5746_v46  ;;  %v4595_v45 = vpop.eup %4594 }
 0x546   :  { %v5881_v23 = vadd.f32 %v1817_v22, %v1816_v28  ;;  %v1863_v29 = vpop.f32.mrb[20].mxu1  ;;  %v1904_v16 = vpop.f32.mrb[24].mxu0  ;;  %v1496_v28 = vrot.slane %v5798_v48, %v7499_v27 }
 0x547   :  { %v1915_v30 = vrot.slane %v1863_v29, 6  ;;  %v1865_v31 = vpop.f32.mrb[21].mxu1  ;;  %v1906_v32 = vpop.f32.mrb[25].mxu0  ;;  %v1917_v19 = vrot.slane %v1904_v16, 6 }
 0x548   :  { %4596 = vtanh.f32 %v5881_v23  ;;  %v1916_v33 = vrot.slane %v1865_v31, 6  ;;  %v1867_v34 = vpop.f32.mrb[22].mxu1  ;;  %v1908_v35 = vpop.f32.mrb[26].mxu0  ;;  %v1918_v60 = vrot.slane %v1906_v32, 6 }
 0x549   :  { %v1923_v37 = vadd.f32 %v1915_v30, %v7433_v51  ;;  %v1868_v55 = vpop.f32.mrb[23].mxu1  ;;  %v1909_v53 = vpop.f32.mrb[27].mxu0  ;;  %v1925_v31 = vadd.f32 %v1917_v19, %v5546_v11 }
 0x54a   :  { %v1924_v52 = vadd.f32 %v1916_v33, %v5534_v25  ;;  %v1926_v15 = vadd.f32 %v1918_v60, %v5541_v61  ;;  %v1497_v33 = vsel %vm1490_vm15, %v1496_v28, 0.0 }
 0x54b   :  { %v4120_v46 = vmul.f32 -1.442695, %v1923_v37 }
 0x54c   :  { %v4121_v12 = vmul.f32 -1.442695, %v1924_v52  ;;  %v4122_v30 = vmul.f32 -1.442695, %v1926_v15 }
 0x54d   :  { %4598 = vpow2.f32 %v4120_v46  ;;  %v1947_v46 = vrot.slane %v5753_v43, 7  ;;  %v5990_v43 = vld [vmem:[#allocation5 + $0x84] ss:$16 sps:$4 sm:$0xff]  }
 0x54e   :  { %4600 = vpow2.f32 %v4121_v12 }
 0x54f   :  { %4602 = vpow2.f32 %v4122_v30 }
 0x550   :  { %4604 = vtanh.f32 %v1925_v31 }
 0x552   :  { %v4597_v22 = vpop.eup %4596 }
 0x553   :  { %v5890_v29 = vmul.f32 %v4597_v22, %v4595_v45 }
 0x555   :  { %v1827_v32 = vrot.slane %v5890_v29, %v7499_v27 }
 0x557   :  { %v4599_v34 = vpop.eup %4598  ;;  %v5896_v35 = vsel %vm1821_vm0, %v1827_v32, %v1497_v33  ;;  %v6035_v33 = vld [vmem:[#allocation5 + $0xe8] ss:$16 sps:$4 sm:$0xff]  }
 0x558   :  { %v4601_v16 = vpop.eup %4600  ;;  %v1933_v37 = vadd.f32 1.0, %v4599_v34  ;;  %7513 = vst [vmem:[#allocation77_spill] sm:$0xff] %v6035_v33  ;;  %v6038_v34 = vld [vmem:[#allocation7 + $0x4] ss:$16 sps:$4 sm:$0xff]  }
 0x559   :  { %v1934_v48 = vadd.f32 1.0, %v4601_v16  ;;  %v4603_v55 = vpop.eup %4602  ;;  %7514 = vst [vmem:[#allocation15_spill] sm:$0xff] %v6038_v34  ;;  %v6041_v16 = vld [vmem:[#allocation7 + $0xc] ss:$16 sps:$4 sm:$0xff]  }
 0x55a   :  { %4606 = vrcp.f32 %v1933_v37  ;;  %v4605_v53 = vpop.eup %4604  ;;  %v1943_v15 = vadd.f32 1.0, %v4603_v55  ;;  %7515 = vst [vmem:[#allocation16_spill] sm:$0xff] %v6041_v16  ;;  %v6046_v37 = vld [vmem:[#allocation7] ss:$16 sps:$4 sm:$0xff]   ;;  %v6052_v55 = vld [vmem:[#allocation7 + $0x24] ss:$16 sps:$4 sm:$0xff]  }
 0x55b   :  { %4608 = vrcp.f32 %v1934_v48  ;;  %7516 = vst [vmem:[#allocation17_spill] sm:$0xff] %v6046_v37  ;;  %v6049_v48 = vld [vmem:[#allocation7 + $0x8] ss:$16 sps:$4 sm:$0xff]   ;;  %7518 = vst [vmem:[#allocation19_spill] sm:$0xff] %v6052_v55 }
 0x55c   :  { %4610 = vrcp.f32 %v1943_v15  ;;  %7517 = vst [vmem:[#allocation18_spill] sm:$0xff] %v6049_v48  ;;  %v6072_v15 = vld [vmem:[#allocation7 + $0x40] ss:$16 sps:$4 sm:$0xff]  }
 0x55d   :  { %7524 = vst [vmem:[#allocation25_spill] sm:$0xff] %v6072_v15 }
 0x564   :  { %v4607_v52 = vpop.eup %4606 }
 0x565   :  { %v4609_v12 = vpop.eup %4608  ;;  %v1950_v60 = vmul.f32 %v4607_v52, %v4605_v53  ;;  %v6055_v53 = vld [vmem:[#allocation7 + $0x2c] ss:$16 sps:$4 sm:$0xff]   ;;  %v6060_v52 = vld [vmem:[#allocation7 + $0x20] ss:$16 sps:$4 sm:$0xff]  }
 0x566   :  { %v1949_v45 = vmul.f32 %v4609_v12, %v1947_v46  ;;  %v4611_v22 = vpop.eup %4610  ;;  %7519 = vst [vmem:[#allocation20_spill] sm:$0xff] %v6055_v53  ;;  %7520 = vst [vmem:[#allocation21_spill] sm:$0xff] %v6060_v52  ;;  %v6063_v46 = vld [vmem:[#allocation7 + $0x28] ss:$16 sps:$4 sm:$0xff]   ;;  %v6066_v12 = vld [vmem:[#allocation7 + $0x44] ss:$16 sps:$4 sm:$0xff]  }
 0x567   :  { %7521 = vst [vmem:[#allocation22_spill] sm:$0xff] %v6063_v46  ;;  %7522 = vst [vmem:[#allocation23_spill] sm:$0xff] %v6066_v12 }
 0x568   :  { %v5899_v19 = vadd.f32 %v1950_v60, %v1949_v45  ;;  %v6069_v60 = vld [vmem:[#allocation7 + $0x4c] ss:$16 sps:$4 sm:$0xff]   ;;  %v6075_v45 = vld [vmem:[#allocation7 + $0x48] ss:$16 sps:$4 sm:$0xff]  }
 0x569   :  { %7523 = vst [vmem:[#allocation24_spill] sm:$0xff] %v6069_v60  ;;  %7525 = vst [vmem:[#allocation26_spill] sm:$0xff] %v6075_v45 }
 0x56a   :  { %4612 = vtanh.f32 %v5899_v19 }
 0x574   :  { %v4613_v28 = vpop.eup %4612 }
 0x575   :  { %v1953_v30 = vmul.f32 %v4613_v28, %v4611_v22  ;;  %v6078_v22 = vld [vmem:[#allocation7 + $0x64] ss:$16 sps:$4 sm:$0xff]   ;;  %v6081_v28 = vld [vmem:[#allocation7 + $0x6c] ss:$16 sps:$4 sm:$0xff]  }
 0x576   :  { %7526 = vst [vmem:[#allocation27_spill] sm:$0xff] %v6078_v22  ;;  %7527 = vst [vmem:[#allocation28_spill] sm:$0xff] %v6081_v28 }
 0x577   :  { %v1954_v31 = vpack.c.bf16 %v1953_v30, %v1953_v30  ;;  %v6084_v30 = vld [vmem:[#allocation7 + $0x60] ss:$16 sps:$4 sm:$0xff]  }
 0x578   :  { %7528 = vst [vmem:[#allocation29_spill] sm:$0xff] %v6084_v30 }
 0x579   :  { %v5902_v32 = vrot.slane %v1954_v31, 1  ;;  %v6087_v31 = vld [vmem:[#allocation7 + $0x68] ss:$16 sps:$4 sm:$0xff]  }
 0x57a   :  { %7529 = vst [vmem:[#allocation30_spill] sm:$0xff] %v6087_v31 }
 0x57b   :  { %1991 = vmatmul.mubr.bf16.vlgmr.msra.gmra.mrb[24].mxu1 %v5902_v32  ;;  %2032 = vmatmul.mubr.bf16.vlgmr.msra.gmra.mrb[28].mxu0 %v5902_v32 }
 0x57c   :  { %2042 = vmatpush1.bf16.msra.mxu1 %v5552_v5  ;;  %2083 = vmatpush1.bf16.msra.mxu0 %v5554_v13  ;;  %v2040_v5 = vpack.c.bf16 %v5890_v29, %v5890_v29  ;;  %v5940_v13 = vld [vmem:[#allocation5 + $0x4] ss:$16 sps:$4 sm:$0xff]   ;;  %v6032_v29 = vld [vmem:[#allocation5 + $0xe0] ss:$16 sps:$4 sm:$0xff]  }
 0x57d   :  { %2043 = vmatprep.subr.bf16.mxu1 %v5558_v7  ;;  %2084 = vmatprep.subr.bf16.mxu0 %v5560_v17  ;;  %v5943_v7 = vld [vmem:[#allocation5 + $0xc] ss:$16 sps:$4 sm:$0xff]   ;;  %v5949_v17 = vld [vmem:[#allocation5 + $0x8] ss:$16 sps:$4 sm:$0xff]   ;;  %7512 = vst [vmem:[#allocation76_spill] sm:$0xff] %v6032_v29 }
 0x57e   :  { %2073 = vmatprep.mubr.bf16.mxu1 %v7387_v40  ;;  %2114 = vmatprep.mubr.bf16.mxu0 %v7387_v40 }
 0x580   :  { %2044 = vmatpush1.bf16.msra.mxu1 %v5566_v3  ;;  %2085 = vmatpush1.bf16.msra.mxu0 %v5568_v6  ;;  %v5952_v3 = vld [vmem:[#allocation5 + $0x24] ss:$16 sps:$4 sm:$0xff]   ;;  %v5955_v6 = vld [vmem:[#allocation5 + $0x2c] ss:$16 sps:$4 sm:$0xff]  }
 0x581   :  { %2045 = vmatprep.subr.bf16.mxu1 %v5572_v20  ;;  %2086 = vmatprep.subr.bf16.mxu0 %v5574_v63  ;;  %v5960_v20 = vld [vmem:[#allocation5 + $0x20] ss:$16 sps:$4 sm:$0xff]   ;;  %v5963_v63 = vld [vmem:[#allocation5 + $0x28] ss:$16 sps:$4 sm:$0xff]  }
 0x584   :  { %2046 = vmatpush1.bf16.msra.mxu1 %v7435_v58  ;;  %2087 = vmatpush1.bf16.msra.mxu0 %v7436_v41  ;;  %v5993_v58 = vld [vmem:[#allocation5 + $0x8c] ss:$16 sps:$4 sm:$0xff]   ;;  %v5996_v41 = vld [vmem:[#allocation5 + $0x80] ss:$16 sps:$4 sm:$0xff]  }
 0x585   :  { %2047 = vmatprep.subr.bf16.mxu1 %v7437_v56  ;;  %2088 = vmatprep.subr.bf16.mxu0 %v7438_v59  ;;  %7500 = vst [vmem:[#allocation64_spill] sm:$0xff] %v5996_v41  ;;  %v5999_v56 = vld [vmem:[#allocation5 + $0x88] ss:$16 sps:$4 sm:$0xff]   ;;  %v6002_v59 = vld [vmem:[#allocation5 + $0xa4] ss:$16 sps:$4 sm:$0xff]  }
 0x586   :  { %7501 = vst [vmem:[#allocation65_spill] sm:$0xff] %v5999_v56  ;;  %7502 = vst [vmem:[#allocation66_spill] sm:$0xff] %v6002_v59 }
 0x588   :  { %2048 = vmatpush1.bf16.msra.mxu1 %v7439_v54  ;;  %2089 = vmatpush1.bf16.msra.mxu0 %v7440_v39  ;;  %v6005_v54 = vld [vmem:[#allocation5 + $0xac] ss:$16 sps:$4 sm:$0xff]   ;;  %v6008_v39 = vld [vmem:[#allocation5 + $0xa0] ss:$16 sps:$4 sm:$0xff]  }
 0x589   :  { %2049 = vmatprep.subr.bf16.mxu1 %v7441_v38  ;;  %2090 = vmatprep.subr.bf16.mxu0 %v7442_v42  ;;  %7503 = vst [vmem:[#allocation67_spill] sm:$0xff] %v6005_v54  ;;  %7504 = vst [vmem:[#allocation68_spill] sm:$0xff] %v6008_v39  ;;  %v6011_v38 = vld [vmem:[#allocation5 + $0xa8] ss:$16 sps:$4 sm:$0xff]   ;;  %v6014_v42 = vld [vmem:[#allocation5 + $0xc4] ss:$16 sps:$4 sm:$0xff]  }
 0x58a   :  { %7505 = vst [vmem:[#allocation69_spill] sm:$0xff] %v6011_v38  ;;  %7506 = vst [vmem:[#allocation70_spill] sm:$0xff] %v6014_v42 }
 0x58c   :  { %2050 = vmatpush1.bf16.msra.mxu1 %v7443_v44  ;;  %2091 = vmatpush1.bf16.msra.mxu0 %v7444_v2  ;;  %v6017_v44 = vld [vmem:[#allocation5 + $0xcc] ss:$16 sps:$4 sm:$0xff]   ;;  %v6020_v2 = vld [vmem:[#allocation5 + $0xc0] ss:$16 sps:$4 sm:$0xff]  }
 0x58d   :  { %2051 = vmatprep.subr.bf16.mxu1 %v7445_v57  ;;  %2092 = vmatprep.subr.bf16.mxu0 %v7446_v47  ;;  %7507 = vst [vmem:[#allocation71_spill] sm:$0xff] %v6017_v44  ;;  %7508 = vst [vmem:[#allocation72_spill] sm:$0xff] %v6020_v2  ;;  %v6023_v57 = vld [vmem:[#allocation5 + $0xc8] ss:$16 sps:$4 sm:$0xff]   ;;  %v6026_v47 = vld [vmem:[#allocation5 + $0xe4] ss:$16 sps:$4 sm:$0xff]  }
 0x58e   :  { %7509 = vst [vmem:[#allocation73_spill] sm:$0xff] %v6023_v57  ;;  %7510 = vst [vmem:[#allocation74_spill] sm:$0xff] %v6026_v47 }
 0x590   :  { %2052 = vmatpush1.bf16.msra.mxu1 %v7447_v50  ;;  %2093 = vmatpush1.bf16.msra.mxu0 %v5618_v1  ;;  %v5978_v1 = vld [vmem:[#allocation5 + $0x64] ss:$16 sps:$4 sm:$0xff]   ;;  %v6029_v50 = vld [vmem:[#allocation5 + $0xec] ss:$16 sps:$4 sm:$0xff]  }
 0x591   :  { %2053 = vmatprep.subr.bf16.mxu1 %v5622_v4  ;;  %2094 = vmatprep.subr.bf16.mxu0 %v5624_v10  ;;  %v5981_v4 = vld [vmem:[#allocation5 + $0x6c] ss:$16 sps:$4 sm:$0xff]   ;;  %v5984_v10 = vld [vmem:[#allocation5 + $0x60] ss:$16 sps:$4 sm:$0xff]   ;;  %7511 = vst [vmem:[#allocation75_spill] sm:$0xff] %v6029_v50 }
 0x594   :  { %2054 = vmatpush1.bf16.msra.mxu1 %v5628_v9  ;;  %2095 = vmatpush1.bf16.msra.mxu0 %v5630_v62  ;;  %v5946_v62 = vld [vmem:[#allocation5] ss:$16 sps:$4 sm:$0xff]   ;;  %v5987_v9 = vld [vmem:[#allocation5 + $0x68] ss:$16 sps:$4 sm:$0xff]  }
 0x595   :  { %2055 = vmatprep.subr.bf16.mxu1 %v5634_v21  ;;  %2096 = vmatprep.subr.bf16.mxu0 %v5636_v24  ;;  %v5966_v21 = vld [vmem:[#allocation5 + $0x44] ss:$16 sps:$4 sm:$0xff]   ;;  %v5969_v24 = vld [vmem:[#allocation5 + $0x4c] ss:$16 sps:$4 sm:$0xff]  }
 0x598   :  { %2056 = vmatpush1.bf16.msra.mxu1 %v5640_v14  ;;  %2097 = vmatpush1.bf16.msra.mxu0 %v5642_v0  ;;  %v5972_v14 = vld [vmem:[#allocation5 + $0x40] ss:$16 sps:$4 sm:$0xff]   ;;  %v5975_v0 = vld [vmem:[#allocation5 + $0x48] ss:$16 sps:$4 sm:$0xff]  }
 0x599   :  { %2159 = vmatprep.subr.bf16.mxu1 %v5940_v13  ;;  %2200 = vmatprep.subr.bf16.mxu0 %v5943_v7 }
 0x59b   :  { %2074 = vmatmul.mubr.bf16.vlgmr.msra.gmra.mrb[24].mxu1 %v2040_v5  ;;  %2115 = vmatmul.mubr.bf16.vlgmr.msra.gmra.mrb[28].mxu0 %v2040_v5  ;;  %v6093_v5 = vld [vmem:[#allocation7 + $0x8c] ss:$16 sps:$4 sm:$0xff]  }
 0x59c   :  { %2160 = vmatpush1.bf16.msra.mxu1 %v5946_v62  ;;  %2201 = vmatpush1.bf16.msra.mxu0 %v5949_v17  ;;  %7531 = vst [vmem:[#allocation32_spill] sm:$0xff] %v6093_v5 }
 0x59d   :  { %2161 = vmatprep.subr.bf16.mxu1 %v5952_v3  ;;  %2202 = vmatprep.subr.bf16.mxu0 %v5955_v6 }
 0x59e   :  { %2191 = vmatprep.mubr.bf16.mxu1 %v7387_v40  ;;  %2232 = vmatprep.mubr.bf16.mxu0 %v7387_v40 }
 0x5a0   :  { %2162 = vmatpush1.bf16.msra.mxu1 %v5960_v20  ;;  %2203 = vmatpush1.bf16.msra.mxu0 %v5963_v63 }
 0x5a1   :  { %2163 = vmatprep.subr.bf16.mxu1 %v5966_v21  ;;  %2204 = vmatprep.subr.bf16.mxu0 %v5969_v24 }
 0x5a4   :  { %2164 = vmatpush1.bf16.msra.mxu1 %v5972_v14  ;;  %2205 = vmatpush1.bf16.msra.mxu0 %v5975_v0 }
 0x5a5   :  { %2165 = vmatprep.subr.bf16.mxu1 %v5978_v1  ;;  %2206 = vmatprep.subr.bf16.mxu0 %v5981_v4 }
 0x5a8   :  { %2166 = vmatpush1.bf16.msra.mxu1 %v5984_v10  ;;  %2207 = vmatpush1.bf16.msra.mxu0 %v5987_v9 }
 0x5a9   :  { %2167 = vmatprep.subr.bf16.mxu1 %v5990_v43  ;;  %2208 = vmatprep.subr.bf16.mxu0 %v5993_v58 }
 0x5ac   :  { %2168 = vmatpush1.bf16.msra.mxu1 %v5996_v41  ;;  %2209 = vmatpush1.bf16.msra.mxu0 %v5999_v56 }
 0x5ad   :  { %2169 = vmatprep.subr.bf16.mxu1 %v6002_v59  ;;  %2210 = vmatprep.subr.bf16.mxu0 %v6005_v54 }
 0x5b0   :  { %2170 = vmatpush1.bf16.msra.mxu1 %v6008_v39  ;;  %2211 = vmatpush1.bf16.msra.mxu0 %v6011_v38 }
 0x5b1   :  { %2171 = vmatprep.subr.bf16.mxu1 %v6014_v42  ;;  %2212 = vmatprep.subr.bf16.mxu0 %v6017_v44 }
 0x5b4   :  { %2172 = vmatpush1.bf16.msra.mxu1 %v6020_v2  ;;  %2213 = vmatpush1.bf16.msra.mxu0 %v6023_v57 }
 0x5b5   :  { %2173 = vmatprep.subr.bf16.mxu1 %v6026_v47  ;;  %2214 = vmatprep.subr.bf16.mxu0 %v6029_v50 }
 0x5b8   :  { %2174 = vmatpush1.bf16.msra.mxu1 %v6032_v29  ;;  %2215 = vmatpush1.bf16.msra.mxu0 %v6035_v33 }
 0x5b9   :  { %2290 = vmatprep.subr.bf16.mxu1 %v6038_v34  ;;  %2331 = vmatprep.subr.bf16.mxu0 %v6041_v16 }
 0x5bb   :  { %2192 = vmatmul.mubr.bf16.vlgmr.msra.gmra.mrb[28].mxu1 %v5902_v32  ;;  %2233 = vmatmul.mubr.bf16.vlgmr.msra.gmra.mrb[32].mxu0 %v5902_v32  ;;  %v6090_v32 = vld [vmem:[#allocation7 + $0x84] ss:$16 sps:$4 sm:$0xff]  }
 0x5bc   :  { %2291 = vmatpush1.bf16.msra.mxu1 %v6046_v37  ;;  %2332 = vmatpush1.bf16.msra.mxu0 %v6049_v48  ;;  %7530 = vst [vmem:[#allocation31_spill] sm:$0xff] %v6090_v32 }
 0x5bd   :  { %2292 = vmatprep.subr.bf16.mxu1 %v6052_v55  ;;  %2333 = vmatprep.subr.bf16.mxu0 %v6055_v53 }
 0x5be   :  { %2322 = vmatprep.mubr.bf16.mxu1 %v7387_v40  ;;  %2363 = vmatprep.mubr.bf16.mxu0 %v7387_v40 }
 0x5c0   :  { %2293 = vmatpush1.bf16.msra.mxu1 %v6060_v52  ;;  %2334 = vmatpush1.bf16.msra.mxu0 %v6063_v46 }
 0x5c1   :  { %2294 = vmatprep.subr.bf16.mxu1 %v6066_v12  ;;  %2335 = vmatprep.subr.bf16.mxu0 %v6069_v60 }
 0x5c4   :  { %2295 = vmatpush1.bf16.msra.mxu1 %v6072_v15  ;;  %2336 = vmatpush1.bf16.msra.mxu0 %v6075_v45 }
 0x5c5   :  { %2296 = vmatprep.subr.bf16.mxu1 %v6078_v22  ;;  %2337 = vmatprep.subr.bf16.mxu0 %v6081_v28  ;;  %v6096_v22 = vld [vmem:[#allocation7 + $0x80] ss:$16 sps:$4 sm:$0xff]   ;;  %v6099_v28 = vld [vmem:[#allocation7 + $0x88] ss:$16 sps:$4 sm:$0xff]  }
 0x5c6   :  { %7532 = vst [vmem:[#allocation33_spill] sm:$0xff] %v6096_v22  ;;  %7533 = vst [vmem:[#allocation34_spill] sm:$0xff] %v6099_v28 }
 0x5c8   :  { %2297 = vmatpush1.bf16.msra.mxu1 %v6084_v30  ;;  %2338 = vmatpush1.bf16.msra.mxu0 %v6087_v31  ;;  %v6102_v30 = vld [vmem:[#allocation7 + $0xa4] ss:$16 sps:$4 sm:$0xff]   ;;  %v6105_v31 = vld [vmem:[#allocation7 + $0xac] ss:$16 sps:$4 sm:$0xff]  }
 0x5c9   :  { %2298 = vmatprep.subr.bf16.mxu1 %v6090_v32  ;;  %2339 = vmatprep.subr.bf16.mxu0 %v6093_v5  ;;  %7534 = vst [vmem:[#allocation35_spill] sm:$0xff] %v6102_v30  ;;  %7535 = vst [vmem:[#allocation36_spill] sm:$0xff] %v6105_v31  ;;  %v6108_v32 = vld [vmem:[#allocation7 + $0xa0] ss:$16 sps:$4 sm:$0xff]   ;;  %v6111_v5 = vld [vmem:[#allocation7 + $0xa8] ss:$16 sps:$4 sm:$0xff]  }
 0x5ca   :  { %7536 = vst [vmem:[#allocation37_spill] sm:$0xff] %v6108_v32  ;;  %7537 = vst [vmem:[#allocation38_spill] sm:$0xff] %v6111_v5 }
 0x5cc   :  { %2299 = vmatpush1.bf16.msra.mxu1 %v6096_v22  ;;  %2340 = vmatpush1.bf16.msra.mxu0 %v6099_v28  ;;  %v6114_v22 = vld [vmem:[#allocation7 + $0xc4] ss:$16 sps:$4 sm:$0xff]   ;;  %v6117_v28 = vld [vmem:[#allocation7 + $0xcc] ss:$16 sps:$4 sm:$0xff]  }
 0x5cd   :  { %2300 = vmatprep.subr.bf16.mxu1 %v6102_v30  ;;  %2341 = vmatprep.subr.bf16.mxu0 %v6105_v31  ;;  %7538 = vst [vmem:[#allocation39_spill] sm:$0xff] %v6114_v22  ;;  %7539 = vst [vmem:[#allocation40_spill] sm:$0xff] %v6117_v28  ;;  %v6120_v30 = vld [vmem:[#allocation7 + $0xc0] ss:$16 sps:$4 sm:$0xff]   ;;  %v6123_v31 = vld [vmem:[#allocation7 + $0xc8] ss:$16 sps:$4 sm:$0xff]  }
 0x5ce   :  { %7540 = vst [vmem:[#allocation41_spill] sm:$0xff] %v6120_v30  ;;  %7541 = vst [vmem:[#allocation42_spill] sm:$0xff] %v6123_v31 }
 0x5d0   :  { %2301 = vmatpush1.bf16.msra.mxu1 %v6108_v32  ;;  %2342 = vmatpush1.bf16.msra.mxu0 %v6111_v5  ;;  %v6126_v32 = vld [vmem:[#allocation7 + $0xe4] ss:$16 sps:$4 sm:$0xff]   ;;  %v6129_v5 = vld [vmem:[#allocation7 + $0xec] ss:$16 sps:$4 sm:$0xff]  }
 0x5d1   :  { %2302 = vmatprep.subr.bf16.mxu1 %v6114_v22  ;;  %2343 = vmatprep.subr.bf16.mxu0 %v6117_v28  ;;  %7542 = vst [vmem:[#allocation43_spill] sm:$0xff] %v6126_v32  ;;  %7543 = vst [vmem:[#allocation44_spill] sm:$0xff] %v6129_v5  ;;  %v6132_v22 = vld [vmem:[#allocation7 + $0xe0] ss:$16 sps:$4 sm:$0xff]   ;;  %v6135_v28 = vld [vmem:[#allocation7 + $0xe8] ss:$16 sps:$4 sm:$0xff]  }
 0x5d2   :  { %7544 = vst [vmem:[#allocation45_spill] sm:$0xff] %v6132_v22  ;;  %7545 = vst [vmem:[#allocation46_spill] sm:$0xff] %v6135_v28 }
 0x5d4   :  { %2303 = vmatpush1.bf16.msra.mxu1 %v6120_v30  ;;  %2344 = vmatpush1.bf16.msra.mxu0 %v6123_v31  ;;  %v6138_v30 = vld [vmem:[#allocation8 + $0x4] ss:$16 sps:$4 sm:$0xff]   ;;  %v6141_v31 = vld [vmem:[#allocation8 + $0xc] ss:$16 sps:$4 sm:$0xff]  }
 0x5d5   :  { %2304 = vmatprep.subr.bf16.mxu1 %v6126_v32  ;;  %2345 = vmatprep.subr.bf16.mxu0 %v6129_v5  ;;  %7546 = vst [vmem:[#allocation47_spill] sm:$0xff] %v6138_v30  ;;  %7547 = vst [vmem:[#allocation48_spill] sm:$0xff] %v6141_v31 }
 0x5d8   :  { %2305 = vmatpush1.bf16.msra.mxu1 %v6132_v22  ;;  %2346 = vmatpush1.bf16.msra.mxu0 %v6135_v28 }
 0x5d9   :  { %2373 = vmatprep.subr.bf16.mxu1 %v6138_v30  ;;  %2414 = vmatprep.subr.bf16.mxu0 %v6141_v31 }
 0x66e   :  { %v2075_v32 = vpop.f32.mrb[24].mxu1  ;;  %v2116_v45 = vpop.f32.mrb[28].mxu0 }
 0x66f   :  { %v4231_v5 = vadd.f32 %v2075_v32, %v7496_v18  ;;  %v2077_v15 = vpop.f32.mrb[25].mxu1  ;;  %v2118_v60 = vpop.f32.mrb[29].mxu0  ;;  %v4233_v31 = vadd.f32 %v2116_v45, %v7498_v36 }
 0x670   :  { %v4232_v22 = vadd.f32 %v2077_v15, %v7497_v26  ;;  %v2079_v12 = vpop.f32.mrb[26].mxu1  ;;  %v2120_v46 = vpop.f32.mrb[30].mxu0  ;;  %v4234_v30 = vadd.f32 %v2118_v60, %v5759_v49 }
 0x671   :  { %v4123_v52 = vmul.f32 -1.442695, %v4231_v5  ;;  %v2080_v28 = vpop.f32.mrb[27].mxu1  ;;  %v2121_v53 = vpop.f32.mrb[31].mxu0 }
 0x672   :  { %v4124_v55 = vmul.f32 -1.442695, %v4232_v22  ;;  %v4125_v48 = vmul.f32 -1.442695, %v4234_v30 }
 0x673   :  { %4614 = vpow2.f32 %v4123_v52 }
 0x674   :  { %4616 = vpow2.f32 %v4124_v55 }
 0x675   :  { %4618 = vpow2.f32 %v4125_v48 }
 0x676   :  { %4620 = vtanh.f32 %v4233_v31 }
 0x67d   :  { %v4615_v37 = vpop.eup %4614 }
 0x67e   :  { %v4617_v16 = vpop.eup %4616  ;;  %v2133_v32 = vadd.f32 1.0, %v4615_v37 }
 0x67f   :  { %v2134_v18 = vadd.f32 1.0, %v4617_v16  ;;  %v4619_v46 = vpop.eup %4618 }
 0x680   :  { %4622 = vrcp.f32 %v2133_v32  ;;  %v4621_v12 = vpop.eup %4620  ;;  %v2143_v52 = vadd.f32 1.0, %v4619_v46 }
 0x681   :  { %4624 = vrcp.f32 %v2134_v18 }
 0x682   :  { %4626 = vrcp.f32 %v2143_v52 }
 0x68a   :  { %v4623_v15 = vpop.eup %4622 }
 0x68b   :  { %v4625_v53 = vpop.eup %4624  ;;  %v2147_v22 = vmul.f32 %v4623_v15, %v4621_v12 }
 0x68c   :  { %v2146_v55 = vmul.f32 %v4625_v53, %v5881_v23  ;;  %v4627_v52 = vpop.eup %4626 }
 0x68e   :  { %v6149_v60 = vadd.f32 %v2147_v22, %v2146_v55  ;;  %v2193_v28 = vpop.f32.mrb[28].mxu1  ;;  %v2234_v45 = vpop.f32.mrb[32].mxu0 }
 0x68f   :  { %v2245_v30 = vrot.slane %v2193_v28, 5  ;;  %v2195_v37 = vpop.f32.mrb[29].mxu1  ;;  %v2236_v48 = vpop.f32.mrb[33].mxu0  ;;  %v2247_v55 = vrot.slane %v2234_v45, 5 }
 0x690   :  { %7548 = vst [vmem:[#allocation49_spill] sm:$0xff] %v6149_v60  ;;  %4628 = vtanh.f32 %v6149_v60  ;;  %v2246_v16 = vrot.slane %v2195_v37, 5  ;;  %v2197_v18 = vpop.f32.mrb[30].mxu1  ;;  %v2238_v31 = vpop.f32.mrb[34].mxu0  ;;  %v2248_v53 = vrot.slane %v2236_v48, 5 }
 0x691   :  { %v2253_v5 = vadd.f32 %v2245_v30, %v7433_v51  ;;  %v2198_v32 = vpop.f32.mrb[31].mxu1  ;;  %v2239_v12 = vpop.f32.mrb[35].mxu0  ;;  %v2255_v30 = vadd.f32 %v2247_v55, %v5546_v11 }
 0x692   :  { %v2254_v46 = vadd.f32 %v2246_v16, %v5534_v25  ;;  %v2256_v22 = vadd.f32 %v2248_v53, %v5541_v61 }
 0x693   :  { %v4126_v23 = vmul.f32 -1.442695, %v2253_v5 }
 0x694   :  { %v4127_v15 = vmul.f32 -1.442695, %v2254_v46  ;;  %v4128_v37 = vmul.f32 -1.442695, %v2256_v22 }
 0x695   :  { %4630 = vpow2.f32 %v4126_v23  ;;  %v2277_v23 = vrot.slane %v5899_v19, 7  ;;  %v6172_v19 = vld [vmem:[#allocation8] ss:$16 sps:$4 sm:$0xff]  }
 0x696   :  { %4632 = vpow2.f32 %v4127_v15 }
 0x697   :  { %4634 = vpow2.f32 %v4128_v37 }
 0x698   :  { %4636 = vtanh.f32 %v2255_v30 }
 0x69a   :  { %v4629_v28 = vpop.eup %4628 }
 0x69b   :  { %v6155_v60 = vmul.f32 %v4629_v28, %v4627_v52 }
 0x69d   :  { %v2157_v16 = vrot.slane %v6155_v60, %v7499_v27 }
 0x69f   :  { %v4631_v18 = vpop.eup %4630  ;;  %v6162_v48 = vsel %vm2151_vm2, %v2157_v16, %v5896_v35 }
 0x6a0   :  { %v4633_v31 = vpop.eup %4632  ;;  %v2263_v5 = vadd.f32 1.0, %v4631_v18 }
 0x6a1   :  { %v2264_v45 = vadd.f32 1.0, %v4633_v31  ;;  %v4635_v32 = vpop.eup %4634  ;;  %v6175_v31 = vld [vmem:[#allocation8 + $0x8] ss:$16 sps:$4 sm:$0xff]  }
 0x6a2   :  { %4638 = vrcp.f32 %v2263_v5  ;;  %v4637_v12 = vpop.eup %4636  ;;  %v2273_v22 = vadd.f32 1.0, %v4635_v32  ;;  %v6178_v5 = vld [vmem:[#allocation8 + $0x24] ss:$16 sps:$4 sm:$0xff]   ;;  %v6186_v32 = vld [vmem:[#allocation8 + $0x20] ss:$16 sps:$4 sm:$0xff]  }
 0x6a3   :  { %4640 = vrcp.f32 %v2264_v45  ;;  %v6181_v45 = vld [vmem:[#allocation8 + $0x2c] ss:$16 sps:$4 sm:$0xff]  }
 0x6a4   :  { %4642 = vrcp.f32 %v2273_v22  ;;  %v6204_v22 = vld [vmem:[#allocation8 + $0x64] ss:$16 sps:$4 sm:$0xff]  }
 0x6ac   :  { %v4639_v46 = vpop.eup %4638 }
 0x6ad   :  { %v4641_v15 = vpop.eup %4640  ;;  %v2280_v53 = vmul.f32 %v4639_v46, %v4637_v12  ;;  %v6189_v12 = vld [vmem:[#allocation8 + $0x28] ss:$16 sps:$4 sm:$0xff]   ;;  %v6192_v46 = vld [vmem:[#allocation8 + $0x44] ss:$16 sps:$4 sm:$0xff]  }
 0x6ae   :  { %v2279_v52 = vmul.f32 %v4641_v15, %v2277_v23  ;;  %v4643_v35 = vpop.eup %4642  ;;  %v6195_v23 = vld [vmem:[#allocation8 + $0x4c] ss:$16 sps:$4 sm:$0xff]   ;;  %v6198_v15 = vld [vmem:[#allocation8 + $0x40] ss:$16 sps:$4 sm:$0xff]  }
 0x6b0   :  { %v6165_v55 = vadd.f32 %v2280_v53, %v2279_v52  ;;  %v6201_v53 = vld [vmem:[#allocation8 + $0x48] ss:$16 sps:$4 sm:$0xff]   ;;  %v6207_v52 = vld [vmem:[#allocation8 + $0x6c] ss:$16 sps:$4 sm:$0xff]  }
 0x6b1   :  { %7549 = vst [vmem:[#allocation50_spill] sm:$0xff] %v6207_v52 }
 0x6b2   :  { %4644 = vtanh.f32 %v6165_v55 }
 0x6bc   :  { %v4645_v28 = vpop.eup %4644 }
 0x6bd   :  { %v2283_v37 = vmul.f32 %v4645_v28, %v4643_v35  ;;  %v6210_v35 = vld [vmem:[#allocation8 + $0x60] ss:$16 sps:$4 sm:$0xff]   ;;  %v6213_v28 = vld [vmem:[#allocation8 + $0x68] ss:$16 sps:$4 sm:$0xff]  }
 0x6be   :  { %7550 = vst [vmem:[#allocation51_spill] sm:$0xff] %v6210_v35  ;;  %7551 = vst [vmem:[#allocation52_spill] sm:$0xff] %v6213_v28 }
 0x6bf   :  { %v2284_v30 = vpack.c.bf16 %v2283_v37, %v2283_v37  ;;  %v6216_v37 = vld [vmem:[#allocation8 + $0x84] ss:$16 sps:$4 sm:$0xff]  }
 0x6c0   :  { %7552 = vst [vmem:[#allocation53_spill] sm:$0xff] %v6216_v37 }
 0x6c1   :  { %v2286_v16 = vshrl.u32 %v2284_v30, 16  ;;  %v6219_v30 = vld [vmem:[#allocation8 + $0x8c] ss:$16 sps:$4 sm:$0xff]  }
 0x6c2   :  { %7553 = vst [vmem:[#allocation54_spill] sm:$0xff] %v6219_v30 }
 0x6c3   :  { %v6168_v18 = vrot.slane %v2286_v16, 1  ;;  %v6222_v16 = vld [vmem:[#allocation8 + $0x80] ss:$16 sps:$4 sm:$0xff]  }
 0x6c4   :  { %7554 = vst [vmem:[#allocation55_spill] sm:$0xff] %v6222_v16 }
 0x6c5   :  { %2323 = vmatmul.mubr.bf16.vlgmr.msra.gmra.mrb[32].mxu1 %v6168_v18  ;;  %2364 = vmatmul.mubr.bf16.vlgmr.msra.gmra.mrb[36].mxu0 %v6168_v18 }
 0x6c6   :  { %2374 = vmatpush1.bf16.msra.mxu1 %v6172_v19  ;;  %2415 = vmatpush1.bf16.msra.mxu0 %v6175_v31 }
 0x6c7   :  { %2375 = vmatprep.subr.bf16.mxu1 %v6178_v5  ;;  %2416 = vmatprep.subr.bf16.mxu0 %v6181_v45 }
 0x6c8   :  { %2405 = vmatprep.mubr.bf16.mxu1 %v7387_v40  ;;  %2446 = vmatprep.mubr.bf16.mxu0 %v7387_v40 }
 0x6ca   :  { %2376 = vmatpush1.bf16.msra.mxu1 %v6186_v32  ;;  %2417 = vmatpush1.bf16.msra.mxu0 %v6189_v12 }
 0x6cb   :  { %2377 = vmatprep.subr.bf16.mxu1 %v6192_v46  ;;  %2418 = vmatprep.subr.bf16.mxu0 %v6195_v23 }
 0x6ce   :  { %2378 = vmatpush1.bf16.msra.mxu1 %v6198_v15  ;;  %2419 = vmatpush1.bf16.msra.mxu0 %v6201_v53 }
 0x6cf   :  { %2379 = vmatprep.subr.bf16.mxu1 %v6204_v22  ;;  %2420 = vmatprep.subr.bf16.mxu0 %v6207_v52  ;;  %v6225_v52 = vld [vmem:[#allocation8 + $0x88] ss:$16 sps:$4 sm:$0xff]  }
 0x6d0   :  { %7555 = vst [vmem:[#allocation56_spill] sm:$0xff] %v6225_v52 }
 0x6d2   :  { %2380 = vmatpush1.bf16.msra.mxu1 %v6210_v35  ;;  %2421 = vmatpush1.bf16.msra.mxu0 %v6213_v28  ;;  %v6228_v35 = vld [vmem:[#allocation8 + $0xa4] ss:$16 sps:$4 sm:$0xff]   ;;  %v6231_v28 = vld [vmem:[#allocation8 + $0xac] ss:$16 sps:$4 sm:$0xff]  }
 0x6d3   :  { %2381 = vmatprep.subr.bf16.mxu1 %v6216_v37  ;;  %2422 = vmatprep.subr.bf16.mxu0 %v6219_v30  ;;  %7556 = vst [vmem:[#allocation57_spill] sm:$0xff] %v6228_v35  ;;  %7557 = vst [vmem:[#allocation58_spill] sm:$0xff] %v6231_v28  ;;  %v6234_v37 = vld [vmem:[#allocation8 + $0xa0] ss:$16 sps:$4 sm:$0xff]   ;;  %v6237_v30 = vld [vmem:[#allocation8 + $0xa8] ss:$16 sps:$4 sm:$0xff]  }
 0x6d4   :  { %7558 = vst [vmem:[#allocation59_spill] sm:$0xff] %v6234_v37  ;;  %7559 = vst [vmem:[#allocation60_spill] sm:$0xff] %v6237_v30 }
 0x6d6   :  { %2382 = vmatpush1.bf16.msra.mxu1 %v6222_v16  ;;  %2423 = vmatpush1.bf16.msra.mxu0 %v6225_v52  ;;  %v6240_v16 = vld [vmem:[#allocation8 + $0xc4] ss:$16 sps:$4 sm:$0xff]   ;;  %v6243_v52 = vld [vmem:[#allocation8 + $0xcc] ss:$16 sps:$4 sm:$0xff]  }
 0x6d7   :  { %2383 = vmatprep.subr.bf16.mxu1 %v6228_v35  ;;  %2424 = vmatprep.subr.bf16.mxu0 %v6231_v28  ;;  %7560 = vst [vmem:[#allocation61_spill] sm:$0xff] %v6240_v16  ;;  %7561 = vst [vmem:[#allocation62_spill] sm:$0xff] %v6243_v52  ;;  %v6246_v35 = vld [vmem:[#allocation8 + $0xc0] ss:$16 sps:$4 sm:$0xff]   ;;  %v6249_v28 = vld [vmem:[#allocation8 + $0xc8] ss:$16 sps:$4 sm:$0xff]  }
 0x6d8   :  { %7562 = vst [vmem:[#allocation79_spill] sm:$0xff] %v6246_v35 }
 0x6da   :  { %2384 = vmatpush1.bf16.msra.mxu1 %v6234_v37  ;;  %2425 = vmatpush1.bf16.msra.mxu0 %v6237_v30  ;;  %v6252_v37 = vld [vmem:[#allocation8 + $0xe4] ss:$16 sps:$4 sm:$0xff]   ;;  %v6255_v30 = vld [vmem:[#allocation8 + $0xec] ss:$16 sps:$4 sm:$0xff]  }
 0x6db   :  { %2385 = vmatprep.subr.bf16.mxu1 %v6240_v16  ;;  %2426 = vmatprep.subr.bf16.mxu0 %v6243_v52  ;;  %v6258_v16 = vld [vmem:[#allocation8 + $0xe0] ss:$16 sps:$4 sm:$0xff]   ;;  %v6261_v52 = vld [vmem:[#allocation8 + $0xe8] ss:$16 sps:$4 sm:$0xff]  }
 0x6de   :  { %2386 = vmatpush1.bf16.msra.mxu1 %v6246_v35  ;;  %2427 = vmatpush1.bf16.msra.mxu0 %v6249_v28  ;;  %v2372_v35 = vpack.c.bf16 %v6155_v60, %v6155_v60  ;;  %v7563_v60 = vld [vmem:[#allocation16_spill] sm:$0xff] }
 0x6df   :  { %2387 = vmatprep.subr.bf16.mxu1 %v6252_v37  ;;  %2428 = vmatprep.subr.bf16.mxu0 %v6255_v30 }
 0x6e2   :  { %2388 = vmatpush1.bf16.msra.mxu1 %v6258_v16  ;;  %2429 = vmatpush1.bf16.msra.mxu0 %v6261_v52 }
 0x6e3   :  { %2491 = vmatprep.subr.bf16.mxu1 %v5940_v13  ;;  %2532 = vmatprep.subr.bf16.mxu0 %v5943_v7 }
 0x6e5   :  { %2406 = vmatmul.mubr.bf16.vlgmr.msra.gmra.mrb[32].mxu1 %v2372_v35  ;;  %2447 = vmatmul.mubr.bf16.vlgmr.msra.gmra.mrb[36].mxu0 %v2372_v35  ;;  %v7564_v35 = vld [vmem:[#allocation17_spill] sm:$0xff] }
 0x6e6   :  { %2492 = vmatpush1.bf16.msra.mxu1 %v5946_v62  ;;  %2533 = vmatpush1.bf16.msra.mxu0 %v5949_v17 }
 0x6e7   :  { %2493 = vmatprep.subr.bf16.mxu1 %v5952_v3  ;;  %2534 = vmatprep.subr.bf16.mxu0 %v5955_v6 }
 0x6e8   :  { %2523 = vmatprep.mubr.bf16.mxu1 %v7387_v40  ;;  %2564 = vmatprep.mubr.bf16.mxu0 %v7387_v40 }
 0x6ea   :  { %2494 = vmatpush1.bf16.msra.mxu1 %v5960_v20  ;;  %2535 = vmatpush1.bf16.msra.mxu0 %v5963_v63 }
 0x6eb   :  { %2495 = vmatprep.subr.bf16.mxu1 %v5966_v21  ;;  %2536 = vmatprep.subr.bf16.mxu0 %v5969_v24 }
 0x6ee   :  { %2496 = vmatpush1.bf16.msra.mxu1 %v5972_v14  ;;  %2537 = vmatpush1.bf16.msra.mxu0 %v5975_v0 }
 0x6ef   :  { %2497 = vmatprep.subr.bf16.mxu1 %v5978_v1  ;;  %2538 = vmatprep.subr.bf16.mxu0 %v5981_v4 }
 0x6f2   :  { %2498 = vmatpush1.bf16.msra.mxu1 %v5984_v10  ;;  %2539 = vmatpush1.bf16.msra.mxu0 %v5987_v9 }
 0x6f3   :  { %2499 = vmatprep.subr.bf16.mxu1 %v5990_v43  ;;  %2540 = vmatprep.subr.bf16.mxu0 %v5993_v58 }
 0x6f6   :  { %2500 = vmatpush1.bf16.msra.mxu1 %v5996_v41  ;;  %2541 = vmatpush1.bf16.msra.mxu0 %v5999_v56 }
 0x6f7   :  { %2501 = vmatprep.subr.bf16.mxu1 %v6002_v59  ;;  %2542 = vmatprep.subr.bf16.mxu0 %v6005_v54 }
 0x6fa   :  { %2502 = vmatpush1.bf16.msra.mxu1 %v6008_v39  ;;  %2543 = vmatpush1.bf16.msra.mxu0 %v6011_v38 }
 0x6fb   :  { %2503 = vmatprep.subr.bf16.mxu1 %v6014_v42  ;;  %2544 = vmatprep.subr.bf16.mxu0 %v6017_v44  ;;  %v7578_v44 = vld [vmem:[#allocation31_spill] sm:$0xff]  ;;  %v7596_v42 = vld [vmem:[#allocation78_spill] sm:$0xff] }
 0x6fe   :  { %2504 = vmatpush1.bf16.msra.mxu1 %v6020_v2  ;;  %2545 = vmatpush1.bf16.msra.mxu0 %v6023_v57  ;;  %v7565_v2 = vld [vmem:[#allocation18_spill] sm:$0xff]  ;;  %v7566_v57 = vld [vmem:[#allocation19_spill] sm:$0xff] }
 0x6ff   :  { %2505 = vmatprep.subr.bf16.mxu1 %v6026_v47  ;;  %2546 = vmatprep.subr.bf16.mxu0 %v6029_v50  ;;  %v7567_v47 = vld [vmem:[#allocation20_spill] sm:$0xff]  ;;  %v7577_v50 = vld [vmem:[#allocation30_spill] sm:$0xff] }
 0x702   :  { %2506 = vmatpush1.bf16.msra.mxu1 %v6032_v29  ;;  %2547 = vmatpush1.bf16.msra.mxu0 %v6035_v33  ;;  %v7568_v33 = vld [vmem:[#allocation21_spill] sm:$0xff]  ;;  %v7571_v29 = vld [vmem:[#allocation24_spill] sm:$0xff] }
 0x703   :  { %2620 = vmatprep.subr.bf16.mxu1 %v6038_v34  ;;  %2661 = vmatprep.subr.bf16.mxu0 %v7563_v60  ;;  %v7569_v34 = vld [vmem:[#allocation22_spill] sm:$0xff]  ;;  %v7570_v60 = vld [vmem:[#allocation23_spill] sm:$0xff] }
 0x705   :  { %2524 = vmatmul.mubr.bf16.vlgmr.msra.gmra.mrb[36].mxu1 %v6168_v18  ;;  %2565 = vmatmul.mubr.bf16.vlgmr.msra.gmra.mrb[40].mxu0 %v6168_v18  ;;  %v7572_v18 = vld [vmem:[#allocation25_spill] sm:$0xff] }
 0x706   :  { %2621 = vmatpush1.bf16.msra.mxu1 %v7564_v35  ;;  %2662 = vmatpush1.bf16.msra.mxu0 %v7565_v2  ;;  %v7573_v35 = vld [vmem:[#allocation26_spill] sm:$0xff]  ;;  %v7574_v2 = vld [vmem:[#allocation27_spill] sm:$0xff] }
 0x707   :  { %2622 = vmatprep.subr.bf16.mxu1 %v7566_v57  ;;  %2663 = vmatprep.subr.bf16.mxu0 %v7567_v47  ;;  %v7575_v57 = vld [vmem:[#allocation28_spill] sm:$0xff]  ;;  %v7576_v47 = vld [vmem:[#allocation29_spill] sm:$0xff] }
 0x708   :  { %2652 = vmatprep.mubr.bf16.mxu1 %v7387_v40  ;;  %2693 = vmatprep.mubr.bf16.mxu0 %v7387_v40 }
 0x70a   :  { %2623 = vmatpush1.bf16.msra.mxu1 %v7568_v33  ;;  %2664 = vmatpush1.bf16.msra.mxu0 %v7569_v34  ;;  %v7579_v33 = vld [vmem:[#allocation32_spill] sm:$0xff]  ;;  %v7580_v34 = vld [vmem:[#allocation33_spill] sm:$0xff] }
 0x70b   :  { %2624 = vmatprep.subr.bf16.mxu1 %v7570_v60  ;;  %2665 = vmatprep.subr.bf16.mxu0 %v7571_v29  ;;  %v7581_v60 = vld [vmem:[#allocation34_spill] sm:$0xff]  ;;  %v7582_v29 = vld [vmem:[#allocation35_spill] sm:$0xff] }
 0x70e   :  { %2625 = vmatpush1.bf16.msra.mxu1 %v7572_v18  ;;  %2666 = vmatpush1.bf16.msra.mxu0 %v7573_v35  ;;  %v7583_v18 = vld [vmem:[#allocation36_spill] sm:$0xff]  ;;  %v7584_v35 = vld [vmem:[#allocation37_spill] sm:$0xff] }
 0x70f   :  { %2626 = vmatprep.subr.bf16.mxu1 %v7574_v2  ;;  %2667 = vmatprep.subr.bf16.mxu0 %v7575_v57  ;;  %v7585_v2 = vld [vmem:[#allocation38_spill] sm:$0xff]  ;;  %v7586_v57 = vld [vmem:[#allocation39_spill] sm:$0xff] }
 0x712   :  { %2627 = vmatpush1.bf16.msra.mxu1 %v7576_v47  ;;  %2668 = vmatpush1.bf16.msra.mxu0 %v7577_v50  ;;  %v7587_v47 = vld [vmem:[#allocation40_spill] sm:$0xff]  ;;  %v7588_v50 = vld [vmem:[#allocation41_spill] sm:$0xff] }
 0x713   :  { %2628 = vmatprep.subr.bf16.mxu1 %v7578_v44  ;;  %2669 = vmatprep.subr.bf16.mxu0 %v7579_v33  ;;  %v7589_v44 = vld [vmem:[#allocation42_spill] sm:$0xff]  ;;  %v7590_v33 = vld [vmem:[#allocation43_spill] sm:$0xff] }
 0x716   :  { %2629 = vmatpush1.bf16.msra.mxu1 %v7580_v34  ;;  %2670 = vmatpush1.bf16.msra.mxu0 %v7581_v60  ;;  %v7591_v34 = vld [vmem:[#allocation44_spill] sm:$0xff]  ;;  %v7592_v60 = vld [vmem:[#allocation45_spill] sm:$0xff] }
 0x717   :  { %2630 = vmatprep.subr.bf16.mxu1 %v7582_v29  ;;  %2671 = vmatprep.subr.bf16.mxu0 %v7583_v18  ;;  %v7593_v29 = vld [vmem:[#allocation46_spill] sm:$0xff]  ;;  %v7594_v18 = vld [vmem:[#allocation47_spill] sm:$0xff] }
 0x71a   :  { %2631 = vmatpush1.bf16.msra.mxu1 %v7584_v35  ;;  %2672 = vmatpush1.bf16.msra.mxu0 %v7585_v2  ;;  %v7595_v35 = vld [vmem:[#allocation48_spill] sm:$0xff] }
 0x71b   :  { %2632 = vmatprep.subr.bf16.mxu1 %v7586_v57  ;;  %2673 = vmatprep.subr.bf16.mxu0 %v7587_v47 }
 0x71e   :  { %2633 = vmatpush1.bf16.msra.mxu1 %v7588_v50  ;;  %2674 = vmatpush1.bf16.msra.mxu0 %v7589_v44 }
 0x71f   :  { %2634 = vmatprep.subr.bf16.mxu1 %v7590_v33  ;;  %2675 = vmatprep.subr.bf16.mxu0 %v7591_v34 }
 0x722   :  { %2635 = vmatpush1.bf16.msra.mxu1 %v7592_v60  ;;  %2676 = vmatpush1.bf16.msra.mxu0 %v7593_v29 }
 0x723   :  { %2703 = vmatprep.subr.bf16.mxu1 %v7594_v18  ;;  %2744 = vmatprep.subr.bf16.mxu0 %v7595_v35 }
 0x7b8   :  { %v2407_v2 = vpop.f32.mrb[32].mxu1  ;;  %v2448_v57 = vpop.f32.mrb[36].mxu0 }
 0x7b9   :  { %v4235_v47 = vadd.f32 %v2407_v2, %v7596_v42  ;;  %v2409_v38 = vpop.f32.mrb[33].mxu1  ;;  %v2450_v50 = vpop.f32.mrb[37].mxu0  ;;  %v4237_v35 = vadd.f32 %v2448_v57, %v7498_v36 }
 0x7ba   :  { %v4236_v44 = vadd.f32 %v2409_v38, %v7497_v26  ;;  %v2411_v39 = vpop.f32.mrb[34].mxu1  ;;  %v2452_v33 = vpop.f32.mrb[38].mxu0  ;;  %v4238_v18 = vadd.f32 %v2450_v50, %v5759_v49 }
 0x7bb   :  { %v4129_v54 = vmul.f32 -1.442695, %v4235_v47  ;;  %v2412_v34 = vpop.f32.mrb[35].mxu1  ;;  %v2453_v59 = vpop.f32.mrb[39].mxu0  ;;  %v7597_v33 = vld [vmem:[#allocation49_spill] sm:$0xff] }
 0x7bc   :  { %v4130_v60 = vmul.f32 -1.442695, %v4236_v44  ;;  %v4131_v29 = vmul.f32 -1.442695, %v4238_v18 }
 0x7bd   :  { %4646 = vpow2.f32 %v4129_v54 }
 0x7be   :  { %4648 = vpow2.f32 %v4130_v60 }
 0x7bf   :  { %4650 = vpow2.f32 %v4131_v29 }
 0x7c0   :  { %4652 = vtanh.f32 %v4237_v35 }
 0x7c7   :  { %v4647_v56 = vpop.eup %4646 }
 0x7c8   :  { %v4649_v41 = vpop.eup %4648  ;;  %v2465_v2 = vadd.f32 1.0, %v4647_v56 }
 0x7c9   :  { %v2466_v42 = vadd.f32 1.0, %v4649_v41  ;;  %v4651_v39 = vpop.eup %4650 }
 0x7ca   :  { %4654 = vrcp.f32 %v2465_v2  ;;  %v4653_v38 = vpop.eup %4652  ;;  %v2475_v54 = vadd.f32 1.0, %v4651_v39 }
 0x7cb   :  { %4656 = vrcp.f32 %v2466_v42 }
 0x7cc   :  { %4658 = vrcp.f32 %v2475_v54 }
 0x7d4   :  { %v4655_v47 = vpop.eup %4654 }
 0x7d5   :  { %v4657_v59 = vpop.eup %4656  ;;  %v2479_v44 = vmul.f32 %v4655_v47, %v4653_v38 }
 0x7d6   :  { %v2478_v34 = vmul.f32 %v4657_v59, %v7597_v33  ;;  %v4659_v33 = vpop.eup %4658 }
 0x7d8   :  { %v6343_v50 = vadd.f32 %v2479_v44, %v2478_v34  ;;  %v2525_v60 = vpop.f32.mrb[36].mxu1  ;;  %v2566_v57 = vpop.f32.mrb[40].mxu0 }
 0x7d9   :  { %v2577_v18 = vrot.slane %v2525_v60, 4  ;;  %v2527_v56 = vpop.f32.mrb[37].mxu1  ;;  %v2568_v29 = vpop.f32.mrb[41].mxu0  ;;  %v2579_v34 = vrot.slane %v2566_v57, 4 }
 0x7da   :  { %7598 = vst [vmem:[#allocation63_spill] sm:$0xff] %v6343_v50  ;;  %4660 = vtanh.f32 %v6343_v50  ;;  %v2578_v41 = vrot.slane %v2527_v56, 4  ;;  %v2529_v42 = vpop.f32.mrb[38].mxu1  ;;  %v2570_v35 = vpop.f32.mrb[42].mxu0  ;;  %v2580_v44 = vrot.slane %v2568_v29, 4 }
 0x7db   :  { %v2585_v2 = vadd.f32 %v2577_v18, %v7433_v51  ;;  %v2530_v36 = vpop.f32.mrb[39].mxu1  ;;  %v2571_v38 = vpop.f32.mrb[43].mxu0 }
 0x7dc   :  { %v2586_v39 = vadd.f32 %v2578_v41, %v5534_v25  ;;  %v2588_v54 = vadd.f32 %v2580_v44, %v5541_v61  ;;  %v2587_v36 = vadd.f32 %v2579_v34, %v5546_v11 }
 0x7dd   :  { %v4132_v47 = vmul.f32 -1.442695, %v2585_v2 }
 0x7de   :  { %v4133_v59 = vmul.f32 -1.442695, %v2586_v39  ;;  %v4134_v56 = vmul.f32 -1.442695, %v2588_v54 }
 0x7df   :  { %4662 = vpow2.f32 %v4132_v47  ;;  %v2609_v47 = vrot.slane %v6165_v55, 7  ;;  %v7599_v55 = vld [vmem:[#allocation50_spill] sm:$0xff] }
 0x7e0   :  { %4664 = vpow2.f32 %v4133_v59 }
 0x7e1   :  { %4666 = vpow2.f32 %v4134_v56 }
 0x7e2   :  { %4668 = vtanh.f32 %v2587_v36 }
 0x7e4   :  { %v4661_v60 = vpop.eup %4660 }
 0x7e5   :  { %v6349_v50 = vmul.f32 %v4661_v60, %v4659_v33 }
 0x7e7   :  { %v2489_v18 = vrot.slane %v6349_v50, %v7499_v27 }
 0x7e9   :  { %v4663_v41 = vpop.eup %4662  ;;  %v6356_v29 = vsel %vm2483_vm3, %v2489_v18, %v6162_v48 }
 0x7ea   :  { %v4665_v42 = vpop.eup %4664  ;;  %v2595_v35 = vadd.f32 1.0, %v4663_v41  ;;  %v7600_v41 = vld [vmem:[#allocation51_spill] sm:$0xff] }
 0x7eb   :  { %v2596_v57 = vadd.f32 1.0, %v4665_v42  ;;  %v4667_v2 = vpop.eup %4666  ;;  %v7601_v42 = vld [vmem:[#allocation52_spill] sm:$0xff] }
 0x7ec   :  { %4670 = vrcp.f32 %v2595_v35  ;;  %v4669_v38 = vpop.eup %4668  ;;  %v2605_v54 = vadd.f32 1.0, %v4667_v2  ;;  %v7602_v35 = vld [vmem:[#allocation53_spill] sm:$0xff]  ;;  %v7604_v2 = vld [vmem:[#allocation55_spill] sm:$0xff] }
 0x7ed   :  { %4672 = vrcp.f32 %v2596_v57  ;;  %v7603_v57 = vld [vmem:[#allocation54_spill] sm:$0xff] }
 0x7ee   :  { %4674 = vrcp.f32 %v2605_v54  ;;  %v7610_v54 = vld [vmem:[#allocation61_spill] sm:$0xff] }
 0x7f6   :  { %v4671_v39 = vpop.eup %4670 }
 0x7f7   :  { %v4673_v59 = vpop.eup %4672  ;;  %v2612_v44 = vmul.f32 %v4671_v39, %v4669_v38  ;;  %v7605_v38 = vld [vmem:[#allocation56_spill] sm:$0xff]  ;;  %v7606_v39 = vld [vmem:[#allocation57_spill] sm:$0xff] }
 0x7f8   :  { %v2611_v33 = vmul.f32 %v4673_v59, %v2609_v47  ;;  %v4675_v48 = vpop.eup %4674  ;;  %v7607_v47 = vld [vmem:[#allocation58_spill] sm:$0xff]  ;;  %v7608_v59 = vld [vmem:[#allocation59_spill] sm:$0xff] }
 0x7fa   :  { %v6359_v34 = vadd.f32 %v2612_v44, %v2611_v33  ;;  %v7609_v44 = vld [vmem:[#allocation60_spill] sm:$0xff]  ;;  %v7611_v33 = vld [vmem:[#allocation62_spill] sm:$0xff] }
 0x7fc   :  { %4676 = vtanh.f32 %v6359_v34 }
 0x806   :  { %v4677_v60 = vpop.eup %4676 }
 0x807   :  { %v2615_v56 = vmul.f32 %v4677_v60, %v4675_v48  ;;  %v7612_v48 = vld [vmem:[#allocation79_spill] sm:$0xff]  ;;  %v2702_v60 = vpack.c.bf16 %v6349_v50, %v6349_v50 }
 0x808   :  { %v7631_v50 = vld [vmem:[#allocation19_spill] sm:$0xff] }
 0x809   :  { %v2616_v36 = vpack.c.bf16 %v2615_v56, %v2615_v56  ;;  %v7632_v56 = vld [vmem:[#allocation20_spill] sm:$0xff] }
 0x80b   :  { %v6362_v18 = vrot.slane %v2616_v36, 2  ;;  %v7633_v36 = vld [vmem:[#allocation21_spill] sm:$0xff] }
 0x80d   :  { %2653 = vmatmul.mubr.bf16.vlgmr.msra.gmra.mrb[40].mxu1 %v6362_v18  ;;  %2694 = vmatmul.mubr.bf16.vlgmr.msra.gmra.mrb[44].mxu0 %v6362_v18 }
 0x80e   :  { %2704 = vmatpush1.bf16.msra.mxu1 %v6172_v19  ;;  %2745 = vmatpush1.bf16.msra.mxu0 %v6175_v31 }
 0x80f   :  { %2705 = vmatprep.subr.bf16.mxu1 %v6178_v5  ;;  %2746 = vmatprep.subr.bf16.mxu0 %v6181_v45 }
 0x810   :  { %2735 = vmatprep.mubr.bf16.mxu1 %v7387_v40  ;;  %2776 = vmatprep.mubr.bf16.mxu0 %v7387_v40 }
 0x812   :  { %2706 = vmatpush1.bf16.msra.mxu1 %v6186_v32  ;;  %2747 = vmatpush1.bf16.msra.mxu0 %v6189_v12 }
 0x813   :  { %2707 = vmatprep.subr.bf16.mxu1 %v6192_v46  ;;  %2748 = vmatprep.subr.bf16.mxu0 %v6195_v23 }
 0x816   :  { %2708 = vmatpush1.bf16.msra.mxu1 %v6198_v15  ;;  %2749 = vmatpush1.bf16.msra.mxu0 %v6201_v53 }
 0x817   :  { %2709 = vmatprep.subr.bf16.mxu1 %v6204_v22  ;;  %2750 = vmatprep.subr.bf16.mxu0 %v7599_v55 }
 0x81a   :  { %2710 = vmatpush1.bf16.msra.mxu1 %v7600_v41  ;;  %2751 = vmatpush1.bf16.msra.mxu0 %v7601_v42 }
 0x81b   :  { %2711 = vmatprep.subr.bf16.mxu1 %v7602_v35  ;;  %2752 = vmatprep.subr.bf16.mxu0 %v7603_v57 }
 0x81e   :  { %2712 = vmatpush1.bf16.msra.mxu1 %v7604_v2  ;;  %2753 = vmatpush1.bf16.msra.mxu0 %v7605_v38 }
 0x81f   :  { %2713 = vmatprep.subr.bf16.mxu1 %v7606_v39  ;;  %2754 = vmatprep.subr.bf16.mxu0 %v7607_v47 }
 0x822   :  { %2714 = vmatpush1.bf16.msra.mxu1 %v7608_v59  ;;  %2755 = vmatpush1.bf16.msra.mxu0 %v7609_v44 }
 0x823   :  { %2715 = vmatprep.subr.bf16.mxu1 %v7610_v54  ;;  %2756 = vmatprep.subr.bf16.mxu0 %v7611_v33 }
 0x826   :  { %2716 = vmatpush1.bf16.msra.mxu1 %v7612_v48  ;;  %2757 = vmatpush1.bf16.msra.mxu0 %v6249_v28 }
 0x827   :  { %2717 = vmatprep.subr.bf16.mxu1 %v6252_v37  ;;  %2758 = vmatprep.subr.bf16.mxu0 %v6255_v30 }
 0x82a   :  { %2718 = vmatpush1.bf16.msra.mxu1 %v6258_v16  ;;  %2759 = vmatpush1.bf16.msra.mxu0 %v6261_v52 }
 0x82b   :  { %2821 = vmatprep.subr.bf16.mxu1 %v5940_v13  ;;  %2862 = vmatprep.subr.bf16.mxu0 %v5943_v7  ;;  %v7613_v13 = vld [vmem:[#allocation64_spill] sm:$0xff]  ;;  %v7614_v7 = vld [vmem:[#allocation65_spill] sm:$0xff] }
 0x82d   :  { %2736 = vmatmul.mubr.bf16.vlgmr.msra.gmra.mrb[40].mxu1 %v2702_v60  ;;  %2777 = vmatmul.mubr.bf16.vlgmr.msra.gmra.mrb[44].mxu0 %v2702_v60  ;;  %v7634_v60 = vld [vmem:[#allocation22_spill] sm:$0xff] }
 0x82e   :  { %2822 = vmatpush1.bf16.msra.mxu1 %v5946_v62  ;;  %2863 = vmatpush1.bf16.msra.mxu0 %v5949_v17  ;;  %v7615_v62 = vld [vmem:[#allocation66_spill] sm:$0xff]  ;;  %v7616_v17 = vld [vmem:[#allocation67_spill] sm:$0xff] }
 0x82f   :  { %2823 = vmatprep.subr.bf16.mxu1 %v5952_v3  ;;  %2864 = vmatprep.subr.bf16.mxu0 %v5955_v6  ;;  %v7617_v3 = vld [vmem:[#allocation68_spill] sm:$0xff]  ;;  %v7618_v6 = vld [vmem:[#allocation69_spill] sm:$0xff] }
 0x830   :  { %2853 = vmatprep.mubr.bf16.mxu1 %v7387_v40  ;;  %2894 = vmatprep.mubr.bf16.mxu0 %v7387_v40 }
 0x832   :  { %2824 = vmatpush1.bf16.msra.mxu1 %v5960_v20  ;;  %2865 = vmatpush1.bf16.msra.mxu0 %v5963_v63  ;;  %v7619_v20 = vld [vmem:[#allocation70_spill] sm:$0xff]  ;;  %v7620_v63 = vld [vmem:[#allocation71_spill] sm:$0xff] }
 0x833   :  { %2825 = vmatprep.subr.bf16.mxu1 %v5966_v21  ;;  %2866 = vmatprep.subr.bf16.mxu0 %v5969_v24  ;;  %v7621_v21 = vld [vmem:[#allocation72_spill] sm:$0xff]  ;;  %v7622_v24 = vld [vmem:[#allocation73_spill] sm:$0xff] }
 0x836   :  { %2826 = vmatpush1.bf16.msra.mxu1 %v5972_v14  ;;  %2867 = vmatpush1.bf16.msra.mxu0 %v5975_v0  ;;  %v7623_v14 = vld [vmem:[#allocation74_spill] sm:$0xff]  ;;  %v7624_v0 = vld [vmem:[#allocation75_spill] sm:$0xff] }
 0x837   :  { %2827 = vmatprep.subr.bf16.mxu1 %v5978_v1  ;;  %2868 = vmatprep.subr.bf16.mxu0 %v5981_v4  ;;  %v7625_v1 = vld [vmem:[#allocation76_spill] sm:$0xff]  ;;  %v7626_v4 = vld [vmem:[#allocation77_spill] sm:$0xff] }
 0x83a   :  { %2828 = vmatpush1.bf16.msra.mxu1 %v5984_v10  ;;  %2869 = vmatpush1.bf16.msra.mxu0 %v5987_v9  ;;  %v7627_v10 = vld [vmem:[#allocation15_spill] sm:$0xff]  ;;  %v7628_v9 = vld [vmem:[#allocation16_spill] sm:$0xff] }
 0x83b   :  { %2829 = vmatprep.subr.bf16.mxu1 %v5990_v43  ;;  %2870 = vmatprep.subr.bf16.mxu0 %v5993_v58  ;;  %v7629_v43 = vld [vmem:[#allocation17_spill] sm:$0xff]  ;;  %v7630_v58 = vld [vmem:[#allocation18_spill] sm:$0xff] }
 0x83e   :  { %2830 = vmatpush1.bf16.msra.mxu1 %v7613_v13  ;;  %2871 = vmatpush1.bf16.msra.mxu0 %v7614_v7  ;;  %v7635_v13 = vld [vmem:[#allocation23_spill] sm:$0xff]  ;;  %v7636_v7 = vld [vmem:[#allocation24_spill] sm:$0xff] }
 0x83f   :  { %2831 = vmatprep.subr.bf16.mxu1 %v7615_v62  ;;  %2872 = vmatprep.subr.bf16.mxu0 %v7616_v17  ;;  %v7638_v62 = vld [vmem:[#allocation26_spill] sm:$0xff]  ;;  %v7639_v17 = vld [vmem:[#allocation27_spill] sm:$0xff] }
 0x842   :  { %2832 = vmatpush1.bf16.msra.mxu1 %v7617_v3  ;;  %2873 = vmatpush1.bf16.msra.mxu0 %v7618_v6  ;;  %v7640_v3 = vld [vmem:[#allocation28_spill] sm:$0xff]  ;;  %v7641_v6 = vld [vmem:[#allocation29_spill] sm:$0xff] }
 0x843   :  { %2833 = vmatprep.subr.bf16.mxu1 %v7619_v20  ;;  %2874 = vmatprep.subr.bf16.mxu0 %v7620_v63  ;;  %v7642_v20 = vld [vmem:[#allocation30_spill] sm:$0xff]  ;;  %v7643_v63 = vld [vmem:[#allocation31_spill] sm:$0xff] }
 0x846   :  { %2834 = vmatpush1.bf16.msra.mxu1 %v7621_v21  ;;  %2875 = vmatpush1.bf16.msra.mxu0 %v7622_v24  ;;  %v7644_v21 = vld [vmem:[#allocation32_spill] sm:$0xff]  ;;  %v7645_v24 = vld [vmem:[#allocation33_spill] sm:$0xff] }
 0x847   :  { %2835 = vmatprep.subr.bf16.mxu1 %v7623_v14  ;;  %2876 = vmatprep.subr.bf16.mxu0 %v7624_v0  ;;  %v7646_v14 = vld [vmem:[#allocation34_spill] sm:$0xff]  ;;  %v7647_v0 = vld [vmem:[#allocation35_spill] sm:$0xff] }
 0x84a   :  { %2836 = vmatpush1.bf16.msra.mxu1 %v7625_v1  ;;  %2877 = vmatpush1.bf16.msra.mxu0 %v7626_v4  ;;  %v7648_v1 = vld [vmem:[#allocation36_spill] sm:$0xff]  ;;  %v7649_v4 = vld [vmem:[#allocation37_spill] sm:$0xff] }
 0x84b   :  { %2952 = vmatprep.subr.bf16.mxu1 %v7627_v10  ;;  %2993 = vmatprep.subr.bf16.mxu0 %v7628_v9  ;;  %v7650_v10 = vld [vmem:[#allocation38_spill] sm:$0xff]  ;;  %v7651_v9 = vld [vmem:[#allocation39_spill] sm:$0xff] }
 0x84d   :  { %2854 = vmatmul.mubr.bf16.vlgmr.msra.gmra.mrb[44].mxu1 %v6362_v18  ;;  %2895 = vmatmul.mubr.bf16.vlgmr.msra.gmra.mrb[48].mxu0 %v6362_v18  ;;  %v7637_v18 = vld [vmem:[#allocation25_spill] sm:$0xff] }
 0x84e   :  { %2953 = vmatpush1.bf16.msra.mxu1 %v7629_v43  ;;  %2994 = vmatpush1.bf16.msra.mxu0 %v7630_v58  ;;  %v7652_v43 = vld [vmem:[#allocation40_spill] sm:$0xff]  ;;  %v7653_v58 = vld [vmem:[#allocation41_spill] sm:$0xff] }
 0x84f   :  { %2954 = vmatprep.subr.bf16.mxu1 %v7631_v50  ;;  %2995 = vmatprep.subr.bf16.mxu0 %v7632_v56  ;;  %v7654_v50 = vld [vmem:[#allocation42_spill] sm:$0xff]  ;;  %v7655_v56 = vld [vmem:[#allocation43_spill] sm:$0xff] }
 0x850   :  { %2984 = vmatprep.mubr.bf16.mxu1 %v7387_v40  ;;  %3025 = vmatprep.mubr.bf16.mxu0 %v7387_v40 }
 0x852   :  { %2955 = vmatpush1.bf16.msra.mxu1 %v7633_v36  ;;  %2996 = vmatpush1.bf16.msra.mxu0 %v7634_v60  ;;  %v7656_v36 = vld [vmem:[#allocation44_spill] sm:$0xff]  ;;  %v7657_v60 = vld [vmem:[#allocation45_spill] sm:$0xff] }
 0x853   :  { %2956 = vmatprep.subr.bf16.mxu1 %v7635_v13  ;;  %2997 = vmatprep.subr.bf16.mxu0 %v7636_v7  ;;  %v7658_v13 = vld [vmem:[#allocation46_spill] sm:$0xff]  ;;  %v7659_v7 = vld [vmem:[#allocation47_spill] sm:$0xff] }
 0x856   :  { %2957 = vmatpush1.bf16.msra.mxu1 %v7637_v18  ;;  %2998 = vmatpush1.bf16.msra.mxu0 %v7638_v62  ;;  %v7660_v18 = vld [vmem:[#allocation48_spill] sm:$0xff] }
 0x857   :  { %2958 = vmatprep.subr.bf16.mxu1 %v7639_v17  ;;  %2999 = vmatprep.subr.bf16.mxu0 %v7640_v3  ;;  %v7661_v3 = vld [vmem:[#allocation78_spill] sm:$0xff] }
 0x85a   :  { %2959 = vmatpush1.bf16.msra.mxu1 %v7641_v6  ;;  %3000 = vmatpush1.bf16.msra.mxu0 %v7642_v20 }
 0x85b   :  { %2960 = vmatprep.subr.bf16.mxu1 %v7643_v63  ;;  %3001 = vmatprep.subr.bf16.mxu0 %v7644_v21 }
 0x85e   :  { %2961 = vmatpush1.bf16.msra.mxu1 %v7645_v24  ;;  %3002 = vmatpush1.bf16.msra.mxu0 %v7646_v14 }
 0x85f   :  { %2962 = vmatprep.subr.bf16.mxu1 %v7647_v0  ;;  %3003 = vmatprep.subr.bf16.mxu0 %v7648_v1 }
 0x862   :  { %2963 = vmatpush1.bf16.msra.mxu1 %v7649_v4  ;;  %3004 = vmatpush1.bf16.msra.mxu0 %v7650_v10 }
 0x863   :  { %2964 = vmatprep.subr.bf16.mxu1 %v7651_v9  ;;  %3005 = vmatprep.subr.bf16.mxu0 %v7652_v43 }
 0x866   :  { %2965 = vmatpush1.bf16.msra.mxu1 %v7653_v58  ;;  %3006 = vmatpush1.bf16.msra.mxu0 %v7654_v50  ;;  %v7662_v58 = vld [vmem:[#allocation80_spill] sm:$0xff] }
 0x867   :  { %2966 = vmatprep.subr.bf16.mxu1 %v7655_v56  ;;  %3007 = vmatprep.subr.bf16.mxu0 %v7656_v36 }
 0x86a   :  { %2967 = vmatpush1.bf16.msra.mxu1 %v7657_v60  ;;  %3008 = vmatpush1.bf16.msra.mxu0 %v7658_v13 }
 0x86b   :  { %3035 = vmatprep.subr.bf16.mxu1 %v7659_v7  ;;  %3076 = vmatprep.subr.bf16.mxu0 %v7660_v18 }
 0x900   :  { %v2737_v62 = vpop.f32.mrb[40].mxu1  ;;  %v2778_v17 = vpop.f32.mrb[44].mxu0 }
 0x901   :  { %v4239_v6 = vadd.f32 %v2737_v62, %v7661_v3  ;;  %v2739_v20 = vpop.f32.mrb[41].mxu1  ;;  %v2780_v63 = vpop.f32.mrb[45].mxu0  ;;  %v4241_v50 = vadd.f32 %v2778_v17, %v7662_v58 }
 0x902   :  { %v4240_v21 = vadd.f32 %v2739_v20, %v7497_v26  ;;  %v2741_v24 = vpop.f32.mrb[42].mxu1  ;;  %v2782_v14 = vpop.f32.mrb[46].mxu0  ;;  %v4242_v9 = vadd.f32 %v2780_v63, %v5759_v49 }
 0x903   :  { %v4135_v0 = vmul.f32 -1.442695, %v4239_v6  ;;  %v2742_v1 = vpop.f32.mrb[43].mxu1  ;;  %v2783_v4 = vpop.f32.mrb[47].mxu0  ;;  %v7663_v24 = vld [vmem:[#allocation63_spill] sm:$0xff] }
 0x904   :  { %v4136_v10 = vmul.f32 -1.442695, %v4240_v21  ;;  %v4137_v43 = vmul.f32 -1.442695, %v4242_v9 }
 0x905   :  { %4678 = vpow2.f32 %v4135_v0 }
 0x906   :  { %4680 = vpow2.f32 %v4136_v10 }
 0x907   :  { %4682 = vpow2.f32 %v4137_v43 }
 0x908   :  { %4684 = vtanh.f32 %v4241_v50 }
 0x90f   :  { %v4679_v56 = vpop.eup %4678 }
 0x910   :  { %v4681_v36 = vpop.eup %4680  ;;  %v2795_v60 = vadd.f32 1.0, %v4679_v56 }
 0x911   :  { %v2796_v13 = vadd.f32 1.0, %v4681_v36  ;;  %v4683_v7 = vpop.eup %4682 }
 0x912   :  { %4686 = vrcp.f32 %v2795_v60  ;;  %v4685_v18 = vpop.eup %4684  ;;  %v2805_v21 = vadd.f32 1.0, %v4683_v7 }
 0x913   :  { %4688 = vrcp.f32 %v2796_v13 }
 0x914   :  { %4690 = vrcp.f32 %v2805_v21 }
 0x91c   :  { %v4687_v62 = vpop.eup %4686 }
 0x91d   :  { %v4689_v6 = vpop.eup %4688  ;;  %v2809_v20 = vmul.f32 %v4687_v62, %v4685_v18 }
 0x91e   :  { %v2808_v14 = vmul.f32 %v4689_v6, %v7663_v24 }
 0x920   :  { %v6477_v63 = vadd.f32 %v2809_v20, %v2808_v14  ;;  %v2855_v0 = vpop.f32.mrb[44].mxu1  ;;  %v2896_v17 = vpop.f32.mrb[48].mxu0 }
 0x921   :  { %v2907_v1 = vrot.slane %v2855_v0, 3  ;;  %v2857_v4 = vpop.f32.mrb[45].mxu1  ;;  %v2898_v10 = vpop.f32.mrb[49].mxu0  ;;  %v2909_v21 = vrot.slane %v2896_v17, 3 }
 0x922   :  { %4692 = vtanh.f32 %v6477_v63  ;;  %v2908_v9 = vrot.slane %v2857_v4, 3  ;;  %v2859_v43 = vpop.f32.mrb[46].mxu1  ;;  %v2900_v50 = vpop.f32.mrb[50].mxu0  ;;  %v2910_v62 = vrot.slane %v2898_v10, 3 }
 0x923   :  { %v2915_v56 = vadd.f32 %v2907_v1, %v7433_v51  ;;  %v2860_v36 = vpop.f32.mrb[47].mxu1  ;;  %v2901_v60 = vpop.f32.mrb[51].mxu0  ;;  %v2917_v1 = vadd.f32 %v2909_v21, %v5546_v11 }
 0x924   :  { %v2916_v13 = vadd.f32 %v2908_v9, %v5534_v25  ;;  %v2918_v6 = vadd.f32 %v2910_v62, %v5541_v61  ;;  %v4691_v20 = vpop.eup %4690 }
 0x925   :  { %v4138_v7 = vmul.f32 -1.442695, %v2915_v56 }
 0x926   :  { %v4139_v18 = vmul.f32 -1.442695, %v2916_v13  ;;  %v4140_v0 = vmul.f32 -1.442695, %v2918_v6  ;;  %v2939_v13 = vrot.slane %v6359_v34, 7 }
 0x927   :  { %4694 = vpow2.f32 %v4138_v7  ;;  %v6581_v34 = vld [vmem:[#allocation5 + $0x68] ss:$16 sps:$4 sm:$0xff]  }
 0x928   :  { %4696 = vpow2.f32 %v4139_v18 }
 0x929   :  { %4698 = vpow2.f32 %v4140_v0 }
 0x92a   :  { %4700 = vtanh.f32 %v2917_v1 }
 0x92c   :  { %v4693_v24 = vpop.eup %4692 }
 0x92d   :  { %v6483_v14 = vmul.f32 %v4693_v24, %v4691_v20 }
 0x92f   :  { %v2819_v4 = vrot.slane %v6483_v14, %v7499_v27 }
 0x931   :  { %v4695_v9 = vpop.eup %4694  ;;  %v6490_v10 = vsel %vm2813_vm4, %v2819_v4, %v6356_v29 }
 0x932   :  { %v4697_v43 = vpop.eup %4696  ;;  %v2925_v50 = vadd.f32 1.0, %v4695_v9  ;;  %v6629_v9 = vld [vmem:[#allocation5 + $0xe8] ss:$16 sps:$4 sm:$0xff]  }
 0x933   :  { %v2926_v17 = vadd.f32 1.0, %v4697_v43  ;;  %v4699_v56 = vpop.eup %4698  ;;  %v6632_v43 = vld [vmem:[#allocation7 + $0x4] ss:$16 sps:$4 sm:$0xff]  }
 0x934   :  { %4702 = vrcp.f32 %v2925_v50  ;;  %v4701_v36 = vpop.eup %4700  ;;  %v2935_v62 = vadd.f32 1.0, %v4699_v56  ;;  %v6635_v50 = vld [vmem:[#allocation7 + $0xc] ss:$16 sps:$4 sm:$0xff]   ;;  %v6643_v56 = vld [vmem:[#allocation7 + $0x8] ss:$16 sps:$4 sm:$0xff]  }
 0x935   :  { %4704 = vrcp.f32 %v2926_v17  ;;  %7664 = vst [vmem:[#allocation49_spill] sm:$0xff] %v6635_v50  ;;  %v6640_v17 = vld [vmem:[#allocation7] ss:$16 sps:$4 sm:$0xff]   ;;  %7666 = vst [vmem:[#allocation51_spill] sm:$0xff] %v6643_v56 }
 0x936   :  { %4706 = vrcp.f32 %v2935_v62  ;;  %7665 = vst [vmem:[#allocation50_spill] sm:$0xff] %v6640_v17  ;;  %v6663_v62 = vld [vmem:[#allocation7 + $0x4c] ss:$16 sps:$4 sm:$0xff]  }
 0x937   :  { %7672 = vst [vmem:[#allocation57_spill] sm:$0xff] %v6663_v62 }
 0x93e   :  { %v4703_v60 = vpop.eup %4702 }
 0x93f   :  { %v4705_v7 = vpop.eup %4704  ;;  %v2942_v18 = vmul.f32 %v4703_v60, %v4701_v36  ;;  %v6646_v36 = vld [vmem:[#allocation7 + $0x24] ss:$16 sps:$4 sm:$0xff]   ;;  %v6649_v60 = vld [vmem:[#allocation7 + $0x2c] ss:$16 sps:$4 sm:$0xff]  }
 0x940   :  { %v2941_v6 = vmul.f32 %v4705_v7, %v2939_v13  ;;  %v4707_v29 = vpop.eup %4706  ;;  %7667 = vst [vmem:[#allocation52_spill] sm:$0xff] %v6646_v36  ;;  %7668 = vst [vmem:[#allocation53_spill] sm:$0xff] %v6649_v60  ;;  %v6654_v13 = vld [vmem:[#allocation7 + $0x20] ss:$16 sps:$4 sm:$0xff]   ;;  %v6657_v7 = vld [vmem:[#allocation7 + $0x28] ss:$16 sps:$4 sm:$0xff]  }
 0x941   :  { %7669 = vst [vmem:[#allocation54_spill] sm:$0xff] %v6654_v13  ;;  %7670 = vst [vmem:[#allocation55_spill] sm:$0xff] %v6657_v7 }
 0x942   :  { %v6493_v20 = vadd.f32 %v2942_v18, %v2941_v6  ;;  %v6660_v18 = vld [vmem:[#allocation7 + $0x44] ss:$16 sps:$4 sm:$0xff]   ;;  %v6666_v6 = vld [vmem:[#allocation7 + $0x40] ss:$16 sps:$4 sm:$0xff]  }
 0x943   :  { %7671 = vst [vmem:[#allocation56_spill] sm:$0xff] %v6660_v18  ;;  %7673 = vst [vmem:[#allocation58_spill] sm:$0xff] %v6666_v6 }
 0x944   :  { %4708 = vtanh.f32 %v6493_v20 }
 0x94e   :  { %v4709_v21 = vpop.eup %4708 }
 0x94f   :  { %v2945_v24 = vmul.f32 %v4709_v21, %v4707_v29  ;;  %v6669_v29 = vld [vmem:[#allocation7 + $0x48] ss:$16 sps:$4 sm:$0xff]   ;;  %v6672_v21 = vld [vmem:[#allocation7 + $0x64] ss:$16 sps:$4 sm:$0xff]  }
 0x950   :  { %7674 = vst [vmem:[#allocation59_spill] sm:$0xff] %v6669_v29  ;;  %7675 = vst [vmem:[#allocation60_spill] sm:$0xff] %v6672_v21 }
 0x951   :  { %v2946_v0 = vpack.c.bf16 %v2945_v24, %v2945_v24  ;;  %v6675_v24 = vld [vmem:[#allocation7 + $0x6c] ss:$16 sps:$4 sm:$0xff]  }
 0x952   :  { %7676 = vst [vmem:[#allocation61_spill] sm:$0xff] %v6675_v24 }
 0x953   :  { %v2948_v1 = vshrl.u32 %v2946_v0, 16  ;;  %v6678_v0 = vld [vmem:[#allocation7 + $0x60] ss:$16 sps:$4 sm:$0xff]  }
 0x954   :  { %7677 = vst [vmem:[#allocation62_spill] sm:$0xff] %v6678_v0 }
 0x955   :  { %v6496_v4 = vrot.slane %v2948_v1, 2  ;;  %v6681_v1 = vld [vmem:[#allocation7 + $0x68] ss:$16 sps:$4 sm:$0xff]  }
 0x956   :  { %7678 = vst [vmem:[#allocation79_spill] sm:$0xff] %v6681_v1 }
 0x957   :  { %2985 = vmatmul.mubr.bf16.vlgmr.msra.gmra.mrb[48].mxu1 %v6496_v4  ;;  %3026 = vmatmul.mubr.bf16.vlgmr.msra.gmra.mrb[52].mxu0 %v6496_v4 }
 0x958   :  { %3036 = vmatpush1.bf16.msra.mxu1 %v6172_v19  ;;  %3077 = vmatpush1.bf16.msra.mxu0 %v6175_v31  ;;  %v3034_v19 = vpack.c.bf16 %v6483_v14, %v6483_v14  ;;  %v6534_v31 = vld [vmem:[#allocation5 + $0x4] ss:$16 sps:$4 sm:$0xff]   ;;  %v6626_v14 = vld [vmem:[#allocation5 + $0xe0] ss:$16 sps:$4 sm:$0xff]  }
 0x959   :  { %3037 = vmatprep.subr.bf16.mxu1 %v6178_v5  ;;  %3078 = vmatprep.subr.bf16.mxu0 %v6181_v45  ;;  %v6537_v5 = vld [vmem:[#allocation5 + $0xc] ss:$16 sps:$4 sm:$0xff]   ;;  %v6540_v45 = vld [vmem:[#allocation5] ss:$16 sps:$4 sm:$0xff]  }
 0x95a   :  { %3067 = vmatprep.mubr.bf16.mxu1 %v7387_v40  ;;  %3108 = vmatprep.mubr.bf16.mxu0 %v7387_v40 }
 0x95c   :  { %3038 = vmatpush1.bf16.msra.mxu1 %v6186_v32  ;;  %3079 = vmatpush1.bf16.msra.mxu0 %v6189_v12  ;;  %v6543_v32 = vld [vmem:[#allocation5 + $0x8] ss:$16 sps:$4 sm:$0xff]   ;;  %v6546_v12 = vld [vmem:[#allocation5 + $0x24] ss:$16 sps:$4 sm:$0xff]  }
 0x95d   :  { %3039 = vmatprep.subr.bf16.mxu1 %v6192_v46  ;;  %3080 = vmatprep.subr.bf16.mxu0 %v6195_v23  ;;  %v6549_v46 = vld [vmem:[#allocation5 + $0x2c] ss:$16 sps:$4 sm:$0xff]   ;;  %v6554_v23 = vld [vmem:[#allocation5 + $0x20] ss:$16 sps:$4 sm:$0xff]  }
 0x960   :  { %3040 = vmatpush1.bf16.msra.mxu1 %v6198_v15  ;;  %3081 = vmatpush1.bf16.msra.mxu0 %v6201_v53  ;;  %v6557_v15 = vld [vmem:[#allocation5 + $0x28] ss:$16 sps:$4 sm:$0xff]   ;;  %v6560_v53 = vld [vmem:[#allocation5 + $0x44] ss:$16 sps:$4 sm:$0xff]  }
 0x961   :  { %3041 = vmatprep.subr.bf16.mxu1 %v6204_v22  ;;  %3082 = vmatprep.subr.bf16.mxu0 %v7599_v55  ;;  %v6563_v22 = vld [vmem:[#allocation5 + $0x4c] ss:$16 sps:$4 sm:$0xff]   ;;  %v6584_v55 = vld [vmem:[#allocation5 + $0x84] ss:$16 sps:$4 sm:$0xff]  }
 0x964   :  { %3042 = vmatpush1.bf16.msra.mxu1 %v7600_v41  ;;  %3083 = vmatpush1.bf16.msra.mxu0 %v7601_v42  ;;  %v6587_v41 = vld [vmem:[#allocation5 + $0x8c] ss:$16 sps:$4 sm:$0xff]   ;;  %v6590_v42 = vld [vmem:[#allocation5 + $0x80] ss:$16 sps:$4 sm:$0xff]  }
 0x965   :  { %3043 = vmatprep.subr.bf16.mxu1 %v7602_v35  ;;  %3084 = vmatprep.subr.bf16.mxu0 %v7603_v57  ;;  %v6593_v35 = vld [vmem:[#allocation5 + $0x88] ss:$16 sps:$4 sm:$0xff]   ;;  %v6596_v57 = vld [vmem:[#allocation5 + $0xa4] ss:$16 sps:$4 sm:$0xff]  }
 0x968   :  { %3044 = vmatpush1.bf16.msra.mxu1 %v7604_v2  ;;  %3085 = vmatpush1.bf16.msra.mxu0 %v7605_v38  ;;  %v6599_v2 = vld [vmem:[#allocation5 + $0xac] ss:$16 sps:$4 sm:$0xff]   ;;  %v6602_v38 = vld [vmem:[#allocation5 + $0xa0] ss:$16 sps:$4 sm:$0xff]  }
 0x969   :  { %3045 = vmatprep.subr.bf16.mxu1 %v7606_v39  ;;  %3086 = vmatprep.subr.bf16.mxu0 %v7607_v47  ;;  %v6605_v39 = vld [vmem:[#allocation5 + $0xa8] ss:$16 sps:$4 sm:$0xff]   ;;  %v6608_v47 = vld [vmem:[#allocation5 + $0xc4] ss:$16 sps:$4 sm:$0xff]  }
 0x96c   :  { %3046 = vmatpush1.bf16.msra.mxu1 %v7608_v59  ;;  %3087 = vmatpush1.bf16.msra.mxu0 %v7609_v44  ;;  %v6611_v59 = vld [vmem:[#allocation5 + $0xcc] ss:$16 sps:$4 sm:$0xff]   ;;  %v6614_v44 = vld [vmem:[#allocation5 + $0xc0] ss:$16 sps:$4 sm:$0xff]  }
 0x96d   :  { %3047 = vmatprep.subr.bf16.mxu1 %v7610_v54  ;;  %3088 = vmatprep.subr.bf16.mxu0 %v7611_v33  ;;  %v6617_v54 = vld [vmem:[#allocation5 + $0xc8] ss:$16 sps:$4 sm:$0xff]   ;;  %v6620_v33 = vld [vmem:[#allocation5 + $0xe4] ss:$16 sps:$4 sm:$0xff]  }
 0x970   :  { %3048 = vmatpush1.bf16.msra.mxu1 %v7612_v48  ;;  %3089 = vmatpush1.bf16.msra.mxu0 %v6249_v28  ;;  %v6569_v28 = vld [vmem:[#allocation5 + $0x48] ss:$16 sps:$4 sm:$0xff]   ;;  %v6623_v48 = vld [vmem:[#allocation5 + $0xec] ss:$16 sps:$4 sm:$0xff]  }
 0x971   :  { %3049 = vmatprep.subr.bf16.mxu1 %v6252_v37  ;;  %3090 = vmatprep.subr.bf16.mxu0 %v6255_v30  ;;  %v6572_v37 = vld [vmem:[#allocation5 + $0x64] ss:$16 sps:$4 sm:$0xff]   ;;  %v6575_v30 = vld [vmem:[#allocation5 + $0x6c] ss:$16 sps:$4 sm:$0xff]  }
 0x974   :  { %3050 = vmatpush1.bf16.msra.mxu1 %v6258_v16  ;;  %3091 = vmatpush1.bf16.msra.mxu0 %v6261_v52  ;;  %v6566_v52 = vld [vmem:[#allocation5 + $0x40] ss:$16 sps:$4 sm:$0xff]  }
 0x975   :  { %3153 = vmatprep.subr.bf16.mxu1 %v6534_v31  ;;  %3194 = vmatprep.subr.bf16.mxu0 %v6537_v5  ;;  %v6578_v16 = vld [vmem:[#allocation5 + $0x60] ss:$16 sps:$4 sm:$0xff]  }
 0x977   :  { %3068 = vmatmul.mubr.bf16.vlgmr.msra.gmra.mrb[48].mxu1 %v3034_v19  ;;  %3109 = vmatmul.mubr.bf16.vlgmr.msra.gmra.mrb[52].mxu0 %v3034_v19  ;;  %v6687_v19 = vld [vmem:[#allocation7 + $0x8c] ss:$16 sps:$4 sm:$0xff]  }
 0x978   :  { %3154 = vmatpush1.bf16.msra.mxu1 %v6540_v45  ;;  %3195 = vmatpush1.bf16.msra.mxu0 %v6543_v32  ;;  %7680 = vst [vmem:[#allocation65_spill] sm:$0xff] %v6687_v19 }
 0x979   :  { %3155 = vmatprep.subr.bf16.mxu1 %v6546_v12  ;;  %3196 = vmatprep.subr.bf16.mxu0 %v6549_v46 }
 0x97a   :  { %3185 = vmatprep.mubr.bf16.mxu1 %v7387_v40  ;;  %3226 = vmatprep.mubr.bf16.mxu0 %v7387_v40 }
 0x97c   :  { %3156 = vmatpush1.bf16.msra.mxu1 %v6554_v23  ;;  %3197 = vmatpush1.bf16.msra.mxu0 %v6557_v15 }
 0x97d   :  { %3157 = vmatprep.subr.bf16.mxu1 %v6560_v53  ;;  %3198 = vmatprep.subr.bf16.mxu0 %v6563_v22 }
 0x980   :  { %3158 = vmatpush1.bf16.msra.mxu1 %v6566_v52  ;;  %3199 = vmatpush1.bf16.msra.mxu0 %v6569_v28 }
 0x981   :  { %3159 = vmatprep.subr.bf16.mxu1 %v6572_v37  ;;  %3200 = vmatprep.subr.bf16.mxu0 %v6575_v30 }
 0x984   :  { %3160 = vmatpush1.bf16.msra.mxu1 %v6578_v16  ;;  %3201 = vmatpush1.bf16.msra.mxu0 %v6581_v34 }
 0x985   :  { %3161 = vmatprep.subr.bf16.mxu1 %v6584_v55  ;;  %3202 = vmatprep.subr.bf16.mxu0 %v6587_v41 }
 0x988   :  { %3162 = vmatpush1.bf16.msra.mxu1 %v6590_v42  ;;  %3203 = vmatpush1.bf16.msra.mxu0 %v6593_v35 }
 0x989   :  { %3163 = vmatprep.subr.bf16.mxu1 %v6596_v57  ;;  %3204 = vmatprep.subr.bf16.mxu0 %v6599_v2 }
 0x98c   :  { %3164 = vmatpush1.bf16.msra.mxu1 %v6602_v38  ;;  %3205 = vmatpush1.bf16.msra.mxu0 %v6605_v39 }
 0x98d   :  { %3165 = vmatprep.subr.bf16.mxu1 %v6608_v47  ;;  %3206 = vmatprep.subr.bf16.mxu0 %v6611_v59 }
 0x990   :  { %3166 = vmatpush1.bf16.msra.mxu1 %v6614_v44  ;;  %3207 = vmatpush1.bf16.msra.mxu0 %v6617_v54 }
 0x991   :  { %3167 = vmatprep.subr.bf16.mxu1 %v6620_v33  ;;  %3208 = vmatprep.subr.bf16.mxu0 %v6623_v48 }
 0x994   :  { %3168 = vmatpush1.bf16.msra.mxu1 %v6626_v14  ;;  %3209 = vmatpush1.bf16.msra.mxu0 %v6629_v9 }
 0x995   :  { %3282 = vmatprep.subr.bf16.mxu1 %v6632_v43  ;;  %3323 = vmatprep.subr.bf16.mxu0 %v6635_v50 }
 0x997   :  { %3186 = vmatmul.mubr.bf16.vlgmr.msra.gmra.mrb[52].mxu1 %v6496_v4  ;;  %3227 = vmatmul.mubr.bf16.vlgmr.msra.gmra.mrb[56].mxu0 %v6496_v4  ;;  %v6684_v4 = vld [vmem:[#allocation7 + $0x84] ss:$16 sps:$4 sm:$0xff]  }
 0x998   :  { %3283 = vmatpush1.bf16.msra.mxu1 %v6640_v17  ;;  %3324 = vmatpush1.bf16.msra.mxu0 %v6643_v56  ;;  %7679 = vst [vmem:[#allocation64_spill] sm:$0xff] %v6684_v4 }
 0x999   :  { %3284 = vmatprep.subr.bf16.mxu1 %v6646_v36  ;;  %3325 = vmatprep.subr.bf16.mxu0 %v6649_v60 }
 0x99a   :  { %3314 = vmatprep.mubr.bf16.mxu1 %v7387_v40  ;;  %3355 = vmatprep.mubr.bf16.mxu0 %v7387_v40 }
 0x99c   :  { %3285 = vmatpush1.bf16.msra.mxu1 %v6654_v13  ;;  %3326 = vmatpush1.bf16.msra.mxu0 %v6657_v7 }
 0x99d   :  { %3286 = vmatprep.subr.bf16.mxu1 %v6660_v18  ;;  %3327 = vmatprep.subr.bf16.mxu0 %v6663_v62 }
 0x9a0   :  { %3287 = vmatpush1.bf16.msra.mxu1 %v6666_v6  ;;  %3328 = vmatpush1.bf16.msra.mxu0 %v6669_v29 }
 0x9a1   :  { %3288 = vmatprep.subr.bf16.mxu1 %v6672_v21  ;;  %3329 = vmatprep.subr.bf16.mxu0 %v6675_v24  ;;  %v6690_v21 = vld [vmem:[#allocation7 + $0x80] ss:$16 sps:$4 sm:$0xff]   ;;  %v6693_v24 = vld [vmem:[#allocation7 + $0x88] ss:$16 sps:$4 sm:$0xff]  }
 0x9a2   :  { %7681 = vst [vmem:[#allocation66_spill] sm:$0xff] %v6690_v21  ;;  %7682 = vst [vmem:[#allocation67_spill] sm:$0xff] %v6693_v24 }
 0x9a4   :  { %3289 = vmatpush1.bf16.msra.mxu1 %v6678_v0  ;;  %3330 = vmatpush1.bf16.msra.mxu0 %v6681_v1  ;;  %v6696_v0 = vld [vmem:[#allocation7 + $0xa4] ss:$16 sps:$4 sm:$0xff]   ;;  %v6699_v1 = vld [vmem:[#allocation7 + $0xac] ss:$16 sps:$4 sm:$0xff]  }
 0x9a5   :  { %3290 = vmatprep.subr.bf16.mxu1 %v6684_v4  ;;  %3331 = vmatprep.subr.bf16.mxu0 %v6687_v19  ;;  %7683 = vst [vmem:[#allocation68_spill] sm:$0xff] %v6696_v0  ;;  %7684 = vst [vmem:[#allocation69_spill] sm:$0xff] %v6699_v1  ;;  %v6702_v4 = vld [vmem:[#allocation7 + $0xa0] ss:$16 sps:$4 sm:$0xff]   ;;  %v6705_v19 = vld [vmem:[#allocation7 + $0xa8] ss:$16 sps:$4 sm:$0xff]  }
 0x9a6   :  { %7685 = vst [vmem:[#allocation70_spill] sm:$0xff] %v6702_v4  ;;  %7686 = vst [vmem:[#allocation71_spill] sm:$0xff] %v6705_v19 }
 0x9a8   :  { %3291 = vmatpush1.bf16.msra.mxu1 %v6690_v21  ;;  %3332 = vmatpush1.bf16.msra.mxu0 %v6693_v24  ;;  %v6708_v21 = vld [vmem:[#allocation7 + $0xc4] ss:$16 sps:$4 sm:$0xff]   ;;  %v6711_v24 = vld [vmem:[#allocation7 + $0xcc] ss:$16 sps:$4 sm:$0xff]  }
 0x9a9   :  { %3292 = vmatprep.subr.bf16.mxu1 %v6696_v0  ;;  %3333 = vmatprep.subr.bf16.mxu0 %v6699_v1  ;;  %7687 = vst [vmem:[#allocation72_spill] sm:$0xff] %v6708_v21  ;;  %7688 = vst [vmem:[#allocation73_spill] sm:$0xff] %v6711_v24  ;;  %v6714_v0 = vld [vmem:[#allocation7 + $0xc0] ss:$16 sps:$4 sm:$0xff]   ;;  %v6717_v1 = vld [vmem:[#allocation7 + $0xc8] ss:$16 sps:$4 sm:$0xff]  }
 0x9aa   :  { %7689 = vst [vmem:[#allocation74_spill] sm:$0xff] %v6714_v0  ;;  %7690 = vst [vmem:[#allocation75_spill] sm:$0xff] %v6717_v1 }
 0x9ac   :  { %3293 = vmatpush1.bf16.msra.mxu1 %v6702_v4  ;;  %3334 = vmatpush1.bf16.msra.mxu0 %v6705_v19  ;;  %v6720_v4 = vld [vmem:[#allocation7 + $0xe4] ss:$16 sps:$4 sm:$0xff]   ;;  %v6723_v19 = vld [vmem:[#allocation7 + $0xec] ss:$16 sps:$4 sm:$0xff]  }
 0x9ad   :  { %3294 = vmatprep.subr.bf16.mxu1 %v6708_v21  ;;  %3335 = vmatprep.subr.bf16.mxu0 %v6711_v24  ;;  %7691 = vst [vmem:[#allocation76_spill] sm:$0xff] %v6720_v4  ;;  %7692 = vst [vmem:[#allocation77_spill] sm:$0xff] %v6723_v19  ;;  %v6726_v21 = vld [vmem:[#allocation7 + $0xe0] ss:$16 sps:$4 sm:$0xff]   ;;  %v6729_v24 = vld [vmem:[#allocation7 + $0xe8] ss:$16 sps:$4 sm:$0xff]  }
 0x9ae   :  { %7693 = vst [vmem:[#allocation15_spill] sm:$0xff] %v6726_v21  ;;  %7694 = vst [vmem:[#allocation16_spill] sm:$0xff] %v6729_v24 }
 0x9b0   :  { %3295 = vmatpush1.bf16.msra.mxu1 %v6714_v0  ;;  %3336 = vmatpush1.bf16.msra.mxu0 %v6717_v1  ;;  %v6732_v0 = vld [vmem:[#allocation8 + $0x4] ss:$16 sps:$4 sm:$0xff]   ;;  %v6735_v1 = vld [vmem:[#allocation8 + $0xc] ss:$16 sps:$4 sm:$0xff]  }
 0x9b1   :  { %3296 = vmatprep.subr.bf16.mxu1 %v6720_v4  ;;  %3337 = vmatprep.subr.bf16.mxu0 %v6723_v19  ;;  %7695 = vst [vmem:[#allocation17_spill] sm:$0xff] %v6732_v0  ;;  %7696 = vst [vmem:[#allocation18_spill] sm:$0xff] %v6735_v1 }
 0x9b4   :  { %3297 = vmatpush1.bf16.msra.mxu1 %v6726_v21  ;;  %3338 = vmatpush1.bf16.msra.mxu0 %v6729_v24 }
 0x9b5   :  { %3365 = vmatprep.subr.bf16.mxu1 %v6732_v0  ;;  %3406 = vmatprep.subr.bf16.mxu0 %v6735_v1 }
 0xa4a   :  { %v3069_v4 = vpop.f32.mrb[48].mxu1  ;;  %v3110_v29 = vpop.f32.mrb[52].mxu0 }
 0xa4b   :  { %v4243_v19 = vadd.f32 %v3069_v4, %v7661_v3  ;;  %v3071_v6 = vpop.f32.mrb[49].mxu1  ;;  %v3112_v62 = vpop.f32.mrb[53].mxu0  ;;  %v4245_v1 = vadd.f32 %v3110_v29, %v7662_v58 }
 0xa4c   :  { %v4244_v21 = vadd.f32 %v3071_v6, %v7497_v26  ;;  %v3073_v18 = vpop.f32.mrb[50].mxu1  ;;  %v3114_v7 = vpop.f32.mrb[54].mxu0  ;;  %v4246_v0 = vadd.f32 %v3112_v62, %v5759_v49 }
 0xa4d   :  { %v4141_v13 = vmul.f32 -1.442695, %v4243_v19  ;;  %v3074_v24 = vpop.f32.mrb[51].mxu1  ;;  %v3115_v60 = vpop.f32.mrb[55].mxu0 }
 0xa4e   :  { %v4142_v36 = vmul.f32 -1.442695, %v4244_v21  ;;  %v4143_v56 = vmul.f32 -1.442695, %v4246_v0 }
 0xa4f   :  { %4710 = vpow2.f32 %v4141_v13 }
 0xa50   :  { %4712 = vpow2.f32 %v4142_v36 }
 0xa51   :  { %4714 = vpow2.f32 %v4143_v56 }
 0xa52   :  { %4716 = vtanh.f32 %v4245_v1 }
 0xa59   :  { %v4711_v17 = vpop.eup %4710 }
 0xa5a   :  { %v4713_v50 = vpop.eup %4712  ;;  %v3127_v4 = vadd.f32 1.0, %v4711_v17 }
 0xa5b   :  { %v3128_v3 = vadd.f32 1.0, %v4713_v50  ;;  %v4715_v7 = vpop.eup %4714 }
 0xa5c   :  { %4718 = vrcp.f32 %v3127_v4  ;;  %v4717_v18 = vpop.eup %4716  ;;  %v3137_v13 = vadd.f32 1.0, %v4715_v7 }
 0xa5d   :  { %4720 = vrcp.f32 %v3128_v3 }
 0xa5e   :  { %4722 = vrcp.f32 %v3137_v13 }
 0xa66   :  { %v4719_v6 = vpop.eup %4718 }
 0xa67   :  { %v4721_v60 = vpop.eup %4720  ;;  %v3141_v21 = vmul.f32 %v4719_v6, %v4717_v18 }
 0xa68   :  { %v3140_v36 = vmul.f32 %v4721_v60, %v6477_v63  ;;  %v4723_v13 = vpop.eup %4722 }
 0xa6a   :  { %v6743_v62 = vadd.f32 %v3141_v21, %v3140_v36  ;;  %v3187_v24 = vpop.f32.mrb[52].mxu1  ;;  %v3228_v29 = vpop.f32.mrb[56].mxu0 }
 0xa6b   :  { %v3239_v0 = vrot.slane %v3187_v24, 2  ;;  %v3189_v17 = vpop.f32.mrb[53].mxu1  ;;  %v3230_v56 = vpop.f32.mrb[57].mxu0  ;;  %v3241_v36 = vrot.slane %v3228_v29, 2 }
 0xa6c   :  { %7697 = vst [vmem:[#allocation19_spill] sm:$0xff] %v6743_v62  ;;  %4724 = vtanh.f32 %v6743_v62  ;;  %v3240_v50 = vrot.slane %v3189_v17, 2  ;;  %v3191_v3 = vpop.f32.mrb[54].mxu1  ;;  %v3232_v1 = vpop.f32.mrb[58].mxu0  ;;  %v3242_v60 = vrot.slane %v3230_v56, 2 }
 0xa6d   :  { %v3247_v19 = vadd.f32 %v3239_v0, %v7433_v51  ;;  %v3192_v4 = vpop.f32.mrb[55].mxu1  ;;  %v3233_v18 = vpop.f32.mrb[59].mxu0  ;;  %v3249_v0 = vadd.f32 %v3241_v36, %v5546_v11 }
 0xa6e   :  { %v3248_v7 = vadd.f32 %v3240_v50, %v5534_v25  ;;  %v3250_v21 = vadd.f32 %v3242_v60, %v5541_v61 }
 0xa6f   :  { %v4144_v63 = vmul.f32 -1.442695, %v3247_v19 }
 0xa70   :  { %v4145_v6 = vmul.f32 -1.442695, %v3248_v7  ;;  %v4146_v17 = vmul.f32 -1.442695, %v3250_v21 }
 0xa71   :  { %4726 = vpow2.f32 %v4144_v63  ;;  %v3271_v63 = vrot.slane %v6493_v20, 7  ;;  %v6766_v20 = vld [vmem:[#allocation8] ss:$16 sps:$4 sm:$0xff]  }
 0xa72   :  { %4728 = vpow2.f32 %v4145_v6 }
 0xa73   :  { %4730 = vpow2.f32 %v4146_v17 }
 0xa74   :  { %4732 = vtanh.f32 %v3249_v0 }
 0xa76   :  { %v4725_v24 = vpop.eup %4724 }
 0xa77   :  { %v6749_v62 = vmul.f32 %v4725_v24, %v4723_v13 }
 0xa79   :  { %v3151_v50 = vrot.slane %v6749_v62, %v7499_v27 }
 0xa7b   :  { %v4727_v3 = vpop.eup %4726  ;;  %v6756_v56 = vsel %vm3145_vm5, %v3151_v50, %v6490_v10 }
 0xa7c   :  { %v4729_v1 = vpop.eup %4728  ;;  %v3257_v19 = vadd.f32 1.0, %v4727_v3  ;;  %v6769_v3 = vld [vmem:[#allocation8 + $0x8] ss:$16 sps:$4 sm:$0xff]  }
 0xa7d   :  { %v3258_v29 = vadd.f32 1.0, %v4729_v1  ;;  %v4731_v4 = vpop.eup %4730  ;;  %v6772_v1 = vld [vmem:[#allocation8 + $0x24] ss:$16 sps:$4 sm:$0xff]  }
 0xa7e   :  { %4734 = vrcp.f32 %v3257_v19  ;;  %v4733_v18 = vpop.eup %4732  ;;  %v3267_v21 = vadd.f32 1.0, %v4731_v4  ;;  %v6775_v19 = vld [vmem:[#allocation8 + $0x2c] ss:$16 sps:$4 sm:$0xff]   ;;  %v6783_v4 = vld [vmem:[#allocation8 + $0x28] ss:$16 sps:$4 sm:$0xff]  }
 0xa7f   :  { %4736 = vrcp.f32 %v3258_v29  ;;  %v6780_v29 = vld [vmem:[#allocation8 + $0x20] ss:$16 sps:$4 sm:$0xff]  }
 0xa80   :  { %4738 = vrcp.f32 %v3267_v21  ;;  %v6801_v21 = vld [vmem:[#allocation8 + $0x6c] ss:$16 sps:$4 sm:$0xff]  }
 0xa81   :  { %7698 = vst [vmem:[#allocation20_spill] sm:$0xff] %v6801_v21 }
 0xa88   :  { %v4735_v7 = vpop.eup %4734 }
 0xa89   :  { %v4737_v6 = vpop.eup %4736  ;;  %v3274_v60 = vmul.f32 %v4735_v7, %v4733_v18  ;;  %v6786_v18 = vld [vmem:[#allocation8 + $0x44] ss:$16 sps:$4 sm:$0xff]   ;;  %v6789_v7 = vld [vmem:[#allocation8 + $0x4c] ss:$16 sps:$4 sm:$0xff]  }
 0xa8a   :  { %v3273_v13 = vmul.f32 %v4737_v6, %v3271_v63  ;;  %v4739_v10 = vpop.eup %4738  ;;  %v6792_v63 = vld [vmem:[#allocation8 + $0x40] ss:$16 sps:$4 sm:$0xff]   ;;  %v6795_v6 = vld [vmem:[#allocation8 + $0x48] ss:$16 sps:$4 sm:$0xff]  }
 0xa8c   :  { %v6759_v36 = vadd.f32 %v3274_v60, %v3273_v13  ;;  %v6798_v60 = vld [vmem:[#allocation8 + $0x64] ss:$16 sps:$4 sm:$0xff]   ;;  %v6804_v13 = vld [vmem:[#allocation8 + $0x60] ss:$16 sps:$4 sm:$0xff]  }
 0xa8d   :  { %7699 = vst [vmem:[#allocation21_spill] sm:$0xff] %v6804_v13 }
 0xa8e   :  { %4740 = vtanh.f32 %v6759_v36 }
 0xa98   :  { %v4741_v24 = vpop.eup %4740 }
 0xa99   :  { %v3277_v17 = vmul.f32 %v4741_v24, %v4739_v10  ;;  %v6807_v10 = vld [vmem:[#allocation8 + $0x68] ss:$16 sps:$4 sm:$0xff]   ;;  %v6810_v24 = vld [vmem:[#allocation8 + $0x84] ss:$16 sps:$4 sm:$0xff]  }
 0xa9a   :  { %7700 = vst [vmem:[#allocation22_spill] sm:$0xff] %v6807_v10  ;;  %7701 = vst [vmem:[#allocation23_spill] sm:$0xff] %v6810_v24 }
 0xa9b   :  { %v3278_v0 = vpack.c.bf16 %v3277_v17, %v3277_v17  ;;  %v6813_v17 = vld [vmem:[#allocation8 + $0x8c] ss:$16 sps:$4 sm:$0xff]  }
 0xa9c   :  { %7702 = vst [vmem:[#allocation24_spill] sm:$0xff] %v6813_v17 }
 0xa9d   :  { %v6762_v50 = vrot.slane %v3278_v0, 3  ;;  %v6816_v0 = vld [vmem:[#allocation8 + $0x80] ss:$16 sps:$4 sm:$0xff]  }
 0xa9e   :  { %7703 = vst [vmem:[#allocation25_spill] sm:$0xff] %v6816_v0 }
 0xa9f   :  { %3315 = vmatmul.mubr.bf16.vlgmr.msra.gmra.mrb[56].mxu1 %v6762_v50  ;;  %3356 = vmatmul.mubr.bf16.vlgmr.msra.gmra.mrb[60].mxu0 %v6762_v50 }
 0xaa0   :  { %3366 = vmatpush1.bf16.msra.mxu1 %v6766_v20  ;;  %3407 = vmatpush1.bf16.msra.mxu0 %v6769_v3 }
 0xaa1   :  { %3367 = vmatprep.subr.bf16.mxu1 %v6772_v1  ;;  %3408 = vmatprep.subr.bf16.mxu0 %v6775_v19 }
 0xaa2   :  { %3397 = vmatprep.mubr.bf16.mxu1 %v7387_v40  ;;  %3438 = vmatprep.mubr.bf16.mxu0 %v7387_v40 }
 0xaa4   :  { %3368 = vmatpush1.bf16.msra.mxu1 %v6780_v29  ;;  %3409 = vmatpush1.bf16.msra.mxu0 %v6783_v4 }
 0xaa5   :  { %3369 = vmatprep.subr.bf16.mxu1 %v6786_v18  ;;  %3410 = vmatprep.subr.bf16.mxu0 %v6789_v7 }
 0xaa8   :  { %3370 = vmatpush1.bf16.msra.mxu1 %v6792_v63  ;;  %3411 = vmatpush1.bf16.msra.mxu0 %v6795_v6 }
 0xaa9   :  { %3371 = vmatprep.subr.bf16.mxu1 %v6798_v60  ;;  %3412 = vmatprep.subr.bf16.mxu0 %v6801_v21  ;;  %v6819_v21 = vld [vmem:[#allocation8 + $0x88] ss:$16 sps:$4 sm:$0xff]  }
 0xaaa   :  { %7704 = vst [vmem:[#allocation26_spill] sm:$0xff] %v6819_v21 }
 0xaac   :  { %3372 = vmatpush1.bf16.msra.mxu1 %v6804_v13  ;;  %3413 = vmatpush1.bf16.msra.mxu0 %v6807_v10  ;;  %v6822_v13 = vld [vmem:[#allocation8 + $0xa4] ss:$16 sps:$4 sm:$0xff]   ;;  %v6825_v10 = vld [vmem:[#allocation8 + $0xac] ss:$16 sps:$4 sm:$0xff]  }
 0xaad   :  { %3373 = vmatprep.subr.bf16.mxu1 %v6810_v24  ;;  %3414 = vmatprep.subr.bf16.mxu0 %v6813_v17  ;;  %7705 = vst [vmem:[#allocation27_spill] sm:$0xff] %v6822_v13  ;;  %7706 = vst [vmem:[#allocation28_spill] sm:$0xff] %v6825_v10  ;;  %v6828_v24 = vld [vmem:[#allocation8 + $0xa0] ss:$16 sps:$4 sm:$0xff]   ;;  %v6831_v17 = vld [vmem:[#allocation8 + $0xa8] ss:$16 sps:$4 sm:$0xff]  }
 0xaae   :  { %7707 = vst [vmem:[#allocation29_spill] sm:$0xff] %v6828_v24  ;;  %7708 = vst [vmem:[#allocation30_spill] sm:$0xff] %v6831_v17 }
 0xab0   :  { %3374 = vmatpush1.bf16.msra.mxu1 %v6816_v0  ;;  %3415 = vmatpush1.bf16.msra.mxu0 %v6819_v21  ;;  %v6834_v0 = vld [vmem:[#allocation8 + $0xc4] ss:$16 sps:$4 sm:$0xff]   ;;  %v6837_v21 = vld [vmem:[#allocation8 + $0xcc] ss:$16 sps:$4 sm:$0xff]  }
 0xab1   :  { %3375 = vmatprep.subr.bf16.mxu1 %v6822_v13  ;;  %3416 = vmatprep.subr.bf16.mxu0 %v6825_v10  ;;  %7709 = vst [vmem:[#allocation31_spill] sm:$0xff] %v6834_v0  ;;  %7710 = vst [vmem:[#allocation32_spill] sm:$0xff] %v6837_v21  ;;  %v6840_v13 = vld [vmem:[#allocation8 + $0xc0] ss:$16 sps:$4 sm:$0xff]   ;;  %v6843_v10 = vld [vmem:[#allocation8 + $0xc8] ss:$16 sps:$4 sm:$0xff]  }
 0xab2   :  { %7711 = vst [vmem:[#allocation33_spill] sm:$0xff] %v6840_v13 }
 0xab4   :  { %3376 = vmatpush1.bf16.msra.mxu1 %v6828_v24  ;;  %3417 = vmatpush1.bf16.msra.mxu0 %v6831_v17  ;;  %v6846_v24 = vld [vmem:[#allocation8 + $0xe4] ss:$16 sps:$4 sm:$0xff]   ;;  %v6849_v17 = vld [vmem:[#allocation8 + $0xec] ss:$16 sps:$4 sm:$0xff]  }
 0xab5   :  { %3377 = vmatprep.subr.bf16.mxu1 %v6834_v0  ;;  %3418 = vmatprep.subr.bf16.mxu0 %v6837_v21  ;;  %v6852_v0 = vld [vmem:[#allocation8 + $0xe0] ss:$16 sps:$4 sm:$0xff]   ;;  %v6855_v21 = vld [vmem:[#allocation8 + $0xe8] ss:$16 sps:$4 sm:$0xff]  }
 0xab8   :  { %3378 = vmatpush1.bf16.msra.mxu1 %v6840_v13  ;;  %3419 = vmatpush1.bf16.msra.mxu0 %v6843_v10  ;;  %v3364_v13 = vpack.c.bf16 %v6749_v62, %v6749_v62 }
 0xab9   :  { %3379 = vmatprep.subr.bf16.mxu1 %v6846_v24  ;;  %3420 = vmatprep.subr.bf16.mxu0 %v6849_v17 }
 0xabc   :  { %3380 = vmatpush1.bf16.msra.mxu1 %v6852_v0  ;;  %3421 = vmatpush1.bf16.msra.mxu0 %v6855_v21 }
 0xabd   :  { %3483 = vmatprep.subr.bf16.mxu1 %v6534_v31  ;;  %3524 = vmatprep.subr.bf16.mxu0 %v6537_v5  ;;  %v7712_v31 = vld [vmem:[#allocation49_spill] sm:$0xff]  ;;  %v7713_v5 = vld [vmem:[#allocation50_spill] sm:$0xff] }
 0xabf   :  { %3398 = vmatmul.mubr.bf16.vlgmr.msra.gmra.mrb[56].mxu1 %v3364_v13  ;;  %3439 = vmatmul.mubr.bf16.vlgmr.msra.gmra.mrb[60].mxu0 %v3364_v13  ;;  %v7745_v13 = vld [vmem:[#allocation78_spill] sm:$0xff] }
 0xac0   :  { %3484 = vmatpush1.bf16.msra.mxu1 %v6540_v45  ;;  %3525 = vmatpush1.bf16.msra.mxu0 %v6543_v32  ;;  %v7714_v45 = vld [vmem:[#allocation51_spill] sm:$0xff]  ;;  %v7715_v32 = vld [vmem:[#allocation52_spill] sm:$0xff] }
 0xac1   :  { %3485 = vmatprep.subr.bf16.mxu1 %v6546_v12  ;;  %3526 = vmatprep.subr.bf16.mxu0 %v6549_v46  ;;  %v7716_v12 = vld [vmem:[#allocation53_spill] sm:$0xff]  ;;  %v7717_v46 = vld [vmem:[#allocation54_spill] sm:$0xff] }
 0xac2   :  { %3515 = vmatprep.mubr.bf16.mxu1 %v7387_v40  ;;  %3556 = vmatprep.mubr.bf16.mxu0 %v7387_v40 }
 0xac4   :  { %3486 = vmatpush1.bf16.msra.mxu1 %v6554_v23  ;;  %3527 = vmatpush1.bf16.msra.mxu0 %v6557_v15  ;;  %v7718_v23 = vld [vmem:[#allocation55_spill] sm:$0xff]  ;;  %v7719_v15 = vld [vmem:[#allocation56_spill] sm:$0xff] }
 0xac5   :  { %3487 = vmatprep.subr.bf16.mxu1 %v6560_v53  ;;  %3528 = vmatprep.subr.bf16.mxu0 %v6563_v22  ;;  %v7720_v53 = vld [vmem:[#allocation57_spill] sm:$0xff]  ;;  %v7721_v22 = vld [vmem:[#allocation58_spill] sm:$0xff] }
 0xac8   :  { %3488 = vmatpush1.bf16.msra.mxu1 %v6566_v52  ;;  %3529 = vmatpush1.bf16.msra.mxu0 %v6569_v28  ;;  %v7722_v52 = vld [vmem:[#allocation59_spill] sm:$0xff]  ;;  %v7723_v28 = vld [vmem:[#allocation60_spill] sm:$0xff] }
 0xac9   :  { %3489 = vmatprep.subr.bf16.mxu1 %v6572_v37  ;;  %3530 = vmatprep.subr.bf16.mxu0 %v6575_v30  ;;  %v7724_v37 = vld [vmem:[#allocation61_spill] sm:$0xff]  ;;  %v7725_v30 = vld [vmem:[#allocation62_spill] sm:$0xff] }
 0xacc   :  { %3490 = vmatpush1.bf16.msra.mxu1 %v6578_v16  ;;  %3531 = vmatpush1.bf16.msra.mxu0 %v6581_v34  ;;  %v7726_v16 = vld [vmem:[#allocation79_spill] sm:$0xff]  ;;  %v7727_v34 = vld [vmem:[#allocation64_spill] sm:$0xff] }
 0xacd   :  { %3491 = vmatprep.subr.bf16.mxu1 %v6584_v55  ;;  %3532 = vmatprep.subr.bf16.mxu0 %v6587_v41  ;;  %v7728_v55 = vld [vmem:[#allocation65_spill] sm:$0xff]  ;;  %v7729_v41 = vld [vmem:[#allocation66_spill] sm:$0xff] }
 0xad0   :  { %3492 = vmatpush1.bf16.msra.mxu1 %v6590_v42  ;;  %3533 = vmatpush1.bf16.msra.mxu0 %v6593_v35  ;;  %v7730_v42 = vld [vmem:[#allocation67_spill] sm:$0xff]  ;;  %v7731_v35 = vld [vmem:[#allocation68_spill] sm:$0xff] }
 0xad1   :  { %3493 = vmatprep.subr.bf16.mxu1 %v6596_v57  ;;  %3534 = vmatprep.subr.bf16.mxu0 %v6599_v2  ;;  %v7732_v57 = vld [vmem:[#allocation69_spill] sm:$0xff]  ;;  %v7733_v2 = vld [vmem:[#allocation70_spill] sm:$0xff] }
 0xad4   :  { %3494 = vmatpush1.bf16.msra.mxu1 %v6602_v38  ;;  %3535 = vmatpush1.bf16.msra.mxu0 %v6605_v39  ;;  %v7734_v38 = vld [vmem:[#allocation71_spill] sm:$0xff]  ;;  %v7735_v39 = vld [vmem:[#allocation72_spill] sm:$0xff] }
 0xad5   :  { %3495 = vmatprep.subr.bf16.mxu1 %v6608_v47  ;;  %3536 = vmatprep.subr.bf16.mxu0 %v6611_v59  ;;  %v7736_v47 = vld [vmem:[#allocation73_spill] sm:$0xff]  ;;  %v7737_v59 = vld [vmem:[#allocation74_spill] sm:$0xff] }
 0xad8   :  { %3496 = vmatpush1.bf16.msra.mxu1 %v6614_v44  ;;  %3537 = vmatpush1.bf16.msra.mxu0 %v6617_v54  ;;  %v7738_v44 = vld [vmem:[#allocation75_spill] sm:$0xff]  ;;  %v7739_v54 = vld [vmem:[#allocation76_spill] sm:$0xff] }
 0xad9   :  { %3497 = vmatprep.subr.bf16.mxu1 %v6620_v33  ;;  %3538 = vmatprep.subr.bf16.mxu0 %v6623_v48  ;;  %v7740_v33 = vld [vmem:[#allocation77_spill] sm:$0xff]  ;;  %v7741_v48 = vld [vmem:[#allocation15_spill] sm:$0xff] }
 0xadc   :  { %3498 = vmatpush1.bf16.msra.mxu1 %v6626_v14  ;;  %3539 = vmatpush1.bf16.msra.mxu0 %v6629_v9  ;;  %v7742_v14 = vld [vmem:[#allocation16_spill] sm:$0xff]  ;;  %v7743_v9 = vld [vmem:[#allocation17_spill] sm:$0xff] }
 0xadd   :  { %3614 = vmatprep.subr.bf16.mxu1 %v6632_v43  ;;  %3655 = vmatprep.subr.bf16.mxu0 %v7712_v31  ;;  %v7744_v43 = vld [vmem:[#allocation18_spill] sm:$0xff] }
 0xadf   :  { %3516 = vmatmul.mubr.bf16.vlgmr.msra.gmra.mrb[60].mxu1 %v6762_v50  ;;  %3557 = vmatmul.mubr.bf16.vlgmr.msra.gmra.mrb[64].mxu0 %v6762_v50 }
 0xae0   :  { %3615 = vmatpush1.bf16.msra.mxu1 %v7713_v5  ;;  %3656 = vmatpush1.bf16.msra.mxu0 %v7714_v45 }
 0xae1   :  { %3616 = vmatprep.subr.bf16.mxu1 %v7715_v32  ;;  %3657 = vmatprep.subr.bf16.mxu0 %v7716_v12 }
 0xae2   :  { %3646 = vmatprep.mubr.bf16.mxu1 %v7387_v40  ;;  %3687 = vmatprep.mubr.bf16.mxu0 %v7387_v40 }
 0xae4   :  { %3617 = vmatpush1.bf16.msra.mxu1 %v7717_v46  ;;  %3658 = vmatpush1.bf16.msra.mxu0 %v7718_v23 }
 0xae5   :  { %3618 = vmatprep.subr.bf16.mxu1 %v7719_v15  ;;  %3659 = vmatprep.subr.bf16.mxu0 %v7720_v53 }
 0xae8   :  { %3619 = vmatpush1.bf16.msra.mxu1 %v7721_v22  ;;  %3660 = vmatpush1.bf16.msra.mxu0 %v7722_v52 }
 0xae9   :  { %3620 = vmatprep.subr.bf16.mxu1 %v7723_v28  ;;  %3661 = vmatprep.subr.bf16.mxu0 %v7724_v37 }
 0xaec   :  { %3621 = vmatpush1.bf16.msra.mxu1 %v7725_v30  ;;  %3662 = vmatpush1.bf16.msra.mxu0 %v7726_v16 }
 0xaed   :  { %3622 = vmatprep.subr.bf16.mxu1 %v7727_v34  ;;  %3663 = vmatprep.subr.bf16.mxu0 %v7728_v55 }
 0xaf0   :  { %3623 = vmatpush1.bf16.msra.mxu1 %v7729_v41  ;;  %3664 = vmatpush1.bf16.msra.mxu0 %v7730_v42 }
 0xaf1   :  { %3624 = vmatprep.subr.bf16.mxu1 %v7731_v35  ;;  %3665 = vmatprep.subr.bf16.mxu0 %v7732_v57 }
 0xaf4   :  { %3625 = vmatpush1.bf16.msra.mxu1 %v7733_v2  ;;  %3666 = vmatpush1.bf16.msra.mxu0 %v7734_v38 }
 0xaf5   :  { %3626 = vmatprep.subr.bf16.mxu1 %v7735_v39  ;;  %3667 = vmatprep.subr.bf16.mxu0 %v7736_v47  ;;  %v7746_v39 = vld [vmem:[#allocation19_spill] sm:$0xff] }
 0xaf8   :  { %3627 = vmatpush1.bf16.msra.mxu1 %v7737_v59  ;;  %3668 = vmatpush1.bf16.msra.mxu0 %v7738_v44 }
 0xaf9   :  { %3628 = vmatprep.subr.bf16.mxu1 %v7739_v54  ;;  %3669 = vmatprep.subr.bf16.mxu0 %v7740_v33 }
 0xafc   :  { %3629 = vmatpush1.bf16.msra.mxu1 %v7741_v48  ;;  %3670 = vmatpush1.bf16.msra.mxu0 %v7742_v14 }
 0xafd   :  { %3697 = vmatprep.subr.bf16.mxu1 %v7743_v9  ;;  %3738 = vmatprep.subr.bf16.mxu0 %v7744_v43 }
 0xb92   :  { %v3399_v62 = vpop.f32.mrb[56].mxu1  ;;  %v3440_v50 = vpop.f32.mrb[60].mxu0 }
 0xb93   :  { %v4247_v31 = vadd.f32 %v3399_v62, %v7745_v13  ;;  %v3401_v5 = vpop.f32.mrb[57].mxu1  ;;  %v3442_v45 = vpop.f32.mrb[61].mxu0  ;;  %v4249_v37 = vadd.f32 %v3440_v50, %v7662_v58 }
 0xb94   :  { %v4248_v32 = vadd.f32 %v3401_v5, %v7497_v26  ;;  %v3403_v12 = vpop.f32.mrb[58].mxu1  ;;  %v3444_v46 = vpop.f32.mrb[62].mxu0  ;;  %v4250_v52 = vadd.f32 %v3442_v45, %v5759_v49 }
 0xb95   :  { %v4147_v23 = vmul.f32 -1.442695, %v4247_v31  ;;  %v3404_v15 = vpop.f32.mrb[59].mxu1  ;;  %v3445_v53 = vpop.f32.mrb[63].mxu0 }
 0xb96   :  { %v4148_v22 = vmul.f32 -1.442695, %v4248_v32  ;;  %v4149_v28 = vmul.f32 -1.442695, %v4250_v52 }
 0xb97   :  { %4742 = vpow2.f32 %v4147_v23 }
 0xb98   :  { %4744 = vpow2.f32 %v4148_v22 }
 0xb99   :  { %4746 = vpow2.f32 %v4149_v28 }
 0xb9a   :  { %4748 = vtanh.f32 %v4249_v37 }
 0xba1   :  { %v4743_v30 = vpop.eup %4742 }
 0xba2   :  { %v4745_v16 = vpop.eup %4744  ;;  %v3457_v34 = vadd.f32 1.0, %v4743_v30 }
 0xba3   :  { %v3458_v55 = vadd.f32 1.0, %v4745_v16  ;;  %v4747_v41 = vpop.eup %4746 }
 0xba4   :  { %4750 = vrcp.f32 %v3457_v34  ;;  %v4749_v42 = vpop.eup %4748  ;;  %v3467_v38 = vadd.f32 1.0, %v4747_v41 }
 0xba5   :  { %4752 = vrcp.f32 %v3458_v55 }
 0xba6   :  { %4754 = vrcp.f32 %v3467_v38 }
 0xbae   :  { %v4751_v35 = vpop.eup %4750 }
 0xbaf   :  { %v4753_v57 = vpop.eup %4752  ;;  %v3471_v2 = vmul.f32 %v4751_v35, %v4749_v42  ;;  %v3601_v35 = vrot.slane %v6759_v36, 7  ;;  %v7747_v36 = vld [vmem:[#allocation20_spill] sm:$0xff] }
 0xbb0   :  { %v3470_v47 = vmul.f32 %v4753_v57, %v7746_v39  ;;  %v4755_v15 = vpop.eup %4754 }
 0xbb2   :  { %v6937_v59 = vadd.f32 %v3471_v2, %v3470_v47  ;;  %v3517_v44 = vpop.f32.mrb[60].mxu1  ;;  %v3558_v54 = vpop.f32.mrb[64].mxu0 }
 0xbb3   :  { %v3569_v33 = vrot.slane %v3517_v44, 1  ;;  %v3519_v48 = vpop.f32.mrb[61].mxu1  ;;  %v3560_v14 = vpop.f32.mrb[65].mxu0  ;;  %v3571_v53 = vrot.slane %v3558_v54, 1 }
 0xbb4   :  { %4756 = vtanh.f32 %v6937_v59  ;;  %v3570_v9 = vrot.slane %v3519_v48, 1  ;;  %v3521_v43 = vpop.f32.mrb[62].mxu1  ;;  %v3562_v62 = vpop.f32.mrb[66].mxu0  ;;  %v3572_v46 = vrot.slane %v3560_v14, 1  ;;  %v7760_v14 = vld [vmem:[#allocation33_spill] sm:$0xff] }
 0xbb5   :  { %v3577_v50 = vadd.f32 %v3569_v33, %v7433_v51  ;;  %v3522_v31 = vpop.f32.mrb[63].mxu1  ;;  %v3563_v5 = vpop.f32.mrb[67].mxu0  ;;  %v3579_v51 = vadd.f32 %v3571_v53, %v5546_v11  ;;  %v7761_v43 = vmov 0.0   ;;  %v4529_v62 = vld [vmem:[%s7053_s9 + $0x28] sm:$0xff]  }
 0xbb6   :  { %v3578_v45 = vadd.f32 %v3570_v9, %v5534_v25  ;;  %v3580_v23 = vadd.f32 %v3572_v46, %v5541_v61  ;;  %v4531_v31 = vld [vmem:[%s7053_s9 + $0x38] sm:$0xff]  }
 0xbb7   :  { %v4150_v32 = vmul.f32 -1.442695, %v3577_v50  ;;  %v4530_v50 = vld [vmem:[%s7053_s9 + $0x30] sm:$0xff]  }
 0xbb8   :  { %v4151_v12 = vmul.f32 -1.442695, %v3578_v45  ;;  %v4152_v28 = vmul.f32 -1.442695, %v3580_v23 }
 0xbb9   :  { %4758 = vpow2.f32 %v4150_v32 }
 0xbba   :  { %4760 = vpow2.f32 %v4151_v12 }
 0xbbb   :  { %4762 = vpow2.f32 %v4152_v28 }
 0xbbc   :  { %4764 = vtanh.f32 %v3579_v51 }
 0xbbe   :  { %v4757_v22 = vpop.eup %4756 }
 0xbbf   :  { %v6943_v52 = vmul.f32 %v4757_v22, %v4755_v15 }
 0xbc1   :  { %v3481_v25 = vrot.slane %v6943_v52, %v7499_v27  ;;  %v3696_v9 = vpack.c.bf16 %v6943_v52, %v6943_v52 }
 0xbc3   :  { %v4759_v37 = vpop.eup %4758  ;;  %v6950_v30 = vsel %vm3475_vm6, %v3481_v25, %v6756_v56 }
 0xbc4   :  { %v4761_v16 = vpop.eup %4760  ;;  %v3587_v34 = vadd.f32 1.0, %v4759_v37 }
 0xbc5   :  { %v3588_v61 = vadd.f32 1.0, %v4761_v16  ;;  %v4763_v55 = vpop.eup %4762 }
 0xbc6   :  { %4766 = vrcp.f32 %v3587_v34  ;;  %v4765_v41 = vpop.eup %4764  ;;  %v3597_v2 = vadd.f32 1.0, %v4763_v55 }
 0xbc7   :  { %4768 = vrcp.f32 %v3588_v61 }
 0xbc8   :  { %4770 = vrcp.f32 %v3597_v2 }
 0xbd0   :  { %v4767_v42 = vpop.eup %4766 }
 0xbd1   :  { %v4769_v11 = vpop.eup %4768  ;;  %v3604_v57 = vmul.f32 %v4767_v42, %v4765_v41 }
 0xbd2   :  { %v3603_v38 = vmul.f32 %v4769_v11, %v3601_v35  ;;  %v4771_v56 = vpop.eup %4770 }
 0xbd4   :  { %v3605_v39 = vadd.f32 %v3604_v57, %v3603_v38 }
 0xbd6   :  { %4772 = vtanh.f32 %v3605_v39 }
 0xbe0   :  { %v4773_v47 = vpop.eup %4772 }
 0xbe1   :  { %v3607_v44 = vmul.f32 %v4773_v47, %v4771_v56 }
 0xbe3   :  { %v3608_v54 = vpack.c.bf16 %v3607_v44, %v3607_v44 }
 0xbe5   :  { %v3610_v33 = vshrl.u32 %v3608_v54, 16  ;;  %v4156_v54 = vld [vmem:[%s7054_s10] ss:$0 sm:$0xff] }
 0xbe7   :  { %v3612_v48 = vrot.slane %v3610_v33, 3 }
 0xbe9   :  { %3647 = vmatmul.mubr.bf16.vlgmr.msra.gmra.mrb[64].mxu1 %v3612_v48  ;;  %3688 = vmatmul.mubr.bf16.vlgmr.msra.gmra.mrb[68].mxu0 %v3612_v48 }
 0xbea   :  { %3698 = vmatpush1.bf16.msra.mxu1 %v6766_v20  ;;  %3739 = vmatpush1.bf16.msra.mxu0 %v6769_v3  ;;  %v7748_v20 = vld [vmem:[#allocation21_spill] sm:$0xff]  ;;  %v7749_v3 = vld [vmem:[#allocation22_spill] sm:$0xff] }
 0xbeb   :  { %3699 = vmatprep.subr.bf16.mxu1 %v6772_v1  ;;  %3740 = vmatprep.subr.bf16.mxu0 %v6775_v19  ;;  %v7751_v1 = vld [vmem:[#allocation24_spill] sm:$0xff]  ;;  %v7752_v19 = vld [vmem:[#allocation25_spill] sm:$0xff] }
 0xbec   :  { %3729 = vmatprep.mubr.bf16.mxu1 %v7387_v40  ;;  %3770 = vmatprep.mubr.bf16.mxu0 %v7387_v40  ;;  %v7750_v40 = vld [vmem:[#allocation23_spill] sm:$0xff] }
 0xbee   :  { %3700 = vmatpush1.bf16.msra.mxu1 %v6780_v29  ;;  %3741 = vmatpush1.bf16.msra.mxu0 %v6783_v4  ;;  %v7753_v29 = vld [vmem:[#allocation26_spill] sm:$0xff]  ;;  %v7754_v4 = vld [vmem:[#allocation27_spill] sm:$0xff] }
 0xbef   :  { %3701 = vmatprep.subr.bf16.mxu1 %v6786_v18  ;;  %3742 = vmatprep.subr.bf16.mxu0 %v6789_v7  ;;  %v7755_v18 = vld [vmem:[#allocation28_spill] sm:$0xff]  ;;  %v7756_v7 = vld [vmem:[#allocation29_spill] sm:$0xff] }
 0xbf2   :  { %3702 = vmatpush1.bf16.msra.mxu1 %v6792_v63  ;;  %3743 = vmatpush1.bf16.msra.mxu0 %v6795_v6  ;;  %v7757_v63 = vld [vmem:[#allocation30_spill] sm:$0xff]  ;;  %v7758_v6 = vld [vmem:[#allocation31_spill] sm:$0xff] }
 0xbf3   :  { %3703 = vmatprep.subr.bf16.mxu1 %v6798_v60  ;;  %3744 = vmatprep.subr.bf16.mxu0 %v7747_v36  ;;  %v7759_v60 = vld [vmem:[#allocation32_spill] sm:$0xff] }
 0xbf6   :  { %3704 = vmatpush1.bf16.msra.mxu1 %v7748_v20  ;;  %3745 = vmatpush1.bf16.msra.mxu0 %v7749_v3 }
 0xbf7   :  { %3705 = vmatprep.subr.bf16.mxu1 %v7750_v40  ;;  %3746 = vmatprep.subr.bf16.mxu0 %v7751_v1 }
 0xbfa   :  { %3706 = vmatpush1.bf16.msra.mxu1 %v7752_v19  ;;  %3747 = vmatpush1.bf16.msra.mxu0 %v7753_v29 }
 0xbfb   :  { %3707 = vmatprep.subr.bf16.mxu1 %v7754_v4  ;;  %3748 = vmatprep.subr.bf16.mxu0 %v7755_v18 }
 0xbfe   :  { %3708 = vmatpush1.bf16.msra.mxu1 %v7756_v7  ;;  %3749 = vmatpush1.bf16.msra.mxu0 %v7757_v63 }
 0xbff   :  { %3709 = vmatprep.subr.bf16.mxu1 %v7758_v6  ;;  %3750 = vmatprep.subr.bf16.mxu0 %v7759_v60 }
 0xc02   :  { %3710 = vmatpush1.bf16.msra.mxu1 %v7760_v14  ;;  %3751 = vmatpush1.bf16.msra.mxu0 %v6843_v10  ;;  %v4524_v10 = vld [vmem:[%s7053_s9] sm:$0xff]  }
 0xc03   :  { %3711 = vmatprep.subr.bf16.mxu1 %v6846_v24  ;;  %3752 = vmatprep.subr.bf16.mxu0 %v6849_v17  ;;  %v4526_v24 = vld [vmem:[%s7053_s9 + $0x10] sm:$0xff]   ;;  %v4527_v17 = vld [vmem:[%s7053_s9 + $0x18] sm:$0xff]  }
 0xc06   :  { %3712 = vmatpush1.bf16.msra.mxu1 %v6852_v0  ;;  %3753 = vmatpush1.bf16.msra.mxu0 %v6855_v21  ;;  %v4525_v21 = vld [vmem:[%s7053_s9 + $0x8] sm:$0xff]   ;;  %v4528_v0 = vld [vmem:[%s7053_s9 + $0x20] sm:$0xff]  }
 0xc07   :  { %4203 = vmatprep.subr.bf16.mxu1 %v7761_v43 }
 0xc09   :  { %3730 = vmatmul.mubr.bf16.vlgmr.msra.gmra.mrb[64].mxu1 %v3696_v9  ;;  %3771 = vmatmul.mubr.bf16.vlgmr.msra.gmra.mrb[68].mxu0 %v3696_v9 }
 0xc0a   :  { %4219 = vmatprep.mubr.msk.bf16.mxu1 %vm5108_vm1, %v7761_v43  ;;  %4204 = vmatpush3.bf16.msra.mxu1 %v4524_v10  ;;  %vm3807_vm1 = vcmp.eq.s32.totalorder %v5519_v8, 7 }
 0xc0b   :  { %4205 = vmatprep.subr.bf16.mxu1 %v7761_v43 }
 0xc0e   :  { %4206 = vmatpush3.bf16.msra.mxu1 %v4525_v21 }
 0xc0f   :  { %4207 = vmatprep.subr.bf16.mxu1 %v7761_v43 }
 0xc12   :  { %4208 = vmatpush3.bf16.msra.mxu1 %v4526_v24 }
 0xc13   :  { %4209 = vmatprep.subr.bf16.mxu1 %v7761_v43 }
 0xc16   :  { %4210 = vmatpush3.bf16.msra.mxu1 %v4527_v17 }
 0xc17   :  { %4211 = vmatprep.subr.bf16.mxu1 %v7761_v43 }
 0xc1a   :  { %4212 = vmatpush3.bf16.msra.mxu1 %v4528_v0 }
 0xc1b   :  { %4213 = vmatprep.subr.bf16.mxu1 %v7761_v43 }
 0xc1e   :  { %4214 = vmatpush3.bf16.msra.mxu1 %v4529_v62 }
 0xc1f   :  { %4215 = vmatprep.subr.bf16.mxu1 %v7761_v43 }
 0xc22   :  { %4216 = vmatpush3.bf16.msra.mxu1 %v4530_v50 }
 0xc23   :  { %4217 = vmatprep.subr.bf16.mxu1 %v7761_v43 }
 0xc26   :  { %4218 = vmatpush3.bf16.msra.mxu1 %v4531_v31 }
 0xcdc   :  { %v3731_v5 = vpop.f32.mrb[64].mxu1  ;;  %v3772_v45 = vpop.f32.mrb[68].mxu0 }
 0xcdd   :  { %v4251_v32 = vadd.f32 %v3731_v5, %v7745_v13  ;;  %v3733_v12 = vpop.f32.mrb[65].mxu1  ;;  %v3774_v46 = vpop.f32.mrb[69].mxu0  ;;  %v4253_v16 = vadd.f32 %v3772_v45, %v7662_v58 }
 0xcde   :  { %v4252_v23 = vadd.f32 %v3733_v12, %v7497_v26  ;;  %v3735_v15 = vpop.f32.mrb[66].mxu1  ;;  %v3776_v53 = vpop.f32.mrb[70].mxu0  ;;  %v4254_v25 = vadd.f32 %v3774_v46, %v5759_v49 }
 0xcdf   :  { %v4153_v22 = vmul.f32 -1.442695, %v4251_v32  ;;  %v3736_v52 = vpop.f32.mrb[67].mxu1  ;;  %v3777_v28 = vpop.f32.mrb[71].mxu0 }
 0xce0   :  { %v4154_v51 = vmul.f32 -1.442695, %v4252_v23  ;;  %v4155_v37 = vmul.f32 -1.442695, %v4254_v25 }
 0xce1   :  { %4774 = vpow2.f32 %v4153_v22 }
 0xce2   :  { %4776 = vpow2.f32 %v4154_v51 }
 0xce3   :  { %4778 = vpow2.f32 %v4155_v37 }
 0xce4   :  { %4780 = vtanh.f32 %v4253_v16 }
 0xceb   :  { %v4775_v34 = vpop.eup %4774 }
 0xcec   :  { %v4777_v61 = vpop.eup %4776  ;;  %v3789_v13 = vadd.f32 1.0, %v4775_v34 }
 0xced   :  { %v3790_v55 = vadd.f32 1.0, %v4777_v61  ;;  %v4779_v26 = vpop.eup %4778 }
 0xcee   :  { %4782 = vrcp.f32 %v3789_v13  ;;  %v4781_v41 = vpop.eup %4780  ;;  %v3799_v57 = vadd.f32 1.0, %v4779_v26 }
 0xcef   :  { %4784 = vrcp.f32 %v3790_v55 }
 0xcf0   :  { %4786 = vrcp.f32 %v3799_v57 }
 0xcf8   :  { %v4783_v42 = vpop.eup %4782 }
 0xcf9   :  { %v4785_v35 = vpop.eup %4784  ;;  %v3803_v11 = vmul.f32 %v4783_v42, %v4781_v41 }
 0xcfa   :  { %v3802_v2 = vmul.f32 %v4785_v35, %v6937_v59  ;;  %v4787_v58 = vpop.eup %4786 }
 0xcfc   :  { %v3804_v49 = vadd.f32 %v3803_v11, %v3802_v2 }
 0xcfe   :  { %4788 = vtanh.f32 %v3804_v49 }
 0xd08   :  { %v4789_v38 = vpop.eup %4788 }
 0xd09   :  { %v3806_v39 = vmul.f32 %v4789_v38, %v4787_v58 }
 0xd0b   :  { %v3813_v56 = vrot.slane %v3806_v39, %v7499_v27 }
 0xd0d   :  { %v3814_v47 = vsel %vm3807_vm1, %v3813_v56, %v6950_v30 }
 0xd0e   :  { %v3815_v44 = vpack.c.bf16 %v3814_v47, %v3814_v47 }
 0xd10   :  { %4220 = vmatmul.mubr.bf16.vlgmr.msra.gmra.mrb[68].mxu1 %v3815_v44 }
 0xde3   :  { %v3921_v59 = vpop.f32.mrb[68].mxu1 }
 0xde4   :  { %v3922_v33 = vadd.f32 %v4156_v54, %v3921_v59  ;;  %v4221_v48 = vpop.f32.mrb[69].mxu1 }
 0xde5   :  { %v3924_v36 = vpop.f32.mrb[70].mxu1 }
 0xde6   :  { %3927 = vst [vmem:[#allocation10] sm:$0xff] %v3922_v33  ;;  %v4222_v20 = vpop.f32.mrb[71].mxu1 }
 0xde7   :  { %5081 = shalt.err (!%p5078_p8)
}
 0xde8   :  { %s5082_s10 = scalar_lea.hbm %s7055_s11, 128 }
 0xde9   :  { %p5083_p9 = scmp.ne.s32.totalorder %s7055_s11, %s5082_s10  ;;  %p5086_p10 = scmp.lt.u32.totalorder %s5082_s10, %s7055_s11 }
 0xdeb   :  { %p5088_p11 = pnand %p5086_p10, %p5083_p9 }
 0xded   :  { %5091 = shalt.err (!%p5088_p11)
}
 0xdee   :  { %3937 = dma.vmem_to_hbm [thread:$0]  %s3935_s29, 128, %s7055_s11, [#allocation4]  }
 0xdef   :  { %5098 = dma.done.wait [#allocation4], 128  }
 0xdf0   :  { %5099 = vsyncadd [#allocation4], 4294967168 }
 0xdf1   :  { %3941 = vsyncpa [#allocation3], 1 }
 0xdf2   :  { %3942 = vsyncpa [#allocation6], 1 }
 0xdf3   :  { %3943 = vsyncpa [#allocation9], 1 }
 0xdf4   :  { %3944 = vsyncpa [#allocation4], 1 }

</bundles_post_ra>
